<compile_context>
chip_gen: v7x
topology: tpu7x:2x2x1
jax: 0.10.0
libtpu: 0.0.40
codegen_flags: <defaults>
</compile_context>

<pallas_src>
import math
import functools

import jax
import jax.numpy as jnp
from jax.experimental import pallas as pl
from jax.experimental.pallas import tpu as pltpu

EPS = 1e-5  # torch.nn.LayerNorm default eps


# ---------------------------------------------------------------------------
# Fused decoder-block kernel (one grid step == `batch_per_block` sequences)
# ---------------------------------------------------------------------------

def _decoder_block_kernel(
    # activations, flattened to (rows, E)
    x_ref, ek_ref, dq_ref,
    # masked self-attention
    wq_s_ref, wk_s_ref, wv_s_ref, wo_s_ref, bo_s_ref, g0_ref, b0_ref,
    # cross-attention (TransformerBlock.attention)
    wq_c_ref, wk_c_ref, wv_c_ref, wo_c_ref, bo_c_ref, g1_ref, be1_ref,
    # feed-forward + final norm
    w1_ref, bf1_ref, w2_ref, bf2_ref, g2_ref, be2_ref,
    # output
    o_ref,
    *, n_heads, head_dim, seq_len, batch_per_block):

    L = seq_len
    E = n_heads * head_dim
    f32 = jnp.float32
    bf16 = jnp.bfloat16

    def mm(a_bf, w_ref):
        # bf16 MXU matmul, f32 accumulation; weights are stored bf16 in HBM.
        return jax.lax.dot_general(
            a_bf, w_ref[...],
            dimension_numbers=(((1,), (0,)), ((), ())),
            preferred_element_type=f32)

    def layer_norm(v, g_ref, b_ref):
        mean = jnp.mean(v, axis=-1, keepdims=True)
        var = jnp.mean((v - mean) ** 2, axis=-1, keepdims=True)  # biased, matches torch
        return (v - mean) * jax.lax.rsqrt(var + EPS) * g_ref[...] + b_ref[...]

    # Additive causal bias, built ONCE per kernel invocation (self-attention only).
    row_id = jax.lax.broadcasted_iota(jnp.int32, (L, L), 0)
    col_id = jax.lax.broadcasted_iota(jnp.int32, (L, L), 1)
    causal_bias = jnp.where(row_id >= col_id, 0.0, -1e20).astype(f32)

    def to_heads_T(t2):
        # (L, E) row-major -> (H, hd, L): 2-D transpose + tile-aligned sublane split
        # (head_dim = 8 == f32 sublane tile here, so the reshape is layout-trivial).
        return t2.T.reshape(n_heads, head_dim, L)

    def mha(q2, k2, v2, wo_ref, bo_ref, bias):
        # q2/k2/v2: (rows, E) f32 projections (1/sqrt(head_dim) pre-folded into Wq).
        outs = []
        for b in range(batch_per_block):          # scores / P@V are inherently per-sequence
            rows = slice(b * L, (b + 1) * L)      # sublane-aligned row slice (L % 8 == 0)
            kT = to_heads_T(k2[rows]).astype(bf16)                         # (H, hd, Lk)
            vT = to_heads_T(v2[rows]).astype(bf16)                         # (H, hd, Lk)
            q3 = jnp.swapaxes(to_heads_T(q2[rows]), 1, 2).astype(bf16)     # (H, Lq, hd)

            # all heads in one MXU call: (H, Lq, hd) x (H, hd, Lk) -> (H, Lq, Lk)
            s = jax.lax.dot_general(
                q3, kT, dimension_numbers=(((2,), (1,)), ((0,), (0,))),
                preferred_element_type=f32)
            if bias is not None:
                s = s + bias                       # single VPU add, broadcast over heads
            m = jnp.max(s, axis=-1, keepdims=True)
            p = jnp.exp(s - m)
            p = p * pl.reciprocal(jnp.sum(p, axis=-1, keepdims=True), approx=True)

            # (H, hd, Lk) x (H, Lq, Lk) -> (H, hd, Lq)  (P @ V, transposed form)
            oT = jax.lax.dot_general(
                vT, p.astype(bf16), dimension_numbers=(((2,), (2,)), ((0,), (0,))),
                preferred_element_type=f32)
            outs.append(oT.reshape(E, L).T)        # back to lane-dense (Lq, E)
        attn = outs[0] if len(outs) == 1 else jnp.concatenate(outs, axis=0)
        return mm(attn.astype(bf16), wo_ref) + bo_ref[...]   # output projection (with bias)

    x_f32 = x_ref[...]
    x_bf = x_f32.astype(bf16)
    ek_bf = ek_ref[...].astype(bf16)
    dq_bf = dq_ref[...].astype(bf16)

    # 1) masked self-attention on x (Q/K/V bias-free, like nn.Linear(bias=False))
    self_out = mha(mm(x_bf, wq_s_ref), mm(x_bf, wk_s_ref), mm(x_bf, wv_s_ref),
                   wo_s_ref, bo_s_ref, causal_bias)

    # 2) value = dropout(norm(attention + x))   (dropout = identity in eval)
    value_f32 = layer_norm(self_out + x_f32, g0_ref, b0_ref)
    value_bf = value_f32.astype(bf16)

    # 3) TransformerBlock cross-attention: called as attention(key, query, value)
    #    => MHA query = encoder key, MHA key = decoder query, MHA value = value, no mask.
    cross_out = mha(mm(ek_bf, wq_c_ref), mm(dq_bf, wk_c_ref), mm(value_bf, wv_c_ref),
                    wo_c_ref, bo_c_ref, None)

    norm1_f32 = layer_norm(cross_out + value_f32, g1_ref, be1_ref)
    norm1_bf = norm1_f32.astype(bf16)

    # 4) feed-forward: Linear -> ReLU -> Linear, then residual + LayerNorm
    h = jnp.maximum(mm(norm1_bf, w1_ref) + bf1_ref[...], 0.0)
    ffn = mm(h.astype(bf16), w2_ref) + bf2_ref[...]

    o_ref[...] = layer_norm(ffn + norm1_f32, g2_ref, be2_ref)


# ---------------------------------------------------------------------------
# pallas_call wrapper
# ---------------------------------------------------------------------------

def decoder_block_forward(enc_key, dec_query, x, kp, n_heads, batches_per_step=None):
    """Fused DecoderBlock forward. enc_key/dec_query/x: (B, L, E) f32.
    The look-ahead (tril) mask is generated inside the kernel."""
    B, L, E = x.shape
    assert E % n_heads == 0
    hd = E // n_heads
    if batches_per_step is None:
        batches_per_step = B          # one grid step: largest row slab, no per-step overhead
    assert B % batches_per_step == 0
    n_steps = B // batches_per_step
    rows_blk = batches_per_step * L

    # fold batch into rows: all dense work runs on a (B*L, E) slab
    xf = x.reshape(B * L, E)
    ekf = enc_key.reshape(B * L, E)
    dqf = dec_query.reshape(B * L, E)

    args = (
        xf, ekf, dqf,
        kp["self_wq"], kp["self_wk"], kp["self_wv"], kp["self_wo"], kp["self_bo"],
        kp["norm0_g"], kp["norm0_b"],
        kp["cross_wq"], kp["cross_wk"], kp["cross_wv"], kp["cross_wo"], kp["cross_bo"],
        kp["norm1_g"], kp["norm1_b"],
        kp["ffn_w1"], kp["ffn_b1"], kp["ffn_w2"], kp["ffn_b2"],
        kp["norm2_g"], kp["norm2_b"],
    )

    act_spec = pl.BlockSpec((rows_blk, E), lambda i: (i, 0))

    def resident(a):
        # full-array block, constant index_map -> resident across the (tiny) grid
        nd = a.ndim
        return pl.BlockSpec(a.shape, lambda i: (0,) * nd)

    in_specs = [act_spec, act_spec, act_spec] + [resident(a) for a in args[3:]]

    kernel = functools.partial(
        _decoder_block_kernel, n_heads=n_heads, head_dim=hd,
        seq_len=L, batch_per_block=batches_per_step)

    # advisory cost estimate for the XLA scheduler
    Hf = kp["ffn_w1"].shape[1]
    flops = 2 * B * L * (8 * E * E + 2 * E * Hf) + 8 * B * L * L * E
    transcendentals = 2 * B * n_heads * L * L
    bytes_accessed = int(sum(int(a.size) * a.dtype.itemsize for a in args)) + B * L * E * 4

    out_flat = pl.pallas_call(
        kernel,
        out_shape=jax.ShapeDtypeStruct((B * L, E), jnp.float32),
        grid=(n_steps,),
        in_specs=in_specs,
        out_specs=pl.BlockSpec((rows_blk, E), lambda i: (i, 0)),
        compiler_params=pltpu.CompilerParams(
            dimension_semantics=("parallel",),
            # raise for large E (weights ~16*E^2 bf16 bytes); 32 MiB never lowers any default
            vmem_limit_bytes=32 * 1024 * 1024,
        ),
        cost_estimate=pl.CostEstimate(
            flops=int(flops),
            transcendentals=int(transcendentals),
            bytes_accessed=int(bytes_accessed)),
    )(*args)
    return out_flat.reshape(B, L, E)


# ---------------------------------------------------------------------------
# Parameters: f32 "model" params (torch-like) + kernel-ready packing
# ---------------------------------------------------------------------------

def init_params(rng, embed_dim, expansion_factor):
    E = embed_dim
    H = expansion_factor * E
    ks = jax.random.split(rng, 14)
    s = 0.02

    def w(k, shape):
        return jax.random.normal(k, shape, jnp.float32) * s

    return dict(
        # masked self-attention (Q/K/V bias-free, out-proj with bias, like the reference)
        self_wq=w(ks[0], (E, E)), self_wk=w(ks[1], (E, E)), self_wv=w(ks[2], (E, E)),
        self_wo=w(ks[3], (E, E)), self_bo=w(ks[4], (E,)),
        norm0_g=jnp.ones((E,), jnp.float32), norm0_b=jnp.zeros((E,), jnp.float32),
        # cross-attention inside the TransformerBlock
        cross_wq=w(ks[5], (E, E)), cross_wk=w(ks[6], (E, E)), cross_wv=w(ks[7], (E, E)),
        cross_wo=w(ks[8], (E, E)), cross_bo=w(ks[9], (E,)),
        norm1_g=jnp.ones((E,), jnp.float32), norm1_b=jnp.zeros((E,), jnp.float32),
        # feed-forward
        ffn_w1=w(ks[10], (E, H)), ffn_b1=w(ks[11], (H,)),
        ffn_w2=w(ks[12], (H, E)), ffn_b2=w(ks[13], (E,)),
        norm2_g=jnp.ones((E,), jnp.float32), norm2_b=jnp.zeros((E,), jnp.float32),
    )


def pack_params(p, n_heads):
    """Kernel-ready params: bf16 weights (half the HBM/DMA bytes), 1/sqrt(head_dim) folded
    into the Q-projection weights, f32 (1, N) biases / LayerNorm affines."""
    E = p["self_wq"].shape[0]
    inv = 1.0 / math.sqrt(E // n_heads)
    bf = lambda a: a.astype(jnp.bfloat16)
    row = lambda a: a.reshape(1, -1).astype(jnp.float32)
    return dict(
        self_wq=bf(p["self_wq"] * inv), self_wk=bf(p["self_wk"]), self_wv=bf(p["self_wv"]),
        self_wo=bf(p["self_wo"]), self_bo=row(p["self_bo"]),
        norm0_g=row(p["norm0_g"]), norm0_b=row(p["norm0_b"]),
        cross_wq=bf(p["cross_wq"] * inv), cross_wk=bf(p["cross_wk"]), cross_wv=bf(p["cross_wv"]),
        cross_wo=bf(p["cross_wo"]), cross_bo=row(p["cross_bo"]),
        norm1_g=row(p["norm1_g"]), norm1_b=row(p["norm1_b"]),
        ffn_w1=bf(p["ffn_w1"]), ffn_b1=row(p["ffn_b1"]),
        ffn_w2=bf(p["ffn_w2"]), ffn_b2=row(p["ffn_b2"]),
        norm2_g=row(p["norm2_g"]), norm2_b=row(p["norm2_b"]),
    )


# ---------------------------------------------------------------------------
# Pure-JAX f32 reference (mirrors the PyTorch module) for validation
# ---------------------------------------------------------------------------

def _mha_ref(query, key, value, mask, wq, wk, wv, wo, bo, n_heads):
    B, Lq, E = query.shape
    Lk = key.shape[1]
    hd = E // n_heads
    Q = (query @ wq).reshape(B, Lq, n_heads, hd).transpose(0, 2, 1, 3)
    K = (key @ wk).reshape(B, Lk, n_heads, hd).transpose(0, 2, 1, 3)
    V = (value @ wv).reshape(B, Lk, n_heads, hd).transpose(0, 2, 1, 3)
    s = jnp.einsum("bhqd,bhkd->bhqk", Q, K) / math.sqrt(hd)
    if mask is not None:
        s = jnp.where(mask == 0, jnp.float32(-1e20), s)
    p = jax.nn.softmax(s, axis=-1)
    o = jnp.einsum("bhqk,bhkd->bhqd", p, V).transpose(0, 2, 1, 3).reshape(B, Lq, E)
    return o @ wo + bo


def _ln_ref(x, g, b):
    m = jnp.mean(x, -1, keepdims=True)
    v = jnp.mean((x - m) ** 2, -1, keepdims=True)
    return (x - m) / jnp.sqrt(v + EPS) * g + b


def decoder_block_ref(enc_key, dec_query, x, mask, p, n_heads):
    sa = _mha_ref(x, x, x, mask, p["self_wq"], p["self_wk"], p["self_wv"],
                  p["self_wo"], p["self_bo"], n_heads)
    value = _ln_ref(sa + x, p["norm0_g"], p["norm0_b"])
    # TransformerBlock: self.attention(key, query, value) -> MHA query=enc_key, key=dec_query
    ca = _mha_ref(enc_key, dec_query, value, None, p["cross_wq"], p["cross_wk"],
                  p["cross_wv"], p["cross_wo"], p["cross_bo"], n_heads)
    n1 = _ln_ref(ca + value, p["norm1_g"], p["norm1_b"])
    ff = jnp.maximum(n1 @ p["ffn_w1"] + p["ffn_b1"], 0.0) @ p["ffn_w2"] + p["ffn_b2"]
    return _ln_ref(ff + n1, p["norm2_g"], p["norm2_b"])


# ---------------------------------------------------------------------------
# Main
# ---------------------------------------------------------------------------

if __name__ == "__main__":
    B, L, E = 2, 8, 64
    N_HEADS = 8
    EXPANSION = 4

    root = jax.random.PRNGKey(0)
    k_params, k_key, k_query, k_x = jax.random.split(root, 4)

    params = init_params(k_params, E, EXPANSION)
    kparams = pack_params(params, N_HEADS)

    enc_key = jax.random.normal(k_key, (B, L, E), jnp.float32)      # encoder output
    dec_query = jax.random.normal(k_query, (B, L, E), jnp.float32)
    x = jax.random.normal(k_x, (B, L, E), jnp.float32)              # decoder input

    fwd = jax.jit(functools.partial(decoder_block_forward, n_heads=N_HEADS))
    out = fwd(enc_key, dec_query, x, kparams)
    jax.block_until_ready(out)

    # validate against a pure-JAX f32 reference (kernel uses bf16 matmuls, f32 accumulation)
    mask = jnp.tril(jnp.ones((L, L), jnp.int32))  # same semantics as in-kernel causal bias
    ref = decoder_block_ref(enc_key, dec_query, x, mask, params, N_HEADS)

    assert out.shape == (B, L, E)
    assert bool(jnp.all(jnp.isfinite(out)))
    max_err = float(jnp.max(jnp.abs(out - ref)))
    assert max_err < 5e-2, f"max abs err vs reference: {max_err}"
    print("KERNEL_OK")
</pallas_src>

<mosaic_0001>
module attributes {stable_mosaic.version = 11 : i64} {
  func.func @_decoder_block_kernel(%arg0: i32, %arg1: memref<16x64xf32, #tpu.memory_space<vmem>>, %arg2: memref<16x64xf32, #tpu.memory_space<vmem>>, %arg3: memref<16x64xf32, #tpu.memory_space<vmem>>, %arg4: memref<64x64xbf16, #tpu.memory_space<vmem>>, %arg5: memref<64x64xbf16, #tpu.memory_space<vmem>>, %arg6: memref<64x64xbf16, #tpu.memory_space<vmem>>, %arg7: memref<64x64xbf16, #tpu.memory_space<vmem>>, %arg8: memref<1x64xf32, #tpu.memory_space<vmem>>, %arg9: memref<1x64xf32, #tpu.memory_space<vmem>>, %arg10: memref<1x64xf32, #tpu.memory_space<vmem>>, %arg11: memref<64x64xbf16, #tpu.memory_space<vmem>>, %arg12: memref<64x64xbf16, #tpu.memory_space<vmem>>, %arg13: memref<64x64xbf16, #tpu.memory_space<vmem>>, %arg14: memref<64x64xbf16, #tpu.memory_space<vmem>>, %arg15: memref<1x64xf32, #tpu.memory_space<vmem>>, %arg16: memref<1x64xf32, #tpu.memory_space<vmem>>, %arg17: memref<1x64xf32, #tpu.memory_space<vmem>>, %arg18: memref<64x256xbf16, #tpu.memory_space<vmem>>, %arg19: memref<1x256xf32, #tpu.memory_space<vmem>>, %arg20: memref<256x64xbf16, #tpu.memory_space<vmem>>, %arg21: memref<1x64xf32, #tpu.memory_space<vmem>>, %arg22: memref<1x64xf32, #tpu.memory_space<vmem>>, %arg23: memref<1x64xf32, #tpu.memory_space<vmem>>, %arg24: memref<16x64xf32, #tpu.memory_space<vmem>>) attributes {dimension_semantics = [#tpu.dimension_semantics<parallel>], iteration_bounds = array<i64: 1>, scalar_prefetch = 0 : i64, scratch_operands = 0 : i64, tpu.core_type = #tpu.core_type<tc>, window_params = [{transform_indices = @transform_0, window_bounds = array<i64: 16, 64>}, {transform_indices = @transform_1, window_bounds = array<i64: 16, 64>}, {transform_indices = @transform_2, window_bounds = array<i64: 16, 64>}, {pipeline_mode = #tpu.pipeline_mode<synchronous>, transform_indices = @transform_3, window_bounds = array<i64: 64, 64>}, {pipeline_mode = #tpu.pipeline_mode<synchronous>, transform_indices = @transform_4, window_bounds = array<i64: 64, 64>}, {pipeline_mode = #tpu.pipeline_mode<synchronous>, transform_indices = @transform_5, window_bounds = array<i64: 64, 64>}, {pipeline_mode = #tpu.pipeline_mode<synchronous>, transform_indices = @transform_6, window_bounds = array<i64: 64, 64>}, {pipeline_mode = #tpu.pipeline_mode<synchronous>, transform_indices = @transform_7, window_bounds = array<i64: 1, 64>}, {pipeline_mode = #tpu.pipeline_mode<synchronous>, transform_indices = @transform_8, window_bounds = array<i64: 1, 64>}, {pipeline_mode = #tpu.pipeline_mode<synchronous>, transform_indices = @transform_9, window_bounds = array<i64: 1, 64>}, {pipeline_mode = #tpu.pipeline_mode<synchronous>, transform_indices = @transform_10, window_bounds = array<i64: 64, 64>}, {pipeline_mode = #tpu.pipeline_mode<synchronous>, transform_indices = @transform_11, window_bounds = array<i64: 64, 64>}, {pipeline_mode = #tpu.pipeline_mode<synchronous>, transform_indices = @transform_12, window_bounds = array<i64: 64, 64>}, {pipeline_mode = #tpu.pipeline_mode<synchronous>, transform_indices = @transform_13, window_bounds = array<i64: 64, 64>}, {pipeline_mode = #tpu.pipeline_mode<synchronous>, transform_indices = @transform_14, window_bounds = array<i64: 1, 64>}, {pipeline_mode = #tpu.pipeline_mode<synchronous>, transform_indices = @transform_15, window_bounds = array<i64: 1, 64>}, {pipeline_mode = #tpu.pipeline_mode<synchronous>, transform_indices = @transform_16, window_bounds = array<i64: 1, 64>}, {pipeline_mode = #tpu.pipeline_mode<synchronous>, transform_indices = @transform_17, window_bounds = array<i64: 64, 256>}, {pipeline_mode = #tpu.pipeline_mode<synchronous>, transform_indices = @transform_18, window_bounds = array<i64: 1, 256>}, {pipeline_mode = #tpu.pipeline_mode<synchronous>, transform_indices = @transform_19, window_bounds = array<i64: 256, 64>}, {pipeline_mode = #tpu.pipeline_mode<synchronous>, transform_indices = @transform_20, window_bounds = array<i64: 1, 64>}, {pipeline_mode = #tpu.pipeline_mode<synchronous>, transform_indices = @transform_21, window_bounds = array<i64: 1, 64>}, {pipeline_mode = #tpu.pipeline_mode<synchronous>, transform_indices = @transform_22, window_bounds = array<i64: 1, 64>}, {transform_indices = @transform_23, window_bounds = array<i64: 16, 64>}]} {
    %0 = tpu.iota {dimensions = array<i32: 0>} : vector<8x8xi32>
    %1 = tpu.iota {dimensions = array<i32: 1>} : vector<8x8xi32>
    %2 = arith.cmpi sge, %0, %1 : vector<8x8xi32>
    %cst = arith.constant 0.000000e+00 : f32
    %cst_0 = arith.constant -1.000000e+20 : f32
    %3 = vector.broadcast %cst : f32 to vector<8x8xf32>
    %4 = vector.broadcast %cst_0 : f32 to vector<8x8xf32>
    %5 = arith.select %2, %3, %4 : vector<8x8xi1>, vector<8x8xf32>
    %c0 = arith.constant 0 : index
    %c0_1 = arith.constant 0 : index
    %6 = vector.load %arg1[%c0, %c0_1] : memref<16x64xf32, #tpu.memory_space<vmem>>, vector<16x64xf32>
    %7 = arith.truncf %6 : vector<16x64xf32> to vector<16x64xbf16>
    %c0_2 = arith.constant 0 : index
    %c0_3 = arith.constant 0 : index
    %8 = vector.load %arg2[%c0_2, %c0_3] : memref<16x64xf32, #tpu.memory_space<vmem>>, vector<16x64xf32>
    %9 = arith.truncf %8 : vector<16x64xf32> to vector<16x64xbf16>
    %c0_4 = arith.constant 0 : index
    %c0_5 = arith.constant 0 : index
    %10 = vector.load %arg3[%c0_4, %c0_5] : memref<16x64xf32, #tpu.memory_space<vmem>>, vector<16x64xf32>
    %11 = arith.truncf %10 : vector<16x64xf32> to vector<16x64xbf16>
    %c0_6 = arith.constant 0 : index
    %c0_7 = arith.constant 0 : index
    %12 = vector.load %arg4[%c0_6, %c0_7] : memref<64x64xbf16, #tpu.memory_space<vmem>>, vector<64x64xbf16>
    %cst_8 = arith.constant dense<0.000000e+00> : vector<16x64xf32>
    %13 = tpu.matmul %7, %12, %cst_8 {dimension_numbers = #tpu.dot_dimension_numbers<[1], [0], [0], [1], [0, 0, 1, 1], [], []>} : vector<16x64xbf16>, vector<64x64xbf16>, vector<16x64xf32> -> vector<16x64xf32>
    %c0_9 = arith.constant 0 : index
    %c0_10 = arith.constant 0 : index
    %14 = vector.load %arg5[%c0_9, %c0_10] : memref<64x64xbf16, #tpu.memory_space<vmem>>, vector<64x64xbf16>
    %cst_11 = arith.constant dense<0.000000e+00> : vector<16x64xf32>
    %15 = tpu.matmul %7, %14, %cst_11 {dimension_numbers = #tpu.dot_dimension_numbers<[1], [0], [0], [1], [0, 0, 1, 1], [], []>} : vector<16x64xbf16>, vector<64x64xbf16>, vector<16x64xf32> -> vector<16x64xf32>
    %c0_12 = arith.constant 0 : index
    %c0_13 = arith.constant 0 : index
    %16 = vector.load %arg6[%c0_12, %c0_13] : memref<64x64xbf16, #tpu.memory_space<vmem>>, vector<64x64xbf16>
    %cst_14 = arith.constant dense<0.000000e+00> : vector<16x64xf32>
    %17 = tpu.matmul %7, %16, %cst_14 {dimension_numbers = #tpu.dot_dimension_numbers<[1], [0], [0], [1], [0, 0, 1, 1], [], []>} : vector<16x64xbf16>, vector<64x64xbf16>, vector<16x64xf32> -> vector<16x64xf32>
    %18 = vector.extract_strided_slice %15 {offsets = [0, 0], sizes = [8, 64], strides = [1, 1]} : vector<16x64xf32> to vector<8x64xf32>
    %19 = tpu.transpose %18, [1, 0] : vector<8x64xf32> -> vector<64x8xf32>
    %20 = vector.shape_cast %19 : vector<64x8xf32> to vector<8x8x8xf32>
    %21 = arith.truncf %20 : vector<8x8x8xf32> to vector<8x8x8xbf16>
    %22 = vector.extract_strided_slice %17 {offsets = [0, 0], sizes = [8, 64], strides = [1, 1]} : vector<16x64xf32> to vector<8x64xf32>
    %23 = tpu.transpose %22, [1, 0] : vector<8x64xf32> -> vector<64x8xf32>
    %24 = vector.shape_cast %23 : vector<64x8xf32> to vector<8x8x8xf32>
    %25 = arith.truncf %24 : vector<8x8x8xf32> to vector<8x8x8xbf16>
    %26 = vector.extract_strided_slice %13 {offsets = [0, 0], sizes = [8, 64], strides = [1, 1]} : vector<16x64xf32> to vector<8x64xf32>
    %27 = tpu.transpose %26, [1, 0] : vector<8x64xf32> -> vector<64x8xf32>
    %28 = vector.shape_cast %27 : vector<64x8xf32> to vector<8x8x8xf32>
    %29 = tpu.transpose %28, [0, 2, 1] : vector<8x8x8xf32> -> vector<8x8x8xf32>
    %30 = arith.truncf %29 : vector<8x8x8xf32> to vector<8x8x8xbf16>
    %cst_15 = arith.constant dense<0.000000e+00> : vector<8x8x8xf32>
    %31 = tpu.matmul %30, %21, %cst_15 {dimension_numbers = #tpu.dot_dimension_numbers<[2], [1], [1], [2], [0, 0, 0, 1, 1, 2], [0], [0]>} : vector<8x8x8xbf16>, vector<8x8x8xbf16>, vector<8x8x8xf32> -> vector<8x8x8xf32>
    %32 = vector.shape_cast %5 : vector<8x8xf32> to vector<1x8x8xf32>
    %33 = vector.broadcast %32 : vector<1x8x8xf32> to vector<8x8x8xf32>
    %34 = arith.addf %31, %33 : vector<8x8x8xf32>
    %cst_16 = arith.constant dense<0xFF800000> : vector<8x8xf32>
    %35 = vector.multi_reduction <maximumf>, %34, %cst_16 [2] : vector<8x8x8xf32> to vector<8x8xf32>
    %36 = vector.shape_cast %35 : vector<8x8xf32> to vector<8x8x1xf32>
    %37 = vector.broadcast %36 : vector<8x8x1xf32> to vector<8x8x8xf32>
    %38 = arith.subf %34, %37 : vector<8x8x8xf32>
    %39 = math.exp %38 : vector<8x8x8xf32>
    %cst_17 = arith.constant dense<0.000000e+00> : vector<8x8xf32>
    %40 = vector.multi_reduction <add>, %39, %cst_17 [2] : vector<8x8x8xf32> to vector<8x8xf32>
    %41 = vector.shape_cast %40 : vector<8x8xf32> to vector<8x8x1xf32>
    %42 = tpu.reciprocal %41 {approx = true} : vector<8x8x1xf32> -> vector<8x8x1xf32>
    %43 = vector.broadcast %42 : vector<8x8x1xf32> to vector<8x8x8xf32>
    %44 = arith.mulf %39, %43 : vector<8x8x8xf32>
    %45 = arith.truncf %44 : vector<8x8x8xf32> to vector<8x8x8xbf16>
    %cst_18 = arith.constant dense<0.000000e+00> : vector<8x8x8xf32>
    %46 = tpu.matmul %25, %45, %cst_18 {dimension_numbers = #tpu.dot_dimension_numbers<[2], [2], [1], [1], [0, 0, 0, 1, 1, 1], [0], [0]>} : vector<8x8x8xbf16>, vector<8x8x8xbf16>, vector<8x8x8xf32> -> vector<8x8x8xf32>
    %47 = vector.shape_cast %46 : vector<8x8x8xf32> to vector<64x8xf32>
    %48 = tpu.transpose %47, [1, 0] : vector<64x8xf32> -> vector<8x64xf32>
    %49 = vector.extract_strided_slice %15 {offsets = [8, 0], sizes = [8, 64], strides = [1, 1]} : vector<16x64xf32> to vector<8x64xf32>
    %50 = tpu.transpose %49, [1, 0] : vector<8x64xf32> -> vector<64x8xf32>
    %51 = vector.shape_cast %50 : vector<64x8xf32> to vector<8x8x8xf32>
    %52 = arith.truncf %51 : vector<8x8x8xf32> to vector<8x8x8xbf16>
    %53 = vector.extract_strided_slice %17 {offsets = [8, 0], sizes = [8, 64], strides = [1, 1]} : vector<16x64xf32> to vector<8x64xf32>
    %54 = tpu.transpose %53, [1, 0] : vector<8x64xf32> -> vector<64x8xf32>
    %55 = vector.shape_cast %54 : vector<64x8xf32> to vector<8x8x8xf32>
    %56 = arith.truncf %55 : vector<8x8x8xf32> to vector<8x8x8xbf16>
    %57 = vector.extract_strided_slice %13 {offsets = [8, 0], sizes = [8, 64], strides = [1, 1]} : vector<16x64xf32> to vector<8x64xf32>
    %58 = tpu.transpose %57, [1, 0] : vector<8x64xf32> -> vector<64x8xf32>
    %59 = vector.shape_cast %58 : vector<64x8xf32> to vector<8x8x8xf32>
    %60 = tpu.transpose %59, [0, 2, 1] : vector<8x8x8xf32> -> vector<8x8x8xf32>
    %61 = arith.truncf %60 : vector<8x8x8xf32> to vector<8x8x8xbf16>
    %cst_19 = arith.constant dense<0.000000e+00> : vector<8x8x8xf32>
    %62 = tpu.matmul %61, %52, %cst_19 {dimension_numbers = #tpu.dot_dimension_numbers<[2], [1], [1], [2], [0, 0, 0, 1, 1, 2], [0], [0]>} : vector<8x8x8xbf16>, vector<8x8x8xbf16>, vector<8x8x8xf32> -> vector<8x8x8xf32>
    %63 = vector.shape_cast %5 : vector<8x8xf32> to vector<1x8x8xf32>
    %64 = vector.broadcast %63 : vector<1x8x8xf32> to vector<8x8x8xf32>
    %65 = arith.addf %62, %64 : vector<8x8x8xf32>
    %cst_20 = arith.constant dense<0xFF800000> : vector<8x8xf32>
    %66 = vector.multi_reduction <maximumf>, %65, %cst_20 [2] : vector<8x8x8xf32> to vector<8x8xf32>
    %67 = vector.shape_cast %66 : vector<8x8xf32> to vector<8x8x1xf32>
    %68 = vector.broadcast %67 : vector<8x8x1xf32> to vector<8x8x8xf32>
    %69 = arith.subf %65, %68 : vector<8x8x8xf32>
    %70 = math.exp %69 : vector<8x8x8xf32>
    %cst_21 = arith.constant dense<0.000000e+00> : vector<8x8xf32>
    %71 = vector.multi_reduction <add>, %70, %cst_21 [2] : vector<8x8x8xf32> to vector<8x8xf32>
    %72 = vector.shape_cast %71 : vector<8x8xf32> to vector<8x8x1xf32>
    %73 = tpu.reciprocal %72 {approx = true} : vector<8x8x1xf32> -> vector<8x8x1xf32>
    %74 = vector.broadcast %73 : vector<8x8x1xf32> to vector<8x8x8xf32>
    %75 = arith.mulf %70, %74 : vector<8x8x8xf32>
    %76 = arith.truncf %75 : vector<8x8x8xf32> to vector<8x8x8xbf16>
    %cst_22 = arith.constant dense<0.000000e+00> : vector<8x8x8xf32>
    %77 = tpu.matmul %56, %76, %cst_22 {dimension_numbers = #tpu.dot_dimension_numbers<[2], [2], [1], [1], [0, 0, 0, 1, 1, 1], [0], [0]>} : vector<8x8x8xbf16>, vector<8x8x8xbf16>, vector<8x8x8xf32> -> vector<8x8x8xf32>
    %78 = vector.shape_cast %77 : vector<8x8x8xf32> to vector<64x8xf32>
    %79 = tpu.transpose %78, [1, 0] : vector<64x8xf32> -> vector<8x64xf32>
    %80 = tpu.concatenate %48, %79 in 0 : vector<8x64xf32>, vector<8x64xf32> -> vector<16x64xf32>
    %81 = arith.truncf %80 : vector<16x64xf32> to vector<16x64xbf16>
    %c0_23 = arith.constant 0 : index
    %c0_24 = arith.constant 0 : index
    %82 = vector.load %arg7[%c0_23, %c0_24] : memref<64x64xbf16, #tpu.memory_space<vmem>>, vector<64x64xbf16>
    %cst_25 = arith.constant dense<0.000000e+00> : vector<16x64xf32>
    %83 = tpu.matmul %81, %82, %cst_25 {dimension_numbers = #tpu.dot_dimension_numbers<[1], [0], [0], [1], [0, 0, 1, 1], [], []>} : vector<16x64xbf16>, vector<64x64xbf16>, vector<16x64xf32> -> vector<16x64xf32>
    %c0_26 = arith.constant 0 : index
    %c0_27 = arith.constant 0 : index
    %84 = vector.load %arg8[%c0_26, %c0_27] : memref<1x64xf32, #tpu.memory_space<vmem>>, vector<1x64xf32>
    %85 = vector.broadcast %84 : vector<1x64xf32> to vector<16x64xf32>
    %86 = arith.addf %83, %85 : vector<16x64xf32>
    %87 = arith.addf %86, %6 : vector<16x64xf32>
    %cst_28 = arith.constant dense<0.000000e+00> : vector<16xf32>
    %88 = vector.multi_reduction <add>, %87, %cst_28 [1] : vector<16x64xf32> to vector<16xf32>
    %89 = vector.shape_cast %88 : vector<16xf32> to vector<16x1xf32>
    %cst_29 = arith.constant 6.400000e+01 : f32
    %90 = vector.broadcast %cst_29 : f32 to vector<16x1xf32>
    %91 = arith.divf %89, %90 : vector<16x1xf32>
    %92 = vector.broadcast %91 : vector<16x1xf32> to vector<16x64xf32>
    %93 = arith.subf %87, %92 : vector<16x64xf32>
    %94 = arith.mulf %93, %93 : vector<16x64xf32>
    %cst_30 = arith.constant dense<0.000000e+00> : vector<16xf32>
    %95 = vector.multi_reduction <add>, %94, %cst_30 [1] : vector<16x64xf32> to vector<16xf32>
    %96 = vector.shape_cast %95 : vector<16xf32> to vector<16x1xf32>
    %cst_31 = arith.constant 6.400000e+01 : f32
    %97 = vector.broadcast %cst_31 : f32 to vector<16x1xf32>
    %98 = arith.divf %96, %97 : vector<16x1xf32>
    %99 = vector.broadcast %91 : vector<16x1xf32> to vector<16x64xf32>
    %100 = arith.subf %87, %99 : vector<16x64xf32>
    %cst_32 = arith.constant 9.99999974E-6 : f32
    %101 = vector.broadcast %cst_32 : f32 to vector<16x1xf32>
    %102 = arith.addf %98, %101 : vector<16x1xf32>
    %103 = math.rsqrt %102 : vector<16x1xf32>
    %104 = vector.broadcast %103 : vector<16x1xf32> to vector<16x64xf32>
    %105 = arith.mulf %100, %104 : vector<16x64xf32>
    %c0_33 = arith.constant 0 : index
    %c0_34 = arith.constant 0 : index
    %106 = vector.load %arg9[%c0_33, %c0_34] : memref<1x64xf32, #tpu.memory_space<vmem>>, vector<1x64xf32>
    %107 = vector.broadcast %106 : vector<1x64xf32> to vector<16x64xf32>
    %108 = arith.mulf %105, %107 : vector<16x64xf32>
    %c0_35 = arith.constant 0 : index
    %c0_36 = arith.constant 0 : index
    %109 = vector.load %arg10[%c0_35, %c0_36] : memref<1x64xf32, #tpu.memory_space<vmem>>, vector<1x64xf32>
    %110 = vector.broadcast %109 : vector<1x64xf32> to vector<16x64xf32>
    %111 = arith.addf %108, %110 : vector<16x64xf32>
    %112 = arith.truncf %111 : vector<16x64xf32> to vector<16x64xbf16>
    %c0_37 = arith.constant 0 : index
    %c0_38 = arith.constant 0 : index
    %113 = vector.load %arg11[%c0_37, %c0_38] : memref<64x64xbf16, #tpu.memory_space<vmem>>, vector<64x64xbf16>
    %cst_39 = arith.constant dense<0.000000e+00> : vector<16x64xf32>
    %114 = tpu.matmul %9, %113, %cst_39 {dimension_numbers = #tpu.dot_dimension_numbers<[1], [0], [0], [1], [0, 0, 1, 1], [], []>} : vector<16x64xbf16>, vector<64x64xbf16>, vector<16x64xf32> -> vector<16x64xf32>
    %c0_40 = arith.constant 0 : index
    %c0_41 = arith.constant 0 : index
    %115 = vector.load %arg12[%c0_40, %c0_41] : memref<64x64xbf16, #tpu.memory_space<vmem>>, vector<64x64xbf16>
    %cst_42 = arith.constant dense<0.000000e+00> : vector<16x64xf32>
    %116 = tpu.matmul %11, %115, %cst_42 {dimension_numbers = #tpu.dot_dimension_numbers<[1], [0], [0], [1], [0, 0, 1, 1], [], []>} : vector<16x64xbf16>, vector<64x64xbf16>, vector<16x64xf32> -> vector<16x64xf32>
    %c0_43 = arith.constant 0 : index
    %c0_44 = arith.constant 0 : index
    %117 = vector.load %arg13[%c0_43, %c0_44] : memref<64x64xbf16, #tpu.memory_space<vmem>>, vector<64x64xbf16>
    %cst_45 = arith.constant dense<0.000000e+00> : vector<16x64xf32>
    %118 = tpu.matmul %112, %117, %cst_45 {dimension_numbers = #tpu.dot_dimension_numbers<[1], [0], [0], [1], [0, 0, 1, 1], [], []>} : vector<16x64xbf16>, vector<64x64xbf16>, vector<16x64xf32> -> vector<16x64xf32>
    %119 = vector.extract_strided_slice %116 {offsets = [0, 0], sizes = [8, 64], strides = [1, 1]} : vector<16x64xf32> to vector<8x64xf32>
    %120 = tpu.transpose %119, [1, 0] : vector<8x64xf32> -> vector<64x8xf32>
    %121 = vector.shape_cast %120 : vector<64x8xf32> to vector<8x8x8xf32>
    %122 = arith.truncf %121 : vector<8x8x8xf32> to vector<8x8x8xbf16>
    %123 = vector.extract_strided_slice %118 {offsets = [0, 0], sizes = [8, 64], strides = [1, 1]} : vector<16x64xf32> to vector<8x64xf32>
    %124 = tpu.transpose %123, [1, 0] : vector<8x64xf32> -> vector<64x8xf32>
    %125 = vector.shape_cast %124 : vector<64x8xf32> to vector<8x8x8xf32>
    %126 = arith.truncf %125 : vector<8x8x8xf32> to vector<8x8x8xbf16>
    %127 = vector.extract_strided_slice %114 {offsets = [0, 0], sizes = [8, 64], strides = [1, 1]} : vector<16x64xf32> to vector<8x64xf32>
    %128 = tpu.transpose %127, [1, 0] : vector<8x64xf32> -> vector<64x8xf32>
    %129 = vector.shape_cast %128 : vector<64x8xf32> to vector<8x8x8xf32>
    %130 = tpu.transpose %129, [0, 2, 1] : vector<8x8x8xf32> -> vector<8x8x8xf32>
    %131 = arith.truncf %130 : vector<8x8x8xf32> to vector<8x8x8xbf16>
    %cst_46 = arith.constant dense<0.000000e+00> : vector<8x8x8xf32>
    %132 = tpu.matmul %131, %122, %cst_46 {dimension_numbers = #tpu.dot_dimension_numbers<[2], [1], [1], [2], [0, 0, 0, 1, 1, 2], [0], [0]>} : vector<8x8x8xbf16>, vector<8x8x8xbf16>, vector<8x8x8xf32> -> vector<8x8x8xf32>
    %cst_47 = arith.constant dense<0xFF800000> : vector<8x8xf32>
    %133 = vector.multi_reduction <maximumf>, %132, %cst_47 [2] : vector<8x8x8xf32> to vector<8x8xf32>
    %134 = vector.shape_cast %133 : vector<8x8xf32> to vector<8x8x1xf32>
    %135 = vector.broadcast %134 : vector<8x8x1xf32> to vector<8x8x8xf32>
    %136 = arith.subf %132, %135 : vector<8x8x8xf32>
    %137 = math.exp %136 : vector<8x8x8xf32>
    %cst_48 = arith.constant dense<0.000000e+00> : vector<8x8xf32>
    %138 = vector.multi_reduction <add>, %137, %cst_48 [2] : vector<8x8x8xf32> to vector<8x8xf32>
    %139 = vector.shape_cast %138 : vector<8x8xf32> to vector<8x8x1xf32>
    %140 = tpu.reciprocal %139 {approx = true} : vector<8x8x1xf32> -> vector<8x8x1xf32>
    %141 = vector.broadcast %140 : vector<8x8x1xf32> to vector<8x8x8xf32>
    %142 = arith.mulf %137, %141 : vector<8x8x8xf32>
    %143 = arith.truncf %142 : vector<8x8x8xf32> to vector<8x8x8xbf16>
    %cst_49 = arith.constant dense<0.000000e+00> : vector<8x8x8xf32>
    %144 = tpu.matmul %126, %143, %cst_49 {dimension_numbers = #tpu.dot_dimension_numbers<[2], [2], [1], [1], [0, 0, 0, 1, 1, 1], [0], [0]>} : vector<8x8x8xbf16>, vector<8x8x8xbf16>, vector<8x8x8xf32> -> vector<8x8x8xf32>
    %145 = vector.shape_cast %144 : vector<8x8x8xf32> to vector<64x8xf32>
    %146 = tpu.transpose %145, [1, 0] : vector<64x8xf32> -> vector<8x64xf32>
    %147 = vector.extract_strided_slice %116 {offsets = [8, 0], sizes = [8, 64], strides = [1, 1]} : vector<16x64xf32> to vector<8x64xf32>
    %148 = tpu.transpose %147, [1, 0] : vector<8x64xf32> -> vector<64x8xf32>
    %149 = vector.shape_cast %148 : vector<64x8xf32> to vector<8x8x8xf32>
    %150 = arith.truncf %149 : vector<8x8x8xf32> to vector<8x8x8xbf16>
    %151 = vector.extract_strided_slice %118 {offsets = [8, 0], sizes = [8, 64], strides = [1, 1]} : vector<16x64xf32> to vector<8x64xf32>
    %152 = tpu.transpose %151, [1, 0] : vector<8x64xf32> -> vector<64x8xf32>
    %153 = vector.shape_cast %152 : vector<64x8xf32> to vector<8x8x8xf32>
    %154 = arith.truncf %153 : vector<8x8x8xf32> to vector<8x8x8xbf16>
    %155 = vector.extract_strided_slice %114 {offsets = [8, 0], sizes = [8, 64], strides = [1, 1]} : vector<16x64xf32> to vector<8x64xf32>
    %156 = tpu.transpose %155, [1, 0] : vector<8x64xf32> -> vector<64x8xf32>
    %157 = vector.shape_cast %156 : vector<64x8xf32> to vector<8x8x8xf32>
    %158 = tpu.transpose %157, [0, 2, 1] : vector<8x8x8xf32> -> vector<8x8x8xf32>
    %159 = arith.truncf %158 : vector<8x8x8xf32> to vector<8x8x8xbf16>
    %cst_50 = arith.constant dense<0.000000e+00> : vector<8x8x8xf32>
    %160 = tpu.matmul %159, %150, %cst_50 {dimension_numbers = #tpu.dot_dimension_numbers<[2], [1], [1], [2], [0, 0, 0, 1, 1, 2], [0], [0]>} : vector<8x8x8xbf16>, vector<8x8x8xbf16>, vector<8x8x8xf32> -> vector<8x8x8xf32>
    %cst_51 = arith.constant dense<0xFF800000> : vector<8x8xf32>
    %161 = vector.multi_reduction <maximumf>, %160, %cst_51 [2] : vector<8x8x8xf32> to vector<8x8xf32>
    %162 = vector.shape_cast %161 : vector<8x8xf32> to vector<8x8x1xf32>
    %163 = vector.broadcast %162 : vector<8x8x1xf32> to vector<8x8x8xf32>
    %164 = arith.subf %160, %163 : vector<8x8x8xf32>
    %165 = math.exp %164 : vector<8x8x8xf32>
    %cst_52 = arith.constant dense<0.000000e+00> : vector<8x8xf32>
    %166 = vector.multi_reduction <add>, %165, %cst_52 [2] : vector<8x8x8xf32> to vector<8x8xf32>
    %167 = vector.shape_cast %166 : vector<8x8xf32> to vector<8x8x1xf32>
    %168 = tpu.reciprocal %167 {approx = true} : vector<8x8x1xf32> -> vector<8x8x1xf32>
    %169 = vector.broadcast %168 : vector<8x8x1xf32> to vector<8x8x8xf32>
    %170 = arith.mulf %165, %169 : vector<8x8x8xf32>
    %171 = arith.truncf %170 : vector<8x8x8xf32> to vector<8x8x8xbf16>
    %cst_53 = arith.constant dense<0.000000e+00> : vector<8x8x8xf32>
    %172 = tpu.matmul %154, %171, %cst_53 {dimension_numbers = #tpu.dot_dimension_numbers<[2], [2], [1], [1], [0, 0, 0, 1, 1, 1], [0], [0]>} : vector<8x8x8xbf16>, vector<8x8x8xbf16>, vector<8x8x8xf32> -> vector<8x8x8xf32>
    %173 = vector.shape_cast %172 : vector<8x8x8xf32> to vector<64x8xf32>
    %174 = tpu.transpose %173, [1, 0] : vector<64x8xf32> -> vector<8x64xf32>
    %175 = tpu.concatenate %146, %174 in 0 : vector<8x64xf32>, vector<8x64xf32> -> vector<16x64xf32>
    %176 = arith.truncf %175 : vector<16x64xf32> to vector<16x64xbf16>
    %c0_54 = arith.constant 0 : index
    %c0_55 = arith.constant 0 : index
    %177 = vector.load %arg14[%c0_54, %c0_55] : memref<64x64xbf16, #tpu.memory_space<vmem>>, vector<64x64xbf16>
    %cst_56 = arith.constant dense<0.000000e+00> : vector<16x64xf32>
    %178 = tpu.matmul %176, %177, %cst_56 {dimension_numbers = #tpu.dot_dimension_numbers<[1], [0], [0], [1], [0, 0, 1, 1], [], []>} : vector<16x64xbf16>, vector<64x64xbf16>, vector<16x64xf32> -> vector<16x64xf32>
    %c0_57 = arith.constant 0 : index
    %c0_58 = arith.constant 0 : index
    %179 = vector.load %arg15[%c0_57, %c0_58] : memref<1x64xf32, #tpu.memory_space<vmem>>, vector<1x64xf32>
    %180 = vector.broadcast %179 : vector<1x64xf32> to vector<16x64xf32>
    %181 = arith.addf %178, %180 : vector<16x64xf32>
    %182 = arith.addf %181, %111 : vector<16x64xf32>
    %cst_59 = arith.constant dense<0.000000e+00> : vector<16xf32>
    %183 = vector.multi_reduction <add>, %182, %cst_59 [1] : vector<16x64xf32> to vector<16xf32>
    %184 = vector.shape_cast %183 : vector<16xf32> to vector<16x1xf32>
    %cst_60 = arith.constant 6.400000e+01 : f32
    %185 = vector.broadcast %cst_60 : f32 to vector<16x1xf32>
    %186 = arith.divf %184, %185 : vector<16x1xf32>
    %187 = vector.broadcast %186 : vector<16x1xf32> to vector<16x64xf32>
    %188 = arith.subf %182, %187 : vector<16x64xf32>
    %189 = arith.mulf %188, %188 : vector<16x64xf32>
    %cst_61 = arith.constant dense<0.000000e+00> : vector<16xf32>
    %190 = vector.multi_reduction <add>, %189, %cst_61 [1] : vector<16x64xf32> to vector<16xf32>
    %191 = vector.shape_cast %190 : vector<16xf32> to vector<16x1xf32>
    %cst_62 = arith.constant 6.400000e+01 : f32
    %192 = vector.broadcast %cst_62 : f32 to vector<16x1xf32>
    %193 = arith.divf %191, %192 : vector<16x1xf32>
    %194 = vector.broadcast %186 : vector<16x1xf32> to vector<16x64xf32>
    %195 = arith.subf %182, %194 : vector<16x64xf32>
    %cst_63 = arith.constant 9.99999974E-6 : f32
    %196 = vector.broadcast %cst_63 : f32 to vector<16x1xf32>
    %197 = arith.addf %193, %196 : vector<16x1xf32>
    %198 = math.rsqrt %197 : vector<16x1xf32>
    %199 = vector.broadcast %198 : vector<16x1xf32> to vector<16x64xf32>
    %200 = arith.mulf %195, %199 : vector<16x64xf32>
    %c0_64 = arith.constant 0 : index
    %c0_65 = arith.constant 0 : index
    %201 = vector.load %arg16[%c0_64, %c0_65] : memref<1x64xf32, #tpu.memory_space<vmem>>, vector<1x64xf32>
    %202 = vector.broadcast %201 : vector<1x64xf32> to vector<16x64xf32>
    %203 = arith.mulf %200, %202 : vector<16x64xf32>
    %c0_66 = arith.constant 0 : index
    %c0_67 = arith.constant 0 : index
    %204 = vector.load %arg17[%c0_66, %c0_67] : memref<1x64xf32, #tpu.memory_space<vmem>>, vector<1x64xf32>
    %205 = vector.broadcast %204 : vector<1x64xf32> to vector<16x64xf32>
    %206 = arith.addf %203, %205 : vector<16x64xf32>
    %207 = arith.truncf %206 : vector<16x64xf32> to vector<16x64xbf16>
    %c0_68 = arith.constant 0 : index
    %c0_69 = arith.constant 0 : index
    %208 = vector.load %arg18[%c0_68, %c0_69] : memref<64x256xbf16, #tpu.memory_space<vmem>>, vector<64x256xbf16>
    %cst_70 = arith.constant dense<0.000000e+00> : vector<16x256xf32>
    %209 = tpu.matmul %207, %208, %cst_70 {dimension_numbers = #tpu.dot_dimension_numbers<[1], [0], [0], [1], [0, 0, 1, 1], [], []>} : vector<16x64xbf16>, vector<64x256xbf16>, vector<16x256xf32> -> vector<16x256xf32>
    %c0_71 = arith.constant 0 : index
    %c0_72 = arith.constant 0 : index
    %210 = vector.load %arg19[%c0_71, %c0_72] : memref<1x256xf32, #tpu.memory_space<vmem>>, vector<1x256xf32>
    %211 = vector.broadcast %210 : vector<1x256xf32> to vector<16x256xf32>
    %212 = arith.addf %209, %211 : vector<16x256xf32>
    %cst_73 = arith.constant 0.000000e+00 : f32
    %213 = vector.broadcast %cst_73 : f32 to vector<16x256xf32>
    %214 = arith.maximumf %212, %213 : vector<16x256xf32>
    %215 = arith.truncf %214 : vector<16x256xf32> to vector<16x256xbf16>
    %c0_74 = arith.constant 0 : index
    %c0_75 = arith.constant 0 : index
    %216 = vector.load %arg20[%c0_74, %c0_75] : memref<256x64xbf16, #tpu.memory_space<vmem>>, vector<256x64xbf16>
    %cst_76 = arith.constant dense<0.000000e+00> : vector<16x64xf32>
    %217 = tpu.matmul %215, %216, %cst_76 {dimension_numbers = #tpu.dot_dimension_numbers<[1], [0], [0], [1], [0, 0, 1, 1], [], []>} : vector<16x256xbf16>, vector<256x64xbf16>, vector<16x64xf32> -> vector<16x64xf32>
    %c0_77 = arith.constant 0 : index
    %c0_78 = arith.constant 0 : index
    %218 = vector.load %arg21[%c0_77, %c0_78] : memref<1x64xf32, #tpu.memory_space<vmem>>, vector<1x64xf32>
    %219 = vector.broadcast %218 : vector<1x64xf32> to vector<16x64xf32>
    %220 = arith.addf %217, %219 : vector<16x64xf32>
    %221 = arith.addf %220, %206 : vector<16x64xf32>
    %cst_79 = arith.constant dense<0.000000e+00> : vector<16xf32>
    %222 = vector.multi_reduction <add>, %221, %cst_79 [1] : vector<16x64xf32> to vector<16xf32>
    %223 = vector.shape_cast %222 : vector<16xf32> to vector<16x1xf32>
    %cst_80 = arith.constant 6.400000e+01 : f32
    %224 = vector.broadcast %cst_80 : f32 to vector<16x1xf32>
    %225 = arith.divf %223, %224 : vector<16x1xf32>
    %226 = vector.broadcast %225 : vector<16x1xf32> to vector<16x64xf32>
    %227 = arith.subf %221, %226 : vector<16x64xf32>
    %228 = arith.mulf %227, %227 : vector<16x64xf32>
    %cst_81 = arith.constant dense<0.000000e+00> : vector<16xf32>
    %229 = vector.multi_reduction <add>, %228, %cst_81 [1] : vector<16x64xf32> to vector<16xf32>
    %230 = vector.shape_cast %229 : vector<16xf32> to vector<16x1xf32>
    %cst_82 = arith.constant 6.400000e+01 : f32
    %231 = vector.broadcast %cst_82 : f32 to vector<16x1xf32>
    %232 = arith.divf %230, %231 : vector<16x1xf32>
    %233 = vector.broadcast %225 : vector<16x1xf32> to vector<16x64xf32>
    %234 = arith.subf %221, %233 : vector<16x64xf32>
    %cst_83 = arith.constant 9.99999974E-6 : f32
    %235 = vector.broadcast %cst_83 : f32 to vector<16x1xf32>
    %236 = arith.addf %232, %235 : vector<16x1xf32>
    %237 = math.rsqrt %236 : vector<16x1xf32>
    %238 = vector.broadcast %237 : vector<16x1xf32> to vector<16x64xf32>
    %239 = arith.mulf %234, %238 : vector<16x64xf32>
    %c0_84 = arith.constant 0 : index
    %c0_85 = arith.constant 0 : index
    %240 = vector.load %arg22[%c0_84, %c0_85] : memref<1x64xf32, #tpu.memory_space<vmem>>, vector<1x64xf32>
    %241 = vector.broadcast %240 : vector<1x64xf32> to vector<16x64xf32>
    %242 = arith.mulf %239, %241 : vector<16x64xf32>
    %c0_86 = arith.constant 0 : index
    %c0_87 = arith.constant 0 : index
    %243 = vector.load %arg23[%c0_86, %c0_87] : memref<1x64xf32, #tpu.memory_space<vmem>>, vector<1x64xf32>
    %244 = vector.broadcast %243 : vector<1x64xf32> to vector<16x64xf32>
    %245 = arith.addf %242, %244 : vector<16x64xf32>
    %c0_88 = arith.constant 0 : index
    %c0_89 = arith.constant 0 : index
    %246 = vector.load %arg24[%c0_88, %c0_89] : memref<16x64xf32, #tpu.memory_space<vmem>>, vector<16x64xf32>
    tpu.vector_store %arg24[%c0_88, %c0_89], %245 {strides = array<i32>} : memref<16x64xf32, #tpu.memory_space<vmem>>, vector<16x64xf32>,
    return
  }
  func.func @transform_0(%arg0: i32) -> (i32, i32) {
    %c0_i32 = arith.constant 0 : i32
    %c0_i32_0 = arith.constant 0 : i32
    return %arg0, %c0_i32 : i32, i32
  }
  func.func @transform_1(%arg0: i32) -> (i32, i32) {
    %c0_i32 = arith.constant 0 : i32
    %c0_i32_0 = arith.constant 0 : i32
    return %arg0, %c0_i32 : i32, i32
  }
  func.func @transform_2(%arg0: i32) -> (i32, i32) {
    %c0_i32 = arith.constant 0 : i32
    %c0_i32_0 = arith.constant 0 : i32
    return %arg0, %c0_i32 : i32, i32
  }
  func.func @transform_3(%arg0: i32) -> (i32, i32) {
    %c0_i32 = arith.constant 0 : i32
    %c0_i32_0 = arith.constant 0 : i32
    %c0_i32_1 = arith.constant 0 : i32
    return %c0_i32, %c0_i32_0 : i32, i32
  }
  func.func @transform_4(%arg0: i32) -> (i32, i32) {
    %c0_i32 = arith.constant 0 : i32
    %c0_i32_0 = arith.constant 0 : i32
    %c0_i32_1 = arith.constant 0 : i32
    return %c0_i32, %c0_i32_0 : i32, i32
  }
  func.func @transform_5(%arg0: i32) -> (i32, i32) {
    %c0_i32 = arith.constant 0 : i32
    %c0_i32_0 = arith.constant 0 : i32
    %c0_i32_1 = arith.constant 0 : i32
    return %c0_i32, %c0_i32_0 : i32, i32
  }
  func.func @transform_6(%arg0: i32) -> (i32, i32) {
    %c0_i32 = arith.constant 0 : i32
    %c0_i32_0 = arith.constant 0 : i32
    %c0_i32_1 = arith.constant 0 : i32
    return %c0_i32, %c0_i32_0 : i32, i32
  }
  func.func @transform_7(%arg0: i32) -> (i32, i32) {
    %c0_i32 = arith.constant 0 : i32
    %c0_i32_0 = arith.constant 0 : i32
    %c0_i32_1 = arith.constant 0 : i32
    return %c0_i32, %c0_i32_0 : i32, i32
  }
  func.func @transform_8(%arg0: i32) -> (i32, i32) {
    %c0_i32 = arith.constant 0 : i32
    %c0_i32_0 = arith.constant 0 : i32
    %c0_i32_1 = arith.constant 0 : i32
    return %c0_i32, %c0_i32_0 : i32, i32
  }
  func.func @transform_9(%arg0: i32) -> (i32, i32) {
    %c0_i32 = arith.constant 0 : i32
    %c0_i32_0 = arith.constant 0 : i32
    %c0_i32_1 = arith.constant 0 : i32
    return %c0_i32, %c0_i32_0 : i32, i32
  }
  func.func @transform_10(%arg0: i32) -> (i32, i32) {
    %c0_i32 = arith.constant 0 : i32
    %c0_i32_0 = arith.constant 0 : i32
    %c0_i32_1 = arith.constant 0 : i32
    return %c0_i32, %c0_i32_0 : i32, i32
  }
  func.func @transform_11(%arg0: i32) -> (i32, i32) {
    %c0_i32 = arith.constant 0 : i32
    %c0_i32_0 = arith.constant 0 : i32
    %c0_i32_1 = arith.constant 0 : i32
    return %c0_i32, %c0_i32_0 : i32, i32
  }
  func.func @transform_12(%arg0: i32) -> (i32, i32) {
    %c0_i32 = arith.constant 0 : i32
    %c0_i32_0 = arith.constant 0 : i32
    %c0_i32_1 = arith.constant 0 : i32
    return %c0_i32, %c0_i32_0 : i32, i32
  }
  func.func @transform_13(%arg0: i32) -> (i32, i32) {
    %c0_i32 = arith.constant 0 : i32
    %c0_i32_0 = arith.constant 0 : i32
    %c0_i32_1 = arith.constant 0 : i32
    return %c0_i32, %c0_i32_0 : i32, i32
  }
  func.func @transform_14(%arg0: i32) -> (i32, i32) {
    %c0_i32 = arith.constant 0 : i32
    %c0_i32_0 = arith.constant 0 : i32
    %c0_i32_1 = arith.constant 0 : i32
    return %c0_i32, %c0_i32_0 : i32, i32
  }
  func.func @transform_15(%arg0: i32) -> (i32, i32) {
    %c0_i32 = arith.constant 0 : i32
    %c0_i32_0 = arith.constant 0 : i32
    %c0_i32_1 = arith.constant 0 : i32
    return %c0_i32, %c0_i32_0 : i32, i32
  }
  func.func @transform_16(%arg0: i32) -> (i32, i32) {
    %c0_i32 = arith.constant 0 : i32
    %c0_i32_0 = arith.constant 0 : i32
    %c0_i32_1 = arith.constant 0 : i32
    return %c0_i32, %c0_i32_0 : i32, i32
  }
  func.func @transform_17(%arg0: i32) -> (i32, i32) {
    %c0_i32 = arith.constant 0 : i32
    %c0_i32_0 = arith.constant 0 : i32
    %c0_i32_1 = arith.constant 0 : i32
    return %c0_i32, %c0_i32_0 : i32, i32
  }
  func.func @transform_18(%arg0: i32) -> (i32, i32) {
    %c0_i32 = arith.constant 0 : i32
    %c0_i32_0 = arith.constant 0 : i32
    %c0_i32_1 = arith.constant 0 : i32
    return %c0_i32, %c0_i32_0 : i32, i32
  }
  func.func @transform_19(%arg0: i32) -> (i32, i32) {
    %c0_i32 = arith.constant 0 : i32
    %c0_i32_0 = arith.constant 0 : i32
    %c0_i32_1 = arith.constant 0 : i32
    return %c0_i32, %c0_i32_0 : i32, i32
  }
  func.func @transform_20(%arg0: i32) -> (i32, i32) {
    %c0_i32 = arith.constant 0 : i32
    %c0_i32_0 = arith.constant 0 : i32
    %c0_i32_1 = arith.constant 0 : i32
    return %c0_i32, %c0_i32_0 : i32, i32
  }
  func.func @transform_21(%arg0: i32) -> (i32, i32) {
    %c0_i32 = arith.constant 0 : i32
    %c0_i32_0 = arith.constant 0 : i32
    %c0_i32_1 = arith.constant 0 : i32
    return %c0_i32, %c0_i32_0 : i32, i32
  }
  func.func @transform_22(%arg0: i32) -> (i32, i32) {
    %c0_i32 = arith.constant 0 : i32
    %c0_i32_0 = arith.constant 0 : i32
    %c0_i32_1 = arith.constant 0 : i32
    return %c0_i32, %c0_i32_0 : i32, i32
  }
  func.func @transform_23(%arg0: i32) -> (i32, i32) {
    %c0_i32 = arith.constant 0 : i32
    %c0_i32_0 = arith.constant 0 : i32
    return %arg0, %c0_i32 : i32, i32
  }
}

</mosaic_0001>

<bundles_post_ra>
// kernel: decoder_block_forward.1
= control target key start
LH: loop header
LB: loop body
LE: loop exit
PB: predicated region body
PF: predicated region fallthrough
CT: control target
= control target key end

     0   :  { %s8591_s0 = inlined_call_operand.hbm [shape: f32[16,64], index: 0, kind: input, shape index: {}]   ;;  %s8592_s1 = inlined_call_operand.hbm [shape: f32[16,64], index: 1, kind: input, shape index: {}]   ;;  %s8593_s2 = inlined_call_operand.hbm [shape: f32[16,64], index: 2, kind: input, shape index: {}]   ;;  %s8594_s3 = inlined_call_operand.vmem [shape: bf16[64,64], index: 3, kind: input, shape index: {}]   ;;  %s8595_s4 = inlined_call_operand.vmem [shape: bf16[64,64], index: 4, kind: input, shape index: {}]   ;;  %s8596_s5 = inlined_call_operand.vmem [shape: bf16[64,64], index: 5, kind: input, shape index: {}]   ;;  %s8597_s6 = inlined_call_operand.vmem [shape: bf16[64,64], index: 6, kind: input, shape index: {}]   ;;  %s8598_s7 = inlined_call_operand.vmem [shape: f32[1,64], index: 7, kind: input, shape index: {}]   ;;  %s8599_s8 = inlined_call_operand.vmem [shape: f32[1,64], index: 8, kind: input, shape index: {}]   ;;  %s8600_s9 = inlined_call_operand.vmem [shape: f32[1,64], index: 9, kind: input, shape index: {}]   ;;  %s8601_s10 = inlined_call_operand.vmem [shape: bf16[64,64], index: 10, kind: input, shape index: {}]   ;;  %s8602_s11 = inlined_call_operand.hbm [shape: bf16[64,64], index: 11, kind: input, shape index: {}]   ;;  %s8603_s12 = inlined_call_operand.hbm [shape: bf16[64,64], index: 12, kind: input, shape index: {}]   ;;  %s8604_s13 = inlined_call_operand.hbm [shape: bf16[64,64], index: 13, kind: input, shape index: {}]   ;;  %s8605_s14 = inlined_call_operand.hbm [shape: f32[1,64], index: 14, kind: input, shape index: {}]   ;;  %s8606_s15 = inlined_call_operand.vmem [shape: f32[1,64], index: 15, kind: input, shape index: {}]   ;;  %s8607_s16 = inlined_call_operand.vmem [shape: f32[1,64], index: 16, kind: input, shape index: {}]   ;;  %s8608_s17 = inlined_call_operand.vmem [shape: bf16[64,256], index: 17, kind: input, shape index: {}]   ;;  %s8609_s18 = inlined_call_operand.vmem [shape: f32[1,256], index: 18, kind: input, shape index: {}]   ;;  %s8610_s19 = inlined_call_operand.vmem [shape: bf16[256,64], index: 19, kind: input, shape index: {}]   ;;  %s8611_s20 = inlined_call_operand.vmem [shape: f32[1,64], index: 20, kind: input, shape index: {}]   ;;  %s8612_s21 = inlined_call_operand.vmem [shape: f32[1,64], index: 21, kind: input, shape index: {}]   ;;  %s8613_s22 = inlined_call_operand.vmem [shape: f32[1,64], index: 22, kind: input, shape index: {}]   ;;  %s8614_s23 = inlined_call_operand.hbm [shape: f32[16,64], index: 23, kind: output, shape index: {}]  }
   0x1   :  { %8629 = sst [smem:[#allocation20_spill]] %s8591_s0 }
   0x2   :  { %8630 = sst [smem:[#allocation21_spill]] %s8592_s1 }
   0x3   :  { %8631 = sst [smem:[#allocation22_spill]] %s8593_s2 }
   0x4   :  { %8632 = sst [smem:[#allocation23_spill]] %s8594_s3 }
   0x5   :  { %8633 = sst [smem:[#allocation24_spill]] %s8595_s4 }
   0x6   :  { %8634 = sst [smem:[#allocation25_spill]] %s8596_s5 }
   0x7   :  { %8635 = sst [smem:[#allocation26_spill]] %s8597_s6 }
   0x8   :  { %8636 = sst [smem:[#allocation27_spill]] %s8598_s7 }
   0x9   :  { %8637 = sst [smem:[#allocation28_spill]] %s8614_s23 }
   0xa   :  { %28 = vsyncpa [#allocation3], 0 }
   0xb   :  { %29 = vsyncpa [#allocation6], 0 }
   0xc   :  { %30 = vsyncpa [#allocation9], 0 }
   0xd   :  { %31 = vsyncpa [#allocation12], 0 }
   0xe   :  { %32 = vsyncpa [#allocation4], 0  ;;  %s7554_s4 = smov [#allocation5]   ;;  %s7555_s24 = smov [#allocation8]  }
   0xf   :  { %s50_s30 = sshll.u32 %s7554_s4, 4  ;;  %s90_s25 = sshll.u32 %s7555_s24, 4  ;;  %s51_s30 = int_to_ptr.vmem [resolvable:$true] %s50_s30  ;;  %s7690_s25 = int_to_ptr.vmem [resolvable:$true] %s90_s25 }
  0x10   :  { %s8638_s26 = sld [smem:[#allocation21_spill]] }
  0x16   :  { %s7368_s2 = scalar_lea.hbm %s8638_s26, 256 }
  0x17   :  { %p7369_p0 = scmp.ne.s32.totalorder %s8638_s26, %s7368_s2  ;;  %p7372_p1 = scmp.lt.u32.totalorder %s7368_s2, %s8638_s26 }
  0x19   :  { %p7374_p2 = pnand %p7372_p1, %p7369_p0 }
  0x1b   :  { %7377 = shalt.err (!%p7374_p2)
}
  0x1c   :  { %s7378_s29 = scalar_lea.vmem %s51_s30, 256  ;;  %p7383_p4 = scmp.lt.s32.totalorder %s51_s30, %s51_s30 }
  0x1d   :  { %p7379_p3 = scmp.ne.s32.totalorder %s51_s30, %s7378_s29  ;;  %p7384_p5 = scmp.lt.s32.totalorder %s7378_s29, %s7378_s29 }
  0x1f   :  { %p7385_p6 = por %p7384_p5, %p7383_p4 }
  0x21   :  { %p7386_p7 = pnand %p7385_p6, %p7379_p3 }
  0x23   :  { %7389 = shalt.err (!%p7386_p7)
}
  0x24   :  { %s8622_s3 = smov 128   ;;  %s8624_s0 = smov 8  }
  0x25   :  { %56 = dma.hbm_to_vmem [thread:$0]  %s8638_s26, 256, %s51_s30, [#allocation6], %s8622_s3, %s8622_s3, %s8624_s0  }
  0x26   :  { %s7390_s2 = scalar_lea.hbm %s8602_s11, 512 }
  0x27   :  { %p7391_p8 = scmp.ne.s32.totalorder %s8602_s11, %s7390_s2  ;;  %p7394_p9 = scmp.lt.u32.totalorder %s7390_s2, %s8602_s11 }
  0x29   :  { %p7396_p10 = pnand %p7394_p9, %p7391_p8 }
  0x2b   :  { %7399 = shalt.err (!%p7396_p10)
}
  0x2c   :  { %s7400_s29 = scalar_lea.vmem %s7690_s25, 512  ;;  %p7405_p12 = scmp.lt.s32.totalorder %s7690_s25, %s7690_s25 }
  0x2d   :  { %p7401_p11 = scmp.ne.s32.totalorder %s7690_s25, %s7400_s29  ;;  %p7406_p13 = scmp.lt.s32.totalorder %s7400_s29, %s7400_s29 }
  0x2f   :  { %p7407_p0 = por %p7406_p13, %p7405_p12 }
  0x31   :  { %p7408_p1 = pnand %p7407_p0, %p7401_p11 }
  0x33   :  { %7411 = shalt.err (!%p7408_p1)
}
  0x34   :  { %s8627_s30 = smov 64   ;;  %s8628_s26 = smov 4  }
  0x35   :  { %96 = dma.hbm_to_vmem [thread:$0]  %s8602_s11, 512, %s7690_s25, [#allocation9], %s8627_s30, %s8627_s30, %s8628_s26  }
  0x36   :  { %s7560_s5 = smov [#allocation11]   ;;  %s7561_s2 = smov [#allocation2]  }
  0x37   :  { %s114_s1 = sshll.u32 %s7560_s5, 4  ;;  %s38_s6 = sshll.u32 %s7561_s2, 4  ;;  %s115_s1 = int_to_ptr.vmem [resolvable:$true] %s114_s1  ;;  %s7727_s6 = int_to_ptr.vmem [resolvable:$true] %s38_s6 }
  0x38   :  { %s7412_s28 = scalar_lea.hbm %s8604_s13, 512 }
  0x39   :  { %p7413_p2 = scmp.ne.s32.totalorder %s8604_s13, %s7412_s28  ;;  %p7416_p3 = scmp.lt.u32.totalorder %s7412_s28, %s8604_s13 }
  0x3b   :  { %p7418_p4 = pnand %p7416_p3, %p7413_p2 }
  0x3d   :  { %7421 = shalt.err (!%p7418_p4)
}
  0x3e   :  { %s7422_s11 = scalar_lea.vmem %s115_s1, 512  ;;  %p7427_p6 = scmp.lt.s32.totalorder %s115_s1, %s115_s1 }
  0x3f   :  { %p7423_p5 = scmp.ne.s32.totalorder %s115_s1, %s7422_s11  ;;  %p7428_p7 = scmp.lt.s32.totalorder %s7422_s11, %s7422_s11 }
  0x41   :  { %p7429_p8 = por %p7428_p7, %p7427_p6 }
  0x43   :  { %p7430_p9 = pnand %p7429_p8, %p7423_p5 }
  0x45   :  { %7433 = shalt.err (!%p7430_p9)
}
  0x46   :  { %120 = dma.hbm_to_vmem [thread:$0]  %s8604_s13, 512, %s115_s1, [#allocation12], %s8627_s30, %s8627_s30, %s8628_s26  }
  0x47   :  { %s8639_s23 = sld [smem:[#allocation20_spill]] }
  0x4d   :  { %s7434_s0 = scalar_lea.hbm %s8639_s23, 256 }
  0x4e   :  { %p7435_p10 = scmp.ne.s32.totalorder %s8639_s23, %s7434_s0  ;;  %p7438_p11 = scmp.lt.u32.totalorder %s7434_s0, %s8639_s23 }
  0x50   :  { %p7440_p12 = pnand %p7438_p11, %p7435_p10 }
  0x52   :  { %7443 = shalt.err (!%p7440_p12)
}
  0x53   :  { %s7444_s28 = scalar_lea.vmem %s7727_s6, 256  ;;  %p7449_p0 = scmp.lt.s32.totalorder %s7727_s6, %s7727_s6 }
  0x54   :  { %p7445_p13 = scmp.ne.s32.totalorder %s7727_s6, %s7444_s28  ;;  %p7450_p1 = scmp.lt.s32.totalorder %s7444_s28, %s7444_s28 }
  0x56   :  { %p7451_p2 = por %p7450_p1, %p7449_p0 }
  0x58   :  { %p7452_p3 = pnand %p7451_p2, %p7445_p13 }
  0x5a   :  { %7455 = shalt.err (!%p7452_p3)
}
  0x5b   :  { %s8640_s13 = smov 8   ;;  %s8641_s1 = smov 128  }
  0x5c   :  { %44 = dma.hbm_to_vmem [thread:$0]  %s8639_s23, 256, %s7727_s6, [#allocation3], %s8641_s1, %s8641_s1, %s8640_s13  }
  0x5d   :  { %s7562_s25 = smov [#allocation7]   ;;  %s7563_s3 = smov [#allocation10]  }
  0x5e   :  { %s62_s4 = sshll.u32 %s7562_s25, 4  ;;  %s102_s24 = sshll.u32 %s7563_s3, 4  ;;  %s63_s4 = int_to_ptr.vmem [resolvable:$true] %s62_s4  ;;  %s7764_s24 = int_to_ptr.vmem [resolvable:$true] %s102_s24 }
  0x5f   :  { %s8642_s2 = sld [smem:[#allocation22_spill]] }
  0x65   :  { %s7456_s27 = scalar_lea.hbm %s8642_s2, 256 }
  0x66   :  { %p7457_p4 = scmp.ne.s32.totalorder %s8642_s2, %s7456_s27  ;;  %p7460_p5 = scmp.lt.u32.totalorder %s7456_s27, %s8642_s2 }
  0x68   :  { %p7462_p6 = pnand %p7460_p5, %p7457_p4 }
  0x6a   :  { %7465 = shalt.err (!%p7462_p6)
}
  0x6b   :  { %s7466_s6 = scalar_lea.vmem %s63_s4, 256  ;;  %p7471_p8 = scmp.lt.s32.totalorder %s63_s4, %s63_s4 }
  0x6c   :  { %p7467_p7 = scmp.ne.s32.totalorder %s63_s4, %s7466_s6  ;;  %p7472_p9 = scmp.lt.s32.totalorder %s7466_s6, %s7466_s6 }
  0x6e   :  { %p7473_p10 = por %p7472_p9, %p7471_p8 }
  0x70   :  { %p7474_p11 = pnand %p7473_p10, %p7467_p7 }
  0x72   :  { %7477 = shalt.err (!%p7474_p11)
}
  0x73   :  { %68 = dma.hbm_to_vmem [thread:$0]  %s8642_s2, 256, %s63_s4, [#allocation6], %s8641_s1, %s8641_s1, %s8640_s13  }
  0x74   :  { %s7478_s30 = scalar_lea.hbm %s8603_s12, 512 }
  0x75   :  { %p7479_p12 = scmp.ne.s32.totalorder %s8603_s12, %s7478_s30  ;;  %p7482_p13 = scmp.lt.u32.totalorder %s7478_s30, %s8603_s12 }
  0x77   :  { %p7484_p0 = pnand %p7482_p13, %p7479_p12 }
  0x79   :  { %7487 = shalt.err (!%p7484_p0)
}
  0x7a   :  { %s7488_s27 = scalar_lea.vmem %s7764_s24, 512  ;;  %p7493_p2 = scmp.lt.s32.totalorder %s7764_s24, %s7764_s24 }
  0x7b   :  { %p7489_p1 = scmp.ne.s32.totalorder %s7764_s24, %s7488_s27  ;;  %p7494_p3 = scmp.lt.s32.totalorder %s7488_s27, %s7488_s27 }
  0x7d   :  { %p7495_p4 = por %p7494_p3, %p7493_p2 }
  0x7f   :  { %p7496_p5 = pnand %p7495_p4, %p7489_p1 }
  0x81   :  { %7499 = shalt.err (!%p7496_p5)
}
  0x82   :  { %s8643_s4 = smov 4   ;;  %s8644_s2 = smov 64  }
  0x83   :  { %108 = dma.hbm_to_vmem [thread:$0]  %s8603_s12, 512, %s7764_s24, [#allocation9], %s8644_s2, %s8644_s2, %s8643_s4  }
  0x84   :  { %s7564_s6 = smov [#allocation13]   ;;  %s7500_s25 = scalar_lea.hbm %s8605_s14, 16 }
  0x85   :  { %s127_s23 = sshll.u32 %s7564_s6, 4  ;;  %p7501_p6 = scmp.ne.s32.totalorder %s8605_s14, %s7500_s25  ;;  %s128_s23 = int_to_ptr.vmem [resolvable:$true] %s127_s23 }
  0x86   :  { %p7504_p7 = scmp.lt.u32.totalorder %s7500_s25, %s8605_s14 }
  0x88   :  { %p7506_p8 = pnand %p7504_p7, %p7501_p6 }
  0x8a   :  { %7509 = shalt.err (!%p7506_p8)
}
  0x8b   :  { %s7510_s5 = scalar_lea.vmem %s128_s23, 16  ;;  %s7514_s12 = scalar_lea.vmem %s128_s23, 32 }
  0x8c   :  { %p7511_p9 = scmp.ne.s32.totalorder %s128_s23, %s7510_s5  ;;  %p7515_p10 = scmp.lt.s32.totalorder %s128_s23, %s128_s23 }
  0x8d   :  { %p7516_p11 = scmp.lt.s32.totalorder %s7514_s12, %s7510_s5 }
  0x8f   :  { %p7517_p12 = por %p7516_p11, %p7515_p10 }
  0x91   :  { %p7518_p13 = pnand %p7517_p12, %p7511_p9 }
  0x93   :  { %7521 = shalt.err (!%p7518_p13)
}
  0x94   :  { %130 = dma.hbm_to_vmem [thread:$0]  %s8605_s14, 16, %s128_s23, [#allocation12]  }
  0x95   :  { %7544 = dma.done.wait [#allocation3], 256  }
  0x96   :  { %7545 = vsyncadd [#allocation3], 4294967040 }
  0x97   :  { %7546 = dma.done.wait [#allocation6], 512  }
  0x98   :  { %7547 = vsyncadd [#allocation6], 4294966784 }
  0x99   :  { %7548 = dma.done.wait [#allocation9], 1024  }
  0x9a   :  { %7549 = vsyncadd [#allocation9], 4294966272 }
  0x9b   :  { %7550 = dma.done.wait [#allocation12], 528  }
  0x9c   :  { %7551 = vsyncadd [#allocation12], 4294966768  ;;  %v7565_v0 = vmov 0.0   ;;  %vm7566_vm0 = vmmov 0   ;;  %s8645_s2 = sld [smem:[#allocation23_spill]]  ;;  %s8646_s6 = sld [smem:[#allocation25_spill]] }
  0x9d   :  { %6544 = vmatprep.subr.bf16.mxu1 %v7565_v0  ;;  %6568 = vmatprep.subr.bf16.mxu0 %v7565_v0  ;;  %v175_v8 = vld [vmem:[#allocation2] sm:$0xff]  ;;  %v176_v9 = vld [vmem:[#allocation2 + $0x8] sm:$0xff]  ;;  %vm216_vm1 = vcmask 523264   ;;  %s8647_s7 = sld [smem:[#allocation24_spill]]  ;;  %vm787_vm2 = vcmask 1043456   ;;  %vm783_vm3 = vcmask 64512  }
  0x9e   :  { %6552 = vmatprep.mubr.msk.bf16.mxu1 %vm7566_vm0, %v7565_v0  ;;  %6576 = vmatprep.mubr.msk.bf16.mxu0 %vm7566_vm0, %v7565_v0  ;;  %v177_v12 = vpack.c.bf16 %v176_v9, %v175_v8  ;;  %s8648_s26 = sld [smem:[#allocation26_spill]]  ;;  %s8649_s25 = sld [smem:[#allocation27_spill]] }
  0xa2   :  { %v7166_v1 = vld [vmem:[%s8645_s2] sm:$0xff]   ;;  %v7168_v3 = vld [vmem:[%s8645_s2 + $0x8] sm:$0xff]   ;;  %v7170_v5 = vld [vmem:[%s8645_s2 + $0x10] sm:$0xff]  }
  0xa3   :  { %v7167_v2 = vld [vmem:[%s8646_s6] sm:$0xff]   ;;  %6545 = vmatpush3.bf16.msra.mxu1 %v7166_v1  ;;  %v7169_v4 = vld [vmem:[%s8646_s6 + $0x8] sm:$0xff]   ;;  %v7171_v6 = vld [vmem:[%s8646_s6 + $0x10] sm:$0xff]  }
  0xa4   :  { %6569 = vmatpush3.bf16.msra.mxu0 %v7167_v2  ;;  %6546 = vmatprep.subr.bf16.mxu1 %v7565_v0  ;;  %v7172_v7 = vld [vmem:[%s8645_s2 + $0x18] sm:$0xff]   ;;  %v7174_v11 = vld [vmem:[%s8647_s7] sm:$0xff]   ;;  %v7175_v13 = vld [vmem:[%s8647_s7 + $0x8] sm:$0xff]  }
  0xa5   :  { %6570 = vmatprep.subr.bf16.mxu0 %v7565_v0  ;;  %v7173_v10 = vld [vmem:[%s8646_s6 + $0x18] sm:$0xff]   ;;  %v7176_v14 = vld [vmem:[%s8647_s7 + $0x10] sm:$0xff]   ;;  %s7569_s6 = smov [#allocation14]  }
  0xa6   :  { %v7177_v15 = vld [vmem:[%s8647_s7 + $0x18] sm:$0xff]   ;;  %s6201_s23 = sshll.u32 %s7569_s6, 4  ;;  %s6202_s23 = int_to_ptr.vmem [resolvable:$true] %s6201_s23 }
  0xa7   :  { %6547 = vmatpush3.bf16.msra.mxu1 %v7168_v3  ;;  %s7522_s29 = scalar_lea.vmem %s6202_s23, 256  ;;  %p7527_p1 = scmp.lt.s32.totalorder %s6202_s23, %s6202_s23 }
  0xa8   :  { %6571 = vmatpush3.bf16.msra.mxu0 %v7169_v4  ;;  %6548 = vmatprep.subr.bf16.mxu1 %v7565_v0  ;;  %p7523_p0 = scmp.ne.s32.totalorder %s6202_s23, %s7522_s29  ;;  %p7528_p2 = scmp.lt.s32.totalorder %s7522_s29, %s7522_s29 }
  0xa9   :  { %6572 = vmatprep.subr.bf16.mxu0 %v7565_v0 }
  0xaa   :  { %p7529_p3 = por %p7528_p2, %p7527_p1 }
  0xab   :  { %6549 = vmatpush3.bf16.msra.mxu1 %v7170_v5 }
  0xac   :  { %6573 = vmatpush3.bf16.msra.mxu0 %v7171_v6  ;;  %6550 = vmatprep.subr.bf16.mxu1 %v7565_v0  ;;  %p7530_p4 = pnand %p7529_p3, %p7523_p0 }
  0xad   :  { %6574 = vmatprep.subr.bf16.mxu0 %v7565_v0 }
  0xaf   :  { %6551 = vmatpush3.bf16.msra.mxu1 %v7172_v7 }
  0xb0   :  { %6575 = vmatpush3.bf16.msra.mxu0 %v7173_v10  ;;  %6556 = vmatprep.subr.bf16.mxu1 %v7565_v0 }
  0xb1   :  { %6592 = vmatprep.subr.bf16.mxu0 %v7565_v0 }
  0xb2   :  { %6553 = vmatmul.mubr.msk.bf16.vlgmr.msra.gmra.mrb[0].mxu1 %vm216_vm1, %v177_v12 }
  0xb3   :  { %6577 = vmatmul.mubr.msk.bf16.vlgmr.msra.gmra.mrb[0].mxu0 %vm216_vm1, %v177_v12  ;;  %6557 = vmatpush3.bf16.msra.mxu1 %v7174_v11 }
  0xb4   :  { %6558 = vmatprep.subr.bf16.mxu1 %v7565_v0  ;;  %6564 = vmatprep.mubr.msk.bf16.mxu1 %vm7566_vm0, %v7565_v0 }
  0xb5   :  { %6594 = vmatprep.mubr.msk.bf16.mxu0 %vm7566_vm0, %v7565_v0 }
  0xb7   :  { %6559 = vmatpush3.bf16.msra.mxu1 %v7175_v13 }
  0xb8   :  { %6560 = vmatprep.subr.bf16.mxu1 %v7565_v0 }
  0xbb   :  { %6561 = vmatpush3.bf16.msra.mxu1 %v7176_v14  ;;  %v169_v14 = vlaneseq }
  0xbc   :  { %6562 = vmatprep.subr.bf16.mxu1 %v7565_v0 }
  0xbf   :  { %6563 = vmatpush3.bf16.msra.mxu1 %v7177_v15  ;;  %v7926_v15 = vshrl.u32 %v169_v14, 7 }
  0xc0   :  { %6580 = vmatprep.subr.bf16.mxu1 %v7565_v0 }
  0xc2   :  { %6565 = vmatmul.mubr.msk.bf16.vlgmr.msra.gmra.mrb[4].mxu1 %vm216_vm1, %v177_v12 }
  0xc3   :  { %6582 = vmatprep.mubr.msk.bf16.mxu1 %vm7566_vm0, %v7565_v0 }
 0x185   :  { %v254_v16 = vpop.f32.mrb[0].mxu1 }
 0x186   :  { %487 = vxpose.xlu0.b32.start.end [1/1] (short) (narrow) %v254_v16, 64  ;;  %v6554_v17 = vpop.f32.mrb[1].mxu1  ;;  %v7876_v18 = vpop.f32.mrb[0].mxu0  ;;  %v172_v16 = vand.u32 127, %v169_v14 }
 0x187   :  { %v7878_v19 = vpop.f32.mrb[2].mxu1  ;;  %v6578_v20 = vpop.f32.mrb[1].mxu0  ;;  %v7567_v17 = vmov -1e+20  }
 0x188   :  { %v7040_v21 = vpack.i.bf16 %v7876_v18, %v7878_v19  ;;  %v6555_v22 = vpop.f32.mrb[3].mxu1  ;;  %v7924_v12 = vpop.f32.mrb[2].mxu0  ;;  %vm173_vm4 = vcmp.ge.s32.totalorder %v7926_v15, %v172_v16 }
 0x189   :  { %v6579_v13 = vpop.f32.mrb[3].mxu0  ;;  %v7929_v20 = vsel %vm173_vm4, 0.0, %v7567_v17 }
 0x195   :  { %v327_v23 = vpop.f32.mrb[4].mxu1 }
 0x196   :  { %v6566_v24 = vpop.f32.mrb[5].mxu1 }
 0x197   :  { %v7882_v25 = vpop.f32.mrb[6].mxu1 }
 0x198   :  { %v6567_v26 = vpop.f32.mrb[7].mxu1 }
 0x1a3   :  { %407 = vxpose.xlu0.b32.start.end [1/1] (short) (narrow) %v327_v23, 64 }
 0x206   :  { %v503_v27 = vpop.trf.xlu0 }
 0x207   :  { %519 = vxpose.xlu1.b32.start.end [1/1] (short) (narrow) %v503_v27, 8 }
 0x20a   :  { %v504_v28 = vpop.trf.xlu0 }
 0x20b   :  { %551 = vxpose.xlu1.b32.start.end [1/1] (short) (narrow) %v504_v28, 8 }
 0x20e   :  { %v505_v29 = vpop.trf.xlu0 }
 0x20f   :  { %583 = vxpose.xlu1.b32.start.end [1/1] (short) (narrow) %v505_v29, 8 }
 0x212   :  { %v506_v30 = vpop.trf.xlu0 }
 0x213   :  { %615 = vxpose.xlu1.b32.start.end [1/1] (short) (narrow) %v506_v30, 8 }
 0x216   :  { %v507_v31 = vpop.trf.xlu0 }
 0x217   :  { %647 = vxpose.xlu1.b32.start.end [1/1] (short) (narrow) %v507_v31, 8 }
 0x21a   :  { %v508_v32 = vpop.trf.xlu0 }
 0x21b   :  { %679 = vxpose.xlu1.b32.start.end [1/1] (short) (narrow) %v508_v32, 8 }
 0x21e   :  { %v509_v33 = vpop.trf.xlu0 }
 0x21f   :  { %711 = vxpose.xlu1.b32.start.end [1/1] (short) (narrow) %v509_v33, 8 }
 0x222   :  { %v510_v34 = vpop.trf.xlu0 }
 0x223   :  { %743 = vxpose.xlu1.b32.start.end [1/1] (short) (narrow) %v510_v34, 8 }
 0x226   :  { %v423_v35 = vpop.trf.xlu0 }
 0x227   :  { %v439_v36 = vpack.c.bf16 %v423_v35, %v423_v35 }
 0x229   :  { %v789_v37 = vsel %vm787_vm2, %v439_v36, 0 }
 0x22a   :  { %6581 = vmatpush3.bf16.msra.mxu1 %v789_v37  ;;  %v424_v38 = vpop.trf.xlu0 }
 0x22b   :  { %6586 = vmatprep.subr.bf16.mxu1 %v7565_v0  ;;  %v440_v43 = vpack.c.bf16 %v424_v38, %v424_v38 }
 0x22d   :  { %v835_v47 = vsel %vm787_vm2, %v440_v43, 0 }
 0x22e   :  { %v425_v39 = vpop.trf.xlu0 }
 0x22f   :  { %v441_v40 = vpack.c.bf16 %v425_v39, %v425_v39 }
 0x231   :  { %v881_v41 = vsel %vm787_vm2, %v441_v40, 0 }
 0x232   :  { %6593 = vmatpush3.bf16.msra.mxu0 %v881_v41  ;;  %v426_v42 = vpop.trf.xlu0 }
 0x233   :  { %6604 = vmatprep.subr.bf16.mxu0 %v7565_v0  ;;  %v442_v50 = vpack.c.bf16 %v426_v42, %v426_v42 }
 0x235   :  { %v927_v55 = vsel %vm787_vm2, %v442_v50, 0 }
 0x236   :  { %v427_v44 = vpop.trf.xlu0 }
 0x237   :  { %v443_v51 = vpack.c.bf16 %v427_v44, %v427_v44 }
 0x239   :  { %v973_v56 = vsel %vm787_vm2, %v443_v51, 0 }
 0x23a   :  { %v428_v49 = vpop.trf.xlu0 }
 0x23b   :  { %v444_v59 = vpack.c.bf16 %v428_v49, %v428_v49 }
 0x23d   :  { %v1019_v1 = vsel %vm787_vm2, %v444_v59, 0 }
 0x23e   :  { %v429_v57 = vpop.trf.xlu0 }
 0x23f   :  { %v445_v60 = vpack.c.bf16 %v429_v57, %v429_v57 }
 0x241   :  { %v1065_v2 = vsel %vm787_vm2, %v445_v60, 0 }
 0x242   :  { %v430_v3 = vpop.trf.xlu0 }
 0x243   :  { %v446_v5 = vpack.c.bf16 %v430_v3, %v430_v3 }
 0x245   :  { %v1111_v9 = vsel %vm787_vm2, %v446_v5, 0 }
 0x287   :  { %v535_v45 = vpop.trf.xlu1 }
 0x288   :  { %v775_v46 = vpack.c.bf16 %v535_v45, %v535_v45 }
 0x28a   :  { %6583 = vmatmul.mubr.msk.bf16.vlgmr.msra.gmra.mrb[8].mxu1 %vm783_vm3, %v775_v46 }
 0x28b   :  { %6587 = vmatpush3.bf16.msra.mxu1 %v835_v47  ;;  %v567_v48 = vpop.trf.xlu1  ;;  %6588 = vmatprep.mubr.msk.bf16.mxu1 %vm7566_vm0, %v7565_v0 }
 0x28c   :  { %6598 = vmatprep.subr.bf16.mxu1 %v7565_v0  ;;  %v776_v52 = vpack.c.bf16 %v567_v48, %v567_v48 }
 0x28f   :  { %v599_v53 = vpop.trf.xlu1 }
 0x290   :  { %v777_v54 = vpack.c.bf16 %v599_v53, %v599_v53 }
 0x292   :  { %6589 = vmatmul.mubr.msk.bf16.vlgmr.msra.gmra.mrb[12].mxu1 %vm783_vm3, %v776_v52  ;;  %6595 = vmatmul.mubr.msk.bf16.vlgmr.msra.gmra.mrb[4].mxu0 %vm783_vm3, %v777_v54 }
 0x293   :  { %6599 = vmatpush3.bf16.msra.mxu1 %v927_v55  ;;  %v631_v58 = vpop.trf.xlu1  ;;  %6605 = vmatpush3.bf16.msra.mxu0 %v973_v56 }
 0x294   :  { %6600 = vmatprep.mubr.msk.bf16.mxu1 %vm7566_vm0, %v7565_v0  ;;  %6610 = vmatprep.subr.bf16.mxu1 %v7565_v0  ;;  %v778_v61 = vpack.c.bf16 %v631_v58, %v631_v58 }
 0x295   :  { %6606 = vmatprep.mubr.msk.bf16.mxu0 %vm7566_vm0, %v7565_v0  ;;  %6616 = vmatprep.subr.bf16.mxu0 %v7565_v0 }
 0x297   :  { %v663_v62 = vpop.trf.xlu1 }
 0x298   :  { %v779_v63 = vpack.c.bf16 %v663_v62, %v663_v62 }
 0x29a   :  { %6601 = vmatmul.mubr.msk.bf16.vlgmr.msra.gmra.mrb[16].mxu1 %vm783_vm3, %v778_v61  ;;  %6607 = vmatmul.mubr.msk.bf16.vlgmr.msra.gmra.mrb[8].mxu0 %vm783_vm3, %v779_v63 }
 0x29b   :  { %6611 = vmatpush3.bf16.msra.mxu1 %v1019_v1  ;;  %v695_v4 = vpop.trf.xlu1  ;;  %6617 = vmatpush3.bf16.msra.mxu0 %v1065_v2 }
 0x29c   :  { %6612 = vmatprep.mubr.msk.bf16.mxu1 %vm7566_vm0, %v7565_v0  ;;  %6618 = vmatprep.mubr.msk.bf16.mxu0 %vm7566_vm0, %v7565_v0  ;;  %v780_v6 = vpack.c.bf16 %v695_v4, %v695_v4 }
 0x29d   :  { %6622 = vmatprep.subr.bf16.mxu1 %v7565_v0  ;;  %6628 = vmatprep.subr.bf16.mxu0 %v7565_v0 }
 0x29f   :  { %v727_v7 = vpop.trf.xlu1 }
 0x2a0   :  { %v781_v8 = vpack.c.bf16 %v727_v7, %v727_v7 }
 0x2a2   :  { %6613 = vmatmul.mubr.msk.bf16.vlgmr.msra.gmra.mrb[20].mxu1 %vm783_vm3, %v780_v6  ;;  %6619 = vmatmul.mubr.msk.bf16.vlgmr.msra.gmra.mrb[12].mxu0 %vm783_vm3, %v781_v8 }
 0x2a3   :  { %v759_v10 = vpop.trf.xlu1  ;;  %6623 = vmatpush3.bf16.msra.mxu1 %v1111_v9  ;;  %6624 = vmatprep.mubr.msk.bf16.mxu1 %vm7566_vm0, %v7565_v0 }
 0x2a4   :  { %6634 = vmatprep.subr.bf16.mxu1 %v7565_v0  ;;  %6630 = vmatprep.mubr.msk.bf16.mxu0 %vm7566_vm0, %v7565_v0  ;;  %v782_v11 = vpack.c.bf16 %v759_v10, %v759_v10 }
 0x2aa   :  { %6625 = vmatmul.mubr.msk.bf16.vlgmr.msra.gmra.mrb[24].mxu1 %vm783_vm3, %v782_v11 }
 0x2ab   :  { %6636 = vmatprep.mubr.msk.bf16.mxu1 %vm7566_vm0, %v7565_v0 }
 0x35d   :  { %v825_v22 = vpop.f32.mrb[8].mxu1 }
 0x35e   :  { %v826_v23 = vadd.f32 %v825_v22, %v7929_v20  ;;  %v6584_v24 = vpop.f32.mrb[9].mxu1 }
 0x35f   :  { %v828_v26 = vpop.f32.mrb[10].mxu1 }
 0x360   :  { %v6585_v27 = vpop.f32.mrb[11].mxu1  ;;  %v1153_v28 = vsel %vm783_vm3, %v826_v23, -inf }
 0x361   :  { %1154 = vmax.xlane.f32.xlu1 %v1153_v28 }
 0x365   :  { %v871_v29 = vpop.f32.mrb[12].mxu1  ;;  %v917_v30 = vpop.f32.mrb[4].mxu0 }
 0x366   :  { %v872_v31 = vadd.f32 %v871_v29, %v7929_v20  ;;  %v918_v32 = vadd.f32 %v917_v30, %v7929_v20  ;;  %v6590_v33 = vpop.f32.mrb[13].mxu1  ;;  %v6596_v34 = vpop.f32.mrb[5].mxu0 }
 0x367   :  { %v874_v35 = vpop.f32.mrb[14].mxu1  ;;  %v920_v36 = vpop.f32.mrb[6].mxu0 }
 0x368   :  { %v6591_v37 = vpop.f32.mrb[15].mxu1  ;;  %v6597_v38 = vpop.f32.mrb[7].mxu0  ;;  %v1159_v39 = vsel %vm783_vm3, %v918_v32, -inf  ;;  %v1156_v40 = vsel %vm783_vm3, %v872_v31, -inf }
 0x369   :  { %1160 = vmax.xlane.f32.xlu1 %v1159_v39  ;;  %1157 = vmax.xlane.f32.xlu0 %v1156_v40 }
 0x36d   :  { %v963_v41 = vpop.f32.mrb[16].mxu1  ;;  %v1009_v42 = vpop.f32.mrb[8].mxu0 }
 0x36e   :  { %v964_v43 = vadd.f32 %v963_v41, %v7929_v20  ;;  %v6602_v44 = vpop.f32.mrb[17].mxu1  ;;  %v1010_v45 = vadd.f32 %v1009_v42, %v7929_v20  ;;  %v6608_v46 = vpop.f32.mrb[9].mxu0 }
 0x36f   :  { %v966_v47 = vpop.f32.mrb[18].mxu1  ;;  %v1012_v48 = vpop.f32.mrb[10].mxu0 }
 0x370   :  { %v6603_v49 = vpop.f32.mrb[19].mxu1  ;;  %v6609_v50 = vpop.f32.mrb[11].mxu0  ;;  %v1162_v51 = vsel %vm783_vm3, %v964_v43, -inf  ;;  %v1165_v52 = vsel %vm783_vm3, %v1010_v45, -inf }
 0x371   :  { %1163 = vmax.xlane.f32.xlu1 %v1162_v51 }
 0x375   :  { %1166 = vmax.xlane.f32.xlu1 %v1165_v52  ;;  %v1055_v53 = vpop.f32.mrb[20].mxu1  ;;  %v1101_v54 = vpop.f32.mrb[12].mxu0 }
 0x376   :  { %v1056_v55 = vadd.f32 %v1055_v53, %v7929_v20  ;;  %v6614_v56 = vpop.f32.mrb[21].mxu1  ;;  %v1102_v57 = vadd.f32 %v1101_v54, %v7929_v20  ;;  %v6620_v58 = vpop.f32.mrb[13].mxu0 }
 0x377   :  { %v1058_v59 = vpop.f32.mrb[22].mxu1  ;;  %v1104_v60 = vpop.f32.mrb[14].mxu0 }
 0x378   :  { %v6615_v61 = vpop.f32.mrb[23].mxu1  ;;  %v6621_v62 = vpop.f32.mrb[15].mxu0  ;;  %v1168_v63 = vsel %vm783_vm3, %v1056_v55, -inf  ;;  %v1171_v1 = vsel %vm783_vm3, %v1102_v57, -inf }
 0x379   :  { %1169 = vmax.xlane.f32.xlu1 %v1168_v63 }
 0x37d   :  { %1172 = vmax.xlane.f32.xlu1 %v1171_v1  ;;  %v1147_v2 = vpop.f32.mrb[24].mxu1 }
 0x37e   :  { %v1148_v3 = vadd.f32 %v1147_v2, %v7929_v20  ;;  %v6626_v4 = vpop.f32.mrb[25].mxu1 }
 0x37f   :  { %v1150_v5 = vpop.f32.mrb[26].mxu1 }
 0x380   :  { %v1174_v6 = vsel %vm783_vm3, %v1148_v3, -inf  ;;  %v6627_v7 = vpop.f32.mrb[27].mxu1 }
 0x381   :  { %1175 = vmax.xlane.f32.xlu1 %v1174_v6 }
 0x3ee   :  { %v1155_v8 = vpop.xlane.xlu1 %1154 }
 0x3ef   :  { %v1177_v9 = vsub.f32 %v826_v23, %v1155_v8 }
 0x3f1   :  { %v1185_v10 = vmul.f32 1.442695, %v1177_v9 }
 0x3f3   :  { %7226 = vpow2.f32 %v1185_v10 }
 0x3f6   :  { %v1161_v11 = vpop.xlane.xlu1 %1160  ;;  %v1158_v13 = vpop.xlane.xlu0 %1157 }
 0x3f7   :  { %v1179_v14 = vsub.f32 %v918_v32, %v1161_v11  ;;  %v1178_v16 = vsub.f32 %v872_v31, %v1158_v13 }
 0x3f9   :  { %v1187_v17 = vmul.f32 1.442695, %v1178_v16  ;;  %v1189_v22 = vmul.f32 1.442695, %v1179_v14 }
 0x3fb   :  { %7228 = vpow2.f32 %v1187_v17 }
 0x3fc   :  { %7230 = vpow2.f32 %v1189_v22 }
 0x3fd   :  { %v7227_v24 = vpop.eup %7226 }
 0x3fe   :  { %v1164_v26 = vpop.xlane.xlu1 %1163  ;;  %v1201_v27 = vsel %vm783_vm3, %v7227_v24, 0.0 }
 0x3ff   :  { %v1180_v28 = vsub.f32 %v964_v43, %v1164_v26  ;;  %1202 = vadd.xlane.f32.xlu1 %v1201_v27 }
 0x401   :  { %v1191_v29 = vmul.f32 1.442695, %v1180_v28 }
 0x402   :  { %v1167_v30 = vpop.xlane.xlu1 %1166 }
 0x403   :  { %7232 = vpow2.f32 %v1191_v29  ;;  %v1181_v23 = vsub.f32 %v1010_v45, %v1167_v30 }
 0x405   :  { %v1193_v33 = vmul.f32 1.442695, %v1181_v23  ;;  %v7229_v34 = vpop.eup %7228 }
 0x406   :  { %v1170_v35 = vpop.xlane.xlu1 %1169  ;;  %v1204_v31 = vsel %vm783_vm3, %v7229_v34, 0.0  ;;  %v7231_v36 = vpop.eup %7230 }
 0x407   :  { %7234 = vpow2.f32 %v1193_v33  ;;  %v1182_v32 = vsub.f32 %v1056_v55, %v1170_v35  ;;  %1205 = vadd.xlane.f32.xlu1 %v1204_v31  ;;  %v1207_v40 = vsel %vm783_vm3, %v7231_v36, 0.0 }
 0x409   :  { %v1195_v37 = vmul.f32 1.442695, %v1182_v32 }
 0x40a   :  { %v1173_v38 = vpop.xlane.xlu1 %1172 }
 0x40b   :  { %7236 = vpow2.f32 %v1195_v37  ;;  %v1183_v39 = vsub.f32 %v1102_v57, %v1173_v38  ;;  %1208 = vadd.xlane.f32.xlu1 %v1207_v40 }
 0x40d   :  { %v7233_v41 = vpop.eup %7232  ;;  %v1197_v42 = vmul.f32 1.442695, %v1183_v39 }
 0x40e   :  { %v1176_v43 = vpop.xlane.xlu1 %1175  ;;  %v1210_v44 = vsel %vm783_vm3, %v7233_v41, 0.0 }
 0x40f   :  { %7238 = vpow2.f32 %v1197_v42  ;;  %v1184_v45 = vsub.f32 %v1148_v3, %v1176_v43  ;;  %1211 = vadd.xlane.f32.xlu0 %v1210_v44 }
 0x411   :  { %v7235_v46 = vpop.eup %7234  ;;  %v1199_v47 = vmul.f32 1.442695, %v1184_v45 }
 0x412   :  { %v1213_v48 = vsel %vm783_vm3, %v7235_v46, 0.0 }
 0x413   :  { %7240 = vpow2.f32 %v1199_v47  ;;  %1214 = vadd.xlane.f32.xlu1 %v1213_v48 }
 0x415   :  { %v7952_v49 = vpop.eup %7236 }
 0x416   :  { %v1216_v50 = vsel %vm783_vm3, %v7952_v49, 0.0 }
 0x417   :  { %1217 = vadd.xlane.f32.xlu0 %v1216_v50 }
 0x419   :  { %v7956_v51 = vpop.eup %7238 }
 0x41a   :  { %v1219_v52 = vsel %vm783_vm3, %v7956_v51, 0.0 }
 0x41b   :  { %1220 = vadd.xlane.f32.xlu1 %v1219_v52 }
 0x41d   :  { %v7960_v53 = vpop.eup %7240 }
 0x41e   :  { %v1222_v54 = vsel %vm783_vm3, %v7960_v53, 0.0 }
 0x41f   :  { %1223 = vadd.xlane.f32.xlu0 %v1222_v54 }
 0x44c   :  { %1649 = vxpose.xlu0.b32.start.end [1/1] (short) (narrow) %v7882_v25, 64 }
 0x44e   :  { %7041 = vxpose.xlu1.b32.start.end [1/1] (short) (narrow) %v7040_v21, 64 }
 0x48c   :  { %v1203_v55 = vpop.xlane.xlu1 %1202 }
 0x48d   :  { %7242 = vrcp.f32 %v1203_v55 }
 0x494   :  { %v1206_v56 = vpop.xlane.xlu1 %1205 }
 0x495   :  { %7244 = vrcp.f32 %v1206_v56 }
 0x497   :  { %v7243_v57 = vpop.eup %7242 }
 0x498   :  { %v1233_v58 = vmul.f32 %v7243_v57, %v7227_v24  ;;  %v1209_v18 = vpop.xlane.xlu1 %1208 }
 0x499   :  { %7246 = vrcp.f32 %v1209_v18 }
 0x49a   :  { %v1241_v59 = vpack.c.bf16 %v1233_v58, %v1233_v58 }
 0x49c   :  { %v1253_v60 = vsel %vm783_vm3, %v1241_v59, 0  ;;  %v1212_v19 = vpop.xlane.xlu0 %1211 }
 0x49d   :  { %6629 = vmatpush3.bf16.xpose.msra.mxu0 %v1253_v60  ;;  %7248 = vrcp.f32 %v1212_v19 }
 0x49e   :  { %6640 = vmatprep.subr.bf16.mxu0 %v7565_v0 }
 0x49f   :  { %v7245_v61 = vpop.eup %7244 }
 0x4a0   :  { %v1234_v62 = vmul.f32 %v7245_v61, %v7229_v34  ;;  %v1215_v21 = vpop.xlane.xlu1 %1214 }
 0x4a1   :  { %7250 = vrcp.f32 %v1215_v21 }
 0x4a2   :  { %v1242_v63 = vpack.c.bf16 %v1234_v62, %v1234_v62 }
 0x4a3   :  { %v7247_v2 = vpop.eup %7246 }
 0x4a4   :  { %v1299_v25 = vsel %vm783_vm3, %v1242_v63, 0  ;;  %v1218_v1 = vpop.xlane.xlu0 %1217  ;;  %v1235_v4 = vmul.f32 %v7247_v2, %v7231_v36 }
 0x4a5   :  { %6635 = vmatpush3.bf16.xpose.msra.mxu1 %v1299_v25  ;;  %7252 = vrcp.f32 %v1218_v1 }
 0x4a6   :  { %6646 = vmatprep.subr.bf16.mxu1 %v7565_v0  ;;  %v1243_v8 = vpack.c.bf16 %v1235_v4, %v1235_v4 }
 0x4a7   :  { %v7249_v5 = vpop.eup %7248 }
 0x4a8   :  { %v1221_v3 = vpop.xlane.xlu1 %1220  ;;  %v1236_v9 = vmul.f32 %v7249_v5, %v7233_v41  ;;  %v1345_v17 = vsel %vm783_vm3, %v1243_v8, 0 }
 0x4a9   :  { %7254 = vrcp.f32 %v1221_v3 }
 0x4aa   :  { %v1244_v22 = vpack.c.bf16 %v1236_v9, %v1236_v9 }
 0x4ab   :  { %v7251_v10 = vpop.eup %7250 }
 0x4ac   :  { %v1224_v6 = vpop.xlane.xlu0 %1223  ;;  %v1237_v24 = vmul.f32 %v7251_v10, %v7235_v46  ;;  %v1391_v23 = vsel %vm783_vm3, %v1244_v22, 0 }
 0x4ad   :  { %7256 = vrcp.f32 %v1224_v6 }
 0x4ae   :  { %v1245_v33 = vpack.c.bf16 %v1237_v24, %v1237_v24 }
 0x4af   :  { %v7253_v26 = vpop.eup %7252 }
 0x4b0   :  { %v1238_v34 = vmul.f32 %v7253_v26, %v7952_v49  ;;  %v1437_v38 = vsel %vm783_vm3, %v1245_v33, 0 }
 0x4b2   :  { %v1246_v39 = vpack.c.bf16 %v1238_v34, %v1238_v34 }
 0x4b3   :  { %v7255_v35 = vpop.eup %7254 }
 0x4b4   :  { %v1239_v40 = vmul.f32 %v7255_v35, %v7956_v51  ;;  %v1483_v46 = vsel %vm783_vm3, %v1246_v39, 0 }
 0x4b6   :  { %v1247_v47 = vpack.c.bf16 %v1239_v40, %v1239_v40 }
 0x4b7   :  { %v7257_v41 = vpop.eup %7256 }
 0x4b8   :  { %v1240_v48 = vmul.f32 %v7257_v41, %v7960_v53  ;;  %v1529_v55 = vsel %vm783_vm3, %v1247_v47, 0 }
 0x4ba   :  { %v1248_v56 = vpack.c.bf16 %v1240_v48, %v1240_v48 }
 0x4bc   :  { %v1575_v61 = vsel %vm783_vm3, %v1248_v56, 0 }
 0x4cc   :  { %v1665_v51 = vpop.trf.xlu0 }
 0x4cd   :  { %v1681_v59 = vpack.c.bf16 %v1665_v51, %v1665_v51 }
 0x4ce   :  { %v7042_v7 = vpop.trf.xlu1 }
 0x4cf   :  { %v7046_v11 = vunpack.i.h.bf16 %v7042_v7  ;;  %v7043_v13 = vunpack.i.l.bf16 %v7042_v7  ;;  %v2029_v19 = vsel %vm787_vm2, %v1681_v59, 0 }
 0x4d0   :  { %v1666_v62 = vpop.trf.xlu0 }
 0x4d1   :  { %v479_v14 = vpack.c.bf16 %v7046_v11, %v7046_v11  ;;  %1761 = vxpose.xlu0.b32.start.end [1/1] (short) (narrow) %v7043_v13, 8  ;;  %v1682_v21 = vpack.c.bf16 %v1666_v62, %v1666_v62 }
 0x4d2   :  { %v7047_v16 = vpop.trf.xlu1 }
 0x4d3   :  { %v7051_v27 = vunpack.i.h.bf16 %v7047_v16  ;;  %6631 = vmatmul.mubr.msk.bf16.vlgmr.msra.gmra.mrb[16].mxu0 %vm783_vm3, %v479_v14  ;;  %v7048_v28 = vunpack.i.l.bf16 %v7047_v16  ;;  %v2075_v5 = vsel %vm787_vm2, %v1682_v21, 0 }
 0x4d4   :  { %6641 = vmatpush3.bf16.xpose.msra.mxu0 %v1345_v17  ;;  %6642 = vmatprep.mubr.msk.bf16.mxu0 %vm7566_vm0, %v7565_v0  ;;  %v1667_v6 = vpop.trf.xlu0 }
 0x4d5   :  { %v480_v29 = vpack.c.bf16 %v7051_v27, %v7051_v27  ;;  %1793 = vxpose.xlu1.b32.start.end [1/1] (short) (narrow) %v7048_v28, 8  ;;  %6652 = vmatprep.subr.bf16.mxu0 %v7565_v0  ;;  %v1683_v13 = vpack.c.bf16 %v1667_v6, %v1667_v6 }
 0x4d6   :  { %v7052_v30 = vpop.trf.xlu1 }
 0x4d7   :  { %v7056_v32 = vunpack.i.h.bf16 %v7052_v30  ;;  %6637 = vmatmul.mubr.msk.bf16.vlgmr.msra.gmra.mrb[28].mxu1 %vm783_vm3, %v480_v29  ;;  %v7053_v31 = vunpack.i.l.bf16 %v7052_v30  ;;  %v2121_v22 = vsel %vm787_vm2, %v1683_v13, 0 }
 0x4d8   :  { %6647 = vmatpush3.bf16.xpose.msra.mxu1 %v1391_v23  ;;  %6648 = vmatprep.mubr.msk.bf16.mxu1 %vm7566_vm0, %v7565_v0  ;;  %v1668_v7 = vpop.trf.xlu0 }
 0x4d9   :  { %v481_v36 = vpack.c.bf16 %v7056_v32, %v7056_v32  ;;  %1825 = vxpose.xlu0.b32.start.end [1/1] (short) (narrow) %v7053_v31, 8  ;;  %6658 = vmatprep.subr.bf16.mxu1 %v7565_v0  ;;  %v1684_v17 = vpack.c.bf16 %v1668_v7, %v1668_v7 }
 0x4da   :  { %v7057_v37 = vpop.trf.xlu1 }
 0x4db   :  { %v7061_v42 = vunpack.i.h.bf16 %v7057_v37  ;;  %6643 = vmatmul.mubr.msk.bf16.vlgmr.msra.gmra.mrb[20].mxu0 %vm783_vm3, %v481_v36  ;;  %v7058_v43 = vunpack.i.l.bf16 %v7057_v37  ;;  %v2167_v28 = vsel %vm787_vm2, %v1684_v17, 0 }
 0x4dc   :  { %6653 = vmatpush3.bf16.xpose.msra.mxu0 %v1437_v38  ;;  %6654 = vmatprep.mubr.msk.bf16.mxu0 %vm7566_vm0, %v7565_v0  ;;  %v1669_v8 = vpop.trf.xlu0 }
 0x4dd   :  { %v482_v44 = vpack.c.bf16 %v7061_v42, %v7061_v42  ;;  %1857 = vxpose.xlu1.b32.start.end [1/1] (short) (narrow) %v7058_v43, 8  ;;  %6664 = vmatprep.subr.bf16.mxu0 %v7565_v0  ;;  %v1685_v27 = vpack.c.bf16 %v1669_v8, %v1669_v8 }
 0x4de   :  { %v7062_v45 = vpop.trf.xlu1 }
 0x4df   :  { %v7066_v49 = vunpack.i.h.bf16 %v7062_v45  ;;  %6649 = vmatmul.mubr.msk.bf16.vlgmr.msra.gmra.mrb[32].mxu1 %vm783_vm3, %v482_v44  ;;  %v7063_v50 = vunpack.i.l.bf16 %v7062_v45  ;;  %v2213_v33 = vsel %vm787_vm2, %v1685_v27, 0 }
 0x4e0   :  { %6659 = vmatpush3.bf16.xpose.msra.mxu1 %v1483_v46  ;;  %6660 = vmatprep.mubr.msk.bf16.mxu1 %vm7566_vm0, %v7565_v0  ;;  %v1670_v9 = vpop.trf.xlu0 }
 0x4e1   :  { %v483_v52 = vpack.c.bf16 %v7066_v49, %v7066_v49  ;;  %1889 = vxpose.xlu0.b32.start.end [1/1] (short) (narrow) %v7063_v50, 8  ;;  %6670 = vmatprep.subr.bf16.mxu1 %v7565_v0  ;;  %v1686_v23 = vpack.c.bf16 %v1670_v9, %v1670_v9 }
 0x4e2   :  { %v7067_v54 = vpop.trf.xlu1 }
 0x4e3   :  { %v7071_v57 = vunpack.i.h.bf16 %v7067_v54  ;;  %6655 = vmatmul.mubr.msk.bf16.vlgmr.msra.gmra.mrb[24].mxu0 %vm783_vm3, %v483_v52  ;;  %v7068_v53 = vunpack.i.l.bf16 %v7067_v54  ;;  %v2259_v31 = vsel %vm787_vm2, %v1686_v23, 0 }
 0x4e4   :  { %6665 = vmatpush3.bf16.xpose.msra.mxu0 %v1529_v55  ;;  %6666 = vmatprep.mubr.msk.bf16.mxu0 %vm7566_vm0, %v7565_v0  ;;  %v1671_v10 = vpop.trf.xlu0 }
 0x4e5   :  { %v484_v58 = vpack.c.bf16 %v7071_v57, %v7071_v57  ;;  %1921 = vxpose.xlu1.b32.start.end [1/1] (short) (narrow) %v7068_v53, 8  ;;  %6676 = vmatprep.subr.bf16.mxu0 %v7565_v0  ;;  %v1687_v32 = vpack.c.bf16 %v1671_v10, %v1671_v10 }
 0x4e6   :  { %v7072_v60 = vpop.trf.xlu1 }
 0x4e7   :  { %v7076_v63 = vunpack.i.h.bf16 %v7072_v60  ;;  %6661 = vmatmul.mubr.msk.bf16.vlgmr.msra.gmra.mrb[36].mxu1 %vm783_vm3, %v484_v58  ;;  %v7073_v25 = vunpack.i.l.bf16 %v7072_v60  ;;  %v2305_v39 = vsel %vm787_vm2, %v1687_v32, 0 }
 0x4e8   :  { %6671 = vmatpush3.bf16.xpose.msra.mxu1 %v1575_v61  ;;  %6672 = vmatprep.mubr.msk.bf16.mxu1 %vm7566_vm0, %v7565_v0  ;;  %v1672_v11 = vpop.trf.xlu0 }
 0x4e9   :  { %v485_v18 = vpack.c.bf16 %v7076_v63, %v7076_v63  ;;  %1953 = vxpose.xlu0.b32.start.end [1/1] (short) (narrow) %v7073_v25, 8  ;;  %6682 = vmatprep.subr.bf16.mxu1 %v7565_v0  ;;  %v1688_v38 = vpack.c.bf16 %v1672_v11, %v1672_v11 }
 0x4ea   :  { %v7077_v1 = vpop.trf.xlu1 }
 0x4eb   :  { %v7081_v2 = vunpack.i.h.bf16 %v7077_v1  ;;  %6667 = vmatmul.mubr.msk.bf16.vlgmr.msra.gmra.mrb[28].mxu0 %vm783_vm3, %v485_v18  ;;  %v7078_v3 = vunpack.i.l.bf16 %v7077_v1  ;;  %v2351_v42 = vsel %vm787_vm2, %v1688_v38, 0 }
 0x4ec   :  { %6677 = vmatpush3.bf16.msra.mxu0 %v2029_v19  ;;  %6678 = vmatprep.mubr.msk.bf16.mxu0 %vm7566_vm0, %v7565_v0 }
 0x4ed   :  { %v486_v4 = vpack.c.bf16 %v7081_v2, %v7081_v2  ;;  %1985 = vxpose.xlu1.b32.start.end [1/1] (short) (narrow) %v7078_v3, 8  ;;  %6688 = vmatprep.subr.bf16.mxu0 %v7565_v0 }
 0x4ef   :  { %6673 = vmatmul.mubr.msk.bf16.vlgmr.msra.gmra.mrb[40].mxu1 %vm783_vm3, %v486_v4 }
 0x4f0   :  { %6683 = vmatpush3.bf16.msra.mxu1 %v2075_v5  ;;  %6684 = vmatprep.mubr.msk.bf16.mxu1 %vm7566_vm0, %v7565_v0 }
 0x4f1   :  { %6694 = vmatprep.subr.bf16.mxu1 %v7565_v0 }
 0x551   :  { %v1777_v14 = vpop.trf.xlu0 }
 0x552   :  { %v2017_v16 = vpack.c.bf16 %v1777_v14, %v1777_v14 }
 0x554   :  { %6679 = vmatmul.mubr.msk.bf16.vlgmr.msra.gmra.mrb[32].mxu0 %vm783_vm3, %v2017_v16 }
 0x555   :  { %6689 = vmatpush3.bf16.msra.mxu0 %v2121_v22  ;;  %v1809_v24 = vpop.trf.xlu1  ;;  %6690 = vmatprep.mubr.msk.bf16.mxu0 %vm7566_vm0, %v7565_v0 }
 0x556   :  { %v2018_v26 = vpack.c.bf16 %v1809_v24, %v1809_v24  ;;  %6700 = vmatprep.subr.bf16.mxu0 %v7565_v0 }
 0x558   :  { %6685 = vmatmul.mubr.msk.bf16.vlgmr.msra.gmra.mrb[44].mxu1 %vm783_vm3, %v2018_v26 }
 0x559   :  { %6695 = vmatpush3.bf16.msra.mxu1 %v2167_v28  ;;  %v1841_v29 = vpop.trf.xlu0  ;;  %6696 = vmatprep.mubr.msk.bf16.mxu1 %vm7566_vm0, %v7565_v0 }
 0x55a   :  { %v2019_v30 = vpack.c.bf16 %v1841_v29, %v1841_v29  ;;  %6706 = vmatprep.subr.bf16.mxu1 %v7565_v0 }
 0x55c   :  { %6691 = vmatmul.mubr.msk.bf16.vlgmr.msra.gmra.mrb[36].mxu0 %vm783_vm3, %v2019_v30 }
 0x55d   :  { %6701 = vmatpush3.bf16.msra.mxu0 %v2213_v33  ;;  %v1873_v34 = vpop.trf.xlu1  ;;  %6702 = vmatprep.mubr.msk.bf16.mxu0 %vm7566_vm0, %v7565_v0 }
 0x55e   :  { %v2020_v35 = vpack.c.bf16 %v1873_v34, %v1873_v34  ;;  %6712 = vmatprep.subr.bf16.mxu0 %v7565_v0 }
 0x560   :  { %6697 = vmatmul.mubr.msk.bf16.vlgmr.msra.gmra.mrb[48].mxu1 %vm783_vm3, %v2020_v35 }
 0x561   :  { %6707 = vmatpush3.bf16.msra.mxu1 %v2259_v31  ;;  %v1905_v36 = vpop.trf.xlu0  ;;  %6708 = vmatprep.mubr.msk.bf16.mxu1 %vm7566_vm0, %v7565_v0 }
 0x562   :  { %v2021_v37 = vpack.c.bf16 %v1905_v36, %v1905_v36  ;;  %6718 = vmatprep.subr.bf16.mxu1 %v7565_v0 }
 0x564   :  { %6703 = vmatmul.mubr.msk.bf16.vlgmr.msra.gmra.mrb[40].mxu0 %vm783_vm3, %v2021_v37 }
 0x565   :  { %6713 = vmatpush3.bf16.msra.mxu0 %v2305_v39  ;;  %v1937_v40 = vpop.trf.xlu1  ;;  %6714 = vmatprep.mubr.msk.bf16.mxu0 %vm7566_vm0, %v7565_v0 }
 0x566   :  { %v2022_v41 = vpack.c.bf16 %v1937_v40, %v1937_v40  ;;  %6724 = vmatprep.subr.bf16.mxu0 %v7565_v0 }
 0x568   :  { %6709 = vmatmul.mubr.msk.bf16.vlgmr.msra.gmra.mrb[52].mxu1 %vm783_vm3, %v2022_v41 }
 0x569   :  { %6719 = vmatpush3.bf16.msra.mxu1 %v2351_v42  ;;  %v1969_v43 = vpop.trf.xlu0  ;;  %6720 = vmatprep.mubr.msk.bf16.mxu1 %vm7566_vm0, %v7565_v0 }
 0x56a   :  { %v2023_v44 = vpack.c.bf16 %v1969_v43, %v1969_v43  ;;  %6730 = vmatprep.subr.bf16.mxu1 %v7565_v0 }
 0x56c   :  { %6715 = vmatmul.mubr.msk.bf16.vlgmr.msra.gmra.mrb[44].mxu0 %vm783_vm3, %v2023_v44 }
 0x56d   :  { %v2001_v45 = vpop.trf.xlu1  ;;  %6726 = vmatprep.mubr.msk.bf16.mxu0 %vm7566_vm0, %v7565_v0 }
 0x56e   :  { %v2024_v46 = vpack.c.bf16 %v2001_v45, %v2001_v45 }
 0x570   :  { %6721 = vmatmul.mubr.msk.bf16.vlgmr.msra.gmra.mrb[56].mxu1 %vm783_vm3, %v2024_v46 }
 0x571   :  { %6732 = vmatprep.mubr.msk.bf16.mxu1 %vm7566_vm0, %v7565_v0 }
 0x5a6   :  { %v8051_v47 = vpop.f32.mrb[16].mxu0 }
 0x5a7   :  { %v6632_v48 = vpop.f32.mrb[17].mxu0 }
 0x5a8   :  { %v1292_v49 = vpop.f32.mrb[18].mxu0 }
 0x5a9   :  { %v6633_v50 = vpop.f32.mrb[19].mxu0 }
 0x5aa   :  { %v8053_v51 = vpop.f32.mrb[28].mxu1 }
 0x5ab   :  { %v6638_v52 = vpop.f32.mrb[29].mxu1 }
 0x5ac   :  { %v1338_v54 = vpop.f32.mrb[30].mxu1 }
 0x5ad   :  { %v6639_v55 = vpop.f32.mrb[31].mxu1 }
 0x5ae   :  { %v8055_v56 = vpop.f32.mrb[20].mxu0 }
 0x5af   :  { %v6644_v57 = vpop.f32.mrb[21].mxu0 }
 0x5b0   :  { %v1384_v53 = vpop.f32.mrb[22].mxu0 }
 0x5b1   :  { %v6645_v58 = vpop.f32.mrb[23].mxu0 }
 0x5b2   :  { %v8057_v59 = vpop.f32.mrb[32].mxu1 }
 0x5b3   :  { %v6650_v60 = vpop.f32.mrb[33].mxu1 }
 0x5b4   :  { %v1430_v61 = vpop.f32.mrb[34].mxu1 }
 0x5b5   :  { %v6651_v62 = vpop.f32.mrb[35].mxu1 }
 0x5b6   :  { %v8059_v63 = vpop.f32.mrb[24].mxu0 }
 0x5b7   :  { %v6656_v25 = vpop.f32.mrb[25].mxu0 }
 0x5b8   :  { %v1476_v18 = vpop.f32.mrb[26].mxu0 }
 0x5b9   :  { %v6657_v19 = vpop.f32.mrb[27].mxu0 }
 0x5ba   :  { %v8061_v21 = vpop.f32.mrb[36].mxu1 }
 0x5bb   :  { %v6662_v1 = vpop.f32.mrb[37].mxu1 }
 0x5bc   :  { %v1522_v2 = vpop.f32.mrb[38].mxu1 }
 0x5bd   :  { %v6663_v3 = vpop.f32.mrb[39].mxu1 }
 0x5be   :  { %v8063_v4 = vpop.f32.mrb[28].mxu0 }
 0x5bf   :  { %v6668_v5 = vpop.f32.mrb[29].mxu0 }
 0x5c0   :  { %v1568_v6 = vpop.f32.mrb[30].mxu0 }
 0x5c1   :  { %v6669_v7 = vpop.f32.mrb[31].mxu0 }
 0x5c2   :  { %v8065_v8 = vpop.f32.mrb[40].mxu1 }
 0x5c3   :  { %v6674_v9 = vpop.f32.mrb[41].mxu1 }
 0x5c4   :  { %v1614_v10 = vpop.f32.mrb[42].mxu1 }
 0x5c5   :  { %v6675_v11 = vpop.f32.mrb[43].mxu1 }
 0x627   :  { %v2065_v13 = vpop.f32.mrb[32].mxu0 }
 0x628   :  { %v2066_v14 = vadd.f32 %v2065_v13, %v7929_v20  ;;  %v6680_v16 = vpop.f32.mrb[33].mxu0 }
 0x629   :  { %v2068_v17 = vpop.f32.mrb[34].mxu0 }
 0x62a   :  { %v6681_v22 = vpop.f32.mrb[35].mxu0  ;;  %v2393_v24 = vsel %vm783_vm3, %v2066_v14, -inf }
 0x62b   :  { %2394 = vmax.xlane.f32.xlu0 %v2393_v24  ;;  %v2111_v26 = vpop.f32.mrb[44].mxu1 }
 0x62c   :  { %v2112_v27 = vadd.f32 %v2111_v26, %v7929_v20  ;;  %v6686_v28 = vpop.f32.mrb[45].mxu1 }
 0x62d   :  { %v2114_v29 = vpop.f32.mrb[46].mxu1 }
 0x62e   :  { %v2396_v30 = vsel %vm783_vm3, %v2112_v27, -inf  ;;  %v6687_v23 = vpop.f32.mrb[47].mxu1 }
 0x62f   :  { %v2157_v33 = vpop.f32.mrb[36].mxu0  ;;  %2397 = vmax.xlane.f32.xlu1 %v2396_v30 }
 0x630   :  { %v2158_v34 = vadd.f32 %v2157_v33, %v7929_v20  ;;  %v6692_v35 = vpop.f32.mrb[37].mxu0 }
 0x631   :  { %v2160_v32 = vpop.f32.mrb[38].mxu0 }
 0x632   :  { %v6693_v31 = vpop.f32.mrb[39].mxu0  ;;  %v2399_v36 = vsel %vm783_vm3, %v2158_v34, -inf }
 0x633   :  { %2400 = vmax.xlane.f32.xlu1 %v2399_v36  ;;  %v2203_v37 = vpop.f32.mrb[48].mxu1 }
 0x634   :  { %v2204_v38 = vadd.f32 %v2203_v37, %v7929_v20  ;;  %v6698_v39 = vpop.f32.mrb[49].mxu1 }
 0x635   :  { %v2206_v40 = vpop.f32.mrb[50].mxu1 }
 0x636   :  { %v2402_v41 = vsel %vm783_vm3, %v2204_v38, -inf  ;;  %v6699_v42 = vpop.f32.mrb[51].mxu1 }
 0x637   :  { %v2249_v43 = vpop.f32.mrb[40].mxu0  ;;  %2403 = vmax.xlane.f32.xlu0 %v2402_v41 }
 0x638   :  { %v2250_v44 = vadd.f32 %v2249_v43, %v7929_v20  ;;  %v6704_v45 = vpop.f32.mrb[41].mxu0 }
 0x639   :  { %v2252_v46 = vpop.f32.mrb[42].mxu0 }
 0x63a   :  { %v6705_v48 = vpop.f32.mrb[43].mxu0  ;;  %v2405_v49 = vsel %vm783_vm3, %v2250_v44, -inf }
 0x63b   :  { %2406 = vmax.xlane.f32.xlu1 %v2405_v49  ;;  %v2295_v50 = vpop.f32.mrb[52].mxu1 }
 0x63c   :  { %v2296_v52 = vadd.f32 %v2295_v50, %v7929_v20  ;;  %v6710_v54 = vpop.f32.mrb[53].mxu1 }
 0x63d   :  { %v2298_v55 = vpop.f32.mrb[54].mxu1 }
 0x63e   :  { %v2408_v57 = vsel %vm783_vm3, %v2296_v52, -inf  ;;  %v6711_v53 = vpop.f32.mrb[55].mxu1 }
 0x63f   :  { %v2341_v58 = vpop.f32.mrb[44].mxu0  ;;  %2409 = vmax.xlane.f32.xlu0 %v2408_v57 }
 0x640   :  { %v2342_v60 = vadd.f32 %v2341_v58, %v7929_v20  ;;  %v6716_v61 = vpop.f32.mrb[45].mxu0 }
 0x641   :  { %v2344_v62 = vpop.f32.mrb[46].mxu0 }
 0x642   :  { %v6717_v25 = vpop.f32.mrb[47].mxu0  ;;  %v2411_v18 = vsel %vm783_vm3, %v2342_v60, -inf }
 0x643   :  { %2412 = vmax.xlane.f32.xlu1 %v2411_v18  ;;  %v2387_v19 = vpop.f32.mrb[56].mxu1 }
 0x644   :  { %v2388_v1 = vadd.f32 %v2387_v19, %v7929_v20  ;;  %v6722_v2 = vpop.f32.mrb[57].mxu1 }
 0x645   :  { %v2390_v3 = vpop.f32.mrb[58].mxu1 }
 0x646   :  { %v2414_v5 = vsel %vm783_vm3, %v2388_v1, -inf  ;;  %v6723_v6 = vpop.f32.mrb[59].mxu1 }
 0x647   :  { %2415 = vmax.xlane.f32.xlu0 %v2414_v5 }
 0x6b8   :  { %v2395_v7 = vpop.xlane.xlu0 %2394 }
 0x6b9   :  { %v2417_v9 = vsub.f32 %v2066_v14, %v2395_v7 }
 0x6bb   :  { %v2425_v10 = vmul.f32 1.442695, %v2417_v9 }
 0x6bc   :  { %v2398_v11 = vpop.xlane.xlu1 %2397 }
 0x6bd   :  { %7258 = vpow2.f32 %v2425_v10  ;;  %v2418_v13 = vsub.f32 %v2112_v27, %v2398_v11 }
 0x6bf   :  { %v2427_v16 = vmul.f32 1.442695, %v2418_v13 }
 0x6c0   :  { %v2401_v17 = vpop.xlane.xlu1 %2400 }
 0x6c1   :  { %7260 = vpow2.f32 %v2427_v16  ;;  %v2419_v22 = vsub.f32 %v2158_v34, %v2401_v17 }
 0x6c3   :  { %v2429_v24 = vmul.f32 1.442695, %v2419_v22 }
 0x6c4   :  { %v2404_v26 = vpop.xlane.xlu0 %2403 }
 0x6c5   :  { %7262 = vpow2.f32 %v2429_v24  ;;  %v2420_v20 = vsub.f32 %v2204_v38, %v2404_v26 }
 0x6c7   :  { %v7259_v28 = vpop.eup %7258  ;;  %v2431_v29 = vmul.f32 1.442695, %v2420_v20 }
 0x6c8   :  { %v2407_v30 = vpop.xlane.xlu1 %2406  ;;  %v2441_v23 = vsel %vm783_vm3, %v7259_v28, 0.0 }
 0x6c9   :  { %7264 = vpow2.f32 %v2431_v29  ;;  %v2421_v33 = vsub.f32 %v2250_v44, %v2407_v30  ;;  %2442 = vadd.xlane.f32.xlu1 %v2441_v23 }
 0x6cb   :  { %v7261_v14 = vpop.eup %7260  ;;  %v2433_v35 = vmul.f32 1.442695, %v2421_v33 }
 0x6cc   :  { %v2410_v32 = vpop.xlane.xlu0 %2409  ;;  %v2444_v27 = vsel %vm783_vm3, %v7261_v14, 0.0 }
 0x6cd   :  { %7266 = vpow2.f32 %v2433_v35  ;;  %v2422_v31 = vsub.f32 %v2296_v52, %v2410_v32  ;;  %2445 = vadd.xlane.f32.xlu0 %v2444_v27 }
 0x6cf   :  { %v7263_v34 = vpop.eup %7262  ;;  %v2435_v36 = vmul.f32 1.442695, %v2422_v31 }
 0x6d0   :  { %v2413_v37 = vpop.xlane.xlu1 %2412  ;;  %v2447_v38 = vsel %vm783_vm3, %v7263_v34, 0.0 }
 0x6d1   :  { %7268 = vpow2.f32 %v2435_v36  ;;  %v2423_v39 = vsub.f32 %v2342_v60, %v2413_v37  ;;  %2448 = vadd.xlane.f32.xlu1 %v2447_v38 }
 0x6d3   :  { %v7265_v40 = vpop.eup %7264  ;;  %v2437_v41 = vmul.f32 1.442695, %v2423_v39 }
 0x6d4   :  { %v2416_v42 = vpop.xlane.xlu0 %2415  ;;  %v2450_v43 = vsel %vm783_vm3, %v7265_v40, 0.0 }
 0x6d5   :  { %7270 = vpow2.f32 %v2437_v41  ;;  %v2424_v44 = vsub.f32 %v2388_v1, %v2416_v42  ;;  %2451 = vadd.xlane.f32.xlu0 %v2450_v43 }
 0x6d7   :  { %v7267_v45 = vpop.eup %7266  ;;  %v2439_v46 = vmul.f32 1.442695, %v2424_v44 }
 0x6d8   :  { %v2453_v48 = vsel %vm783_vm3, %v7267_v45, 0.0 }
 0x6d9   :  { %7272 = vpow2.f32 %v2439_v46  ;;  %2454 = vadd.xlane.f32.xlu1 %v2453_v48 }
 0x6db   :  { %v7269_v49 = vpop.eup %7268 }
 0x6dc   :  { %v2456_v50 = vsel %vm783_vm3, %v7269_v49, 0.0 }
 0x6dd   :  { %2457 = vadd.xlane.f32.xlu0 %v2456_v50 }
 0x6df   :  { %v8089_v52 = vpop.eup %7270 }
 0x6e0   :  { %v2459_v54 = vsel %vm783_vm3, %v8089_v52, 0.0 }
 0x6e1   :  { %2460 = vadd.xlane.f32.xlu1 %v2459_v54 }
 0x6e3   :  { %v8093_v55 = vpop.eup %7272 }
 0x6e4   :  { %v2462_v57 = vsel %vm783_vm3, %v8093_v55, 0.0 }
 0x6e5   :  { %2463 = vadd.xlane.f32.xlu0 %v2462_v57 }
 0x714   :  { %1689 = vxpose.xlu1.b32.start.end [1/1] (short) (narrow) %v7924_v12, 64 }
 0x756   :  { %v2443_v53 = vpop.xlane.xlu1 %2442 }
 0x757   :  { %7274 = vrcp.f32 %v2443_v53 }
 0x75a   :  { %v2446_v58 = vpop.xlane.xlu0 %2445 }
 0x75b   :  { %7276 = vrcp.f32 %v2446_v58 }
 0x75e   :  { %v2449_v12 = vpop.xlane.xlu1 %2448 }
 0x75f   :  { %7278 = vrcp.f32 %v2449_v12 }
 0x761   :  { %v7275_v60 = vpop.eup %7274 }
 0x762   :  { %v2473_v61 = vmul.f32 %v7275_v60, %v7259_v28  ;;  %v2452_v3 = vpop.xlane.xlu0 %2451  ;;  %v7178_v60 = vld [vmem:[%s8648_s26] sm:$0xff]  }
 0x763   :  { %7280 = vrcp.f32 %v2452_v3  ;;  %v7181_v3 = vld [vmem:[%s8648_s26 + $0x18] sm:$0xff]  }
 0x764   :  { %v2481_v62 = vpack.c.bf16 %v2473_v61, %v2473_v61  ;;  %v7179_v61 = vld [vmem:[%s8648_s26 + $0x8] sm:$0xff]  }
 0x765   :  { %v7277_v25 = vpop.eup %7276 }
 0x766   :  { %v2493_v18 = vsel %vm783_vm3, %v2481_v62, 0  ;;  %v2474_v19 = vmul.f32 %v7277_v25, %v7261_v14  ;;  %v2455_v5 = vpop.xlane.xlu1 %2454  ;;  %v7180_v62 = vld [vmem:[%s8648_s26 + $0x10] sm:$0xff]  }
 0x767   :  { %6725 = vmatpush3.bf16.xpose.msra.mxu0 %v2493_v18  ;;  %7282 = vrcp.f32 %v2455_v5 }
 0x768   :  { %v2482_v1 = vpack.c.bf16 %v2474_v19, %v2474_v19  ;;  %6736 = vmatprep.subr.bf16.mxu0 %v7565_v0 }
 0x769   :  { %v7279_v7 = vpop.eup %7278 }
 0x76a   :  { %v2539_v2 = vsel %vm783_vm3, %v2482_v1, 0  ;;  %v2458_v6 = vpop.xlane.xlu0 %2457  ;;  %v2475_v10 = vmul.f32 %v7279_v7, %v7263_v34 }
 0x76b   :  { %6731 = vmatpush3.bf16.xpose.msra.mxu1 %v2539_v2  ;;  %7284 = vrcp.f32 %v2458_v6 }
 0x76c   :  { %6742 = vmatprep.subr.bf16.mxu1 %v7565_v0  ;;  %v2483_v16 = vpack.c.bf16 %v2475_v10, %v2475_v10 }
 0x76d   :  { %v7281_v11 = vpop.eup %7280 }
 0x76e   :  { %v2461_v9 = vpop.xlane.xlu1 %2460  ;;  %v2476_v17 = vmul.f32 %v7281_v11, %v7265_v40  ;;  %v2585_v20 = vsel %vm783_vm3, %v2483_v16, 0 }
 0x76f   :  { %7286 = vrcp.f32 %v2461_v9 }
 0x770   :  { %v2484_v28 = vpack.c.bf16 %v2476_v17, %v2476_v17 }
 0x771   :  { %v7283_v22 = vpop.eup %7282 }
 0x772   :  { %v2464_v13 = vpop.xlane.xlu0 %2463  ;;  %v2477_v29 = vmul.f32 %v7283_v22, %v7267_v45  ;;  %v2631_v14 = vsel %vm783_vm3, %v2484_v28, 0 }
 0x773   :  { %7288 = vrcp.f32 %v2464_v13 }
 0x774   :  { %v2485_v35 = vpack.c.bf16 %v2477_v29, %v2477_v29 }
 0x775   :  { %v7285_v30 = vpop.eup %7284 }
 0x776   :  { %v2478_v32 = vmul.f32 %v7285_v30, %v7269_v49  ;;  %v2677_v36 = vsel %vm783_vm3, %v2485_v35, 0  ;;  %v179_v35 = vld [vmem:[#allocation5 + $0x8] sm:$0xff] }
 0x778   :  { %v2486_v37 = vpack.c.bf16 %v2478_v32, %v2478_v32 }
 0x779   :  { %v7287_v27 = vpop.eup %7286 }
 0x77a   :  { %v2479_v38 = vmul.f32 %v7287_v27, %v8089_v52  ;;  %v2723_v42 = vsel %vm783_vm3, %v2486_v37, 0 }
 0x77c   :  { %v2487_v43 = vpack.c.bf16 %v2479_v38, %v2479_v38 }
 0x77d   :  { %v7289_v39 = vpop.eup %7288 }
 0x77e   :  { %v2480_v44 = vmul.f32 %v7289_v39, %v8093_v55  ;;  %v2769_v48 = vsel %vm783_vm3, %v2487_v43, 0 }
 0x780   :  { %v2488_v49 = vpack.c.bf16 %v2480_v44, %v2480_v44 }
 0x782   :  { %v2815_v54 = vsel %vm783_vm3, %v2488_v49, 0 }
 0x794   :  { %v1705_v24 = vpop.trf.xlu1 }
 0x795   :  { %v1721_v26 = vpack.c.bf16 %v1705_v24, %v1705_v24 }
 0x797   :  { %6727 = vmatmul.mubr.msk.bf16.vlgmr.msra.gmra.mrb[48].mxu0 %vm783_vm3, %v1721_v26 }
 0x798   :  { %6737 = vmatpush3.bf16.xpose.msra.mxu0 %v2585_v20  ;;  %v1706_v23 = vpop.trf.xlu1  ;;  %6738 = vmatprep.mubr.msk.bf16.mxu0 %vm7566_vm0, %v7565_v0 }
 0x799   :  { %v1722_v33 = vpack.c.bf16 %v1706_v23, %v1706_v23  ;;  %6748 = vmatprep.subr.bf16.mxu0 %v7565_v0 }
 0x79b   :  { %6733 = vmatmul.mubr.msk.bf16.vlgmr.msra.gmra.mrb[60].mxu1 %vm783_vm3, %v1722_v33 }
 0x79c   :  { %6743 = vmatpush3.bf16.xpose.msra.mxu1 %v2631_v14  ;;  %v1707_v31 = vpop.trf.xlu1  ;;  %6744 = vmatprep.mubr.msk.bf16.mxu1 %vm7566_vm0, %v7565_v0  ;;  %v178_v14 = vld [vmem:[#allocation5] sm:$0xff] }
 0x79d   :  { %v1723_v34 = vpack.c.bf16 %v1707_v31, %v1707_v31  ;;  %6754 = vmatprep.subr.bf16.mxu1 %v7565_v0 }
 0x79f   :  { %6739 = vmatmul.mubr.msk.bf16.vlgmr.msra.gmra.mrb[52].mxu0 %vm783_vm3, %v1723_v34 }
 0x7a0   :  { %6749 = vmatpush3.bf16.xpose.msra.mxu0 %v2677_v36  ;;  %v1708_v40 = vpop.trf.xlu1  ;;  %6750 = vmatprep.mubr.msk.bf16.mxu0 %vm7566_vm0, %v7565_v0  ;;  %v180_v36 = vpack.c.bf16 %v179_v35, %v178_v14  ;;  %v7191_v14 = vld [vmem:[#allocation10 + $0x8] sm:$0xff]   ;;  %v7192_v35 = vld [vmem:[#allocation10 + $0x10] sm:$0xff]  }
 0x7a1   :  { %v1724_v41 = vpack.c.bf16 %v1708_v40, %v1708_v40  ;;  %6760 = vmatprep.subr.bf16.mxu0 %v7565_v0 }
 0x7a3   :  { %6745 = vmatmul.mubr.msk.bf16.vlgmr.msra.gmra.mrb[64].mxu1 %vm783_vm3, %v1724_v41 }
 0x7a4   :  { %6755 = vmatpush3.bf16.xpose.msra.mxu1 %v2723_v42  ;;  %v1709_v45 = vpop.trf.xlu1  ;;  %6756 = vmatprep.mubr.msk.bf16.mxu1 %vm7566_vm0, %v7565_v0 }
 0x7a5   :  { %v1725_v46 = vpack.c.bf16 %v1709_v45, %v1709_v45  ;;  %6766 = vmatprep.subr.bf16.mxu1 %v7565_v0 }
 0x7a7   :  { %6751 = vmatmul.mubr.msk.bf16.vlgmr.msra.gmra.mrb[56].mxu0 %vm783_vm3, %v1725_v46 }
 0x7a8   :  { %6761 = vmatpush3.bf16.xpose.msra.mxu0 %v2769_v48  ;;  %v1710_v50 = vpop.trf.xlu1  ;;  %6762 = vmatprep.mubr.msk.bf16.mxu0 %vm7566_vm0, %v7565_v0 }
 0x7a9   :  { %v1726_v52 = vpack.c.bf16 %v1710_v50, %v1710_v50  ;;  %6772 = vmatprep.subr.bf16.mxu0 %v7565_v0 }
 0x7ab   :  { %6757 = vmatmul.mubr.msk.bf16.vlgmr.msra.gmra.mrb[68].mxu1 %vm783_vm3, %v1726_v52  ;;  %v7186_v52 = vld [vmem:[#allocation8] sm:$0xff]  }
 0x7ac   :  { %6767 = vmatpush3.bf16.xpose.msra.mxu1 %v2815_v54  ;;  %v1711_v55 = vpop.trf.xlu1  ;;  %6768 = vmatprep.mubr.msk.bf16.mxu1 %vm7566_vm0, %v7565_v0  ;;  %v7187_v54 = vld [vmem:[#allocation8 + $0x8] sm:$0xff]  }
 0x7ad   :  { %v1727_v57 = vpack.c.bf16 %v1711_v55, %v1711_v55  ;;  %6784 = vmatprep.subr.bf16.mxu1 %v7565_v0  ;;  %v7189_v55 = vld [vmem:[#allocation8 + $0x18] sm:$0xff]  }
 0x7af   :  { %6763 = vmatmul.mubr.msk.bf16.vlgmr.msra.gmra.mrb[60].mxu0 %vm783_vm3, %v1727_v57  ;;  %v181_v57 = vld [vmem:[#allocation7] sm:$0xff] }
 0x7b0   :  { %v1712_v53 = vpop.trf.xlu1  ;;  %6780 = vmatprep.mubr.msk.bf16.mxu0 %vm7566_vm0, %v7565_v0  ;;  %6773 = vmatpush3.bf16.msra.mxu0 %v7178_v60  ;;  %v6263_v60 = vld [vmem:[%s8649_s25] ss:$0 sm:$0xff] }
 0x7b1   :  { %v1728_v58 = vpack.c.bf16 %v1712_v53, %v1712_v53  ;;  %6774 = vmatprep.subr.bf16.mxu0 %v7565_v0  ;;  %v182_v53 = vld [vmem:[#allocation7 + $0x8] sm:$0xff] }
 0x7b3   :  { %6769 = vmatmul.mubr.msk.bf16.vlgmr.msra.gmra.mrb[72].mxu1 %vm783_vm3, %v1728_v58  ;;  %v183_v58 = vpack.c.bf16 %v182_v53, %v181_v57 }
 0x7b4   :  { %6792 = vmatprep.mubr.msk.bf16.mxu1 %vm7566_vm0, %v7565_v0  ;;  %6775 = vmatpush3.bf16.msra.mxu0 %v7179_v61 }
 0x7b5   :  { %6776 = vmatprep.subr.bf16.mxu0 %v7565_v0 }
 0x7b8   :  { %6777 = vmatpush3.bf16.msra.mxu0 %v7180_v62 }
 0x7b9   :  { %6778 = vmatprep.subr.bf16.mxu0 %v7565_v0 }
 0x7bc   :  { %6779 = vmatpush3.bf16.msra.mxu0 %v7181_v3 }
 0x7bd   :  { %6796 = vmatprep.subr.bf16.mxu0 %v7565_v0 }
 0x86a   :  { %v2529_v25 = vpop.f32.mrb[48].mxu0 }
 0x86b   :  { %v7082_v18 = vpack.i.bf16 %v2529_v25, %v8051_v47  ;;  %v6728_v19 = vpop.f32.mrb[49].mxu0  ;;  %v7182_v47 = vld [vmem:[%s8601_s10] sm:$0xff]  }
 0x86c   :  { %v2532_v1 = vpop.f32.mrb[50].mxu0  ;;  %6785 = vmatpush3.bf16.msra.mxu1 %v7182_v47 }
 0x86d   :  { %v6729_v2 = vpop.f32.mrb[51].mxu0  ;;  %7083 = vxpose.xlu0.b32.start [1/8] (short) (narrow) %v7082_v18, 8  ;;  %6786 = vmatprep.subr.bf16.mxu1 %v7565_v0 }
 0x86e   :  { %v2575_v12 = vpop.f32.mrb[60].mxu1  ;;  %v7366_v2 = vld [vmem:[#allocation2] sm:$0xff] }
 0x86f   :  { %v7084_v5 = vpack.i.bf16 %v2575_v12, %v8053_v51  ;;  %v6734_v6 = vpop.f32.mrb[61].mxu1  ;;  %v7183_v51 = vld [vmem:[%s8601_s10 + $0x8] sm:$0xff]  }
 0x870   :  { %v2578_v7 = vpop.f32.mrb[62].mxu1  ;;  %6787 = vmatpush3.bf16.msra.mxu1 %v7183_v51 }
 0x871   :  { %7085 = vxpose.xlu0.b32.cont [2/8] (short) (narrow) %v7084_v5, 8  ;;  %v6735_v9 = vpop.f32.mrb[63].mxu1  ;;  %6788 = vmatprep.subr.bf16.mxu1 %v7565_v0  ;;  %v7367_v5 = vld [vmem:[#allocation2 + $0x8] sm:$0xff] }
 0x872   :  { %v2621_v10 = vpop.f32.mrb[52].mxu0 }
 0x873   :  { %v7086_v11 = vpack.i.bf16 %v2621_v10, %v8055_v56  ;;  %v6740_v13 = vpop.f32.mrb[53].mxu0  ;;  %v7184_v56 = vld [vmem:[%s8601_s10 + $0x10] sm:$0xff]  }
 0x874   :  { %v2624_v16 = vpop.f32.mrb[54].mxu0  ;;  %6789 = vmatpush3.bf16.msra.mxu1 %v7184_v56 }
 0x875   :  { %v6741_v17 = vpop.f32.mrb[55].mxu0  ;;  %7087 = vxpose.xlu0.b32.cont [3/8] (short) (narrow) %v7086_v11, 8  ;;  %6790 = vmatprep.subr.bf16.mxu1 %v7565_v0 }
 0x876   :  { %v2667_v22 = vpop.f32.mrb[64].mxu1 }
 0x877   :  { %v7088_v24 = vpack.i.bf16 %v2667_v22, %v8057_v59  ;;  %v6746_v26 = vpop.f32.mrb[65].mxu1  ;;  %v7185_v59 = vld [vmem:[%s8601_s10 + $0x18] sm:$0xff]  }
 0x878   :  { %v2670_v20 = vpop.f32.mrb[66].mxu1  ;;  %6791 = vmatpush3.bf16.msra.mxu1 %v7185_v59  ;;  %v7190_v59 = vld [vmem:[#allocation10] sm:$0xff]  }
 0x879   :  { %7089 = vxpose.xlu0.b32.cont [4/8] (short) (narrow) %v7088_v24, 8  ;;  %v6747_v28 = vpop.f32.mrb[67].mxu1  ;;  %6808 = vmatprep.subr.bf16.mxu1 %v7565_v0 }
 0x87a   :  { %v2713_v29 = vpop.f32.mrb[56].mxu0 }
 0x87b   :  { %v7090_v30 = vpack.i.bf16 %v2713_v29, %v8059_v63  ;;  %v6752_v23 = vpop.f32.mrb[57].mxu0  ;;  %6793 = vmatmul.mubr.msk.bf16.vlgmr.msra.gmra.mrb[76].mxu1 %vm216_vm1, %v180_v36 }
 0x87c   :  { %v2716_v33 = vpop.f32.mrb[58].mxu0  ;;  %6816 = vmatprep.mubr.msk.bf16.mxu1 %vm7566_vm0, %v7565_v0  ;;  %6809 = vmatpush3.bf16.msra.mxu1 %v7190_v59 }
 0x87d   :  { %v6753_v32 = vpop.f32.mrb[59].mxu0  ;;  %7091 = vxpose.xlu0.b32.cont [5/8] (short) (narrow) %v7090_v30, 8  ;;  %6810 = vmatprep.subr.bf16.mxu1 %v7565_v0 }
 0x87e   :  { %v2759_v27 = vpop.f32.mrb[68].mxu1  ;;  %v7193_v32 = vld [vmem:[#allocation10 + $0x18] sm:$0xff]  }
 0x87f   :  { %v7092_v31 = vpack.i.bf16 %v2759_v27, %v8061_v21  ;;  %v6758_v34 = vpop.f32.mrb[69].mxu1 }
 0x880   :  { %v2762_v37 = vpop.f32.mrb[70].mxu1  ;;  %6811 = vmatpush3.bf16.msra.mxu1 %v7191_v14 }
 0x881   :  { %7093 = vxpose.xlu0.b32.cont [6/8] (short) (narrow) %v7092_v31, 8  ;;  %v6759_v63 = vpop.f32.mrb[71].mxu1  ;;  %6812 = vmatprep.subr.bf16.mxu1 %v7565_v0 }
 0x882   :  { %v2805_v38 = vpop.f32.mrb[60].mxu0 }
 0x883   :  { %v7094_v39 = vpack.i.bf16 %v2805_v38, %v8063_v4  ;;  %v6764_v40 = vpop.f32.mrb[61].mxu0 }
 0x884   :  { %v2808_v41 = vpop.f32.mrb[62].mxu0  ;;  %6813 = vmatpush3.bf16.msra.mxu1 %v7192_v35 }
 0x885   :  { %v6765_v42 = vpop.f32.mrb[63].mxu0  ;;  %7095 = vxpose.xlu0.b32.cont [7/8] (short) (narrow) %v7094_v39, 8  ;;  %6814 = vmatprep.subr.bf16.mxu1 %v7565_v0  ;;  %v6269_v39 = vld [vmem:[%s8599_s8] ss:$0 sm:$0xff] }
 0x886   :  { %v2851_v21 = vpop.f32.mrb[72].mxu1 }
 0x887   :  { %v7096_v43 = vpack.i.bf16 %v2851_v21, %v8065_v8  ;;  %v6770_v44 = vpop.f32.mrb[73].mxu1  ;;  %v7188_v8 = vld [vmem:[#allocation8 + $0x10] sm:$0xff]  }
 0x888   :  { %v2854_v45 = vpop.f32.mrb[74].mxu1  ;;  %6815 = vmatpush3.bf16.msra.mxu1 %v7193_v32 }
 0x889   :  { %7097 = vxpose.xlu0.b32.end [8/8] (short) (narrow) %v7096_v43, 8  ;;  %v6771_v46 = vpop.f32.mrb[75].mxu1  ;;  %6826 = vmatprep.subr.bf16.mxu1 %v7565_v0  ;;  %v6270_v43 = vld [vmem:[%s8600_s9] ss:$0 sm:$0xff] }
 0x8ed   :  { %v7098_v48 = vpop.trf.xlu0 }
 0x8ee   :  { %v7102_v49 = vunpack.i.h.bf16 %v7098_v48  ;;  %v7099_v50 = vunpack.i.l.bf16 %v7098_v48 }
 0x8f0   :  { %v2889_v4 = vpack.c.bf16 %v7102_v49, %v7099_v50 }
 0x8f2   :  { %6781 = vmatmul.mubr.msk.bf16.vlgmr.msra.gmra.mrb[64].mxu0 %vm216_vm1, %v2889_v4 }
 0x8f3   :  { %6804 = vmatprep.mubr.msk.bf16.mxu0 %vm7566_vm0, %v7565_v0  ;;  %6797 = vmatpush3.bf16.msra.mxu0 %v7186_v52 }
 0x8f4   :  { %6798 = vmatprep.subr.bf16.mxu0 %v7565_v0 }
 0x8f7   :  { %6799 = vmatpush3.bf16.msra.mxu0 %v7187_v54 }
 0x8f8   :  { %6800 = vmatprep.subr.bf16.mxu0 %v7565_v0 }
 0x8fb   :  { %6801 = vmatpush3.bf16.msra.mxu0 %v7188_v8 }
 0x8fc   :  { %6802 = vmatprep.subr.bf16.mxu0 %v7565_v0 }
 0x8ff   :  { %6803 = vmatpush3.bf16.msra.mxu0 %v7189_v55 }
 0x900   :  { %6820 = vmatprep.subr.bf16.mxu0 %v7565_v0 }
 0x902   :  { %6805 = vmatmul.mubr.msk.bf16.vlgmr.msra.gmra.mrb[68].mxu0 %vm216_vm1, %v183_v58 }
 0x903   :  { %6822 = vmatprep.mubr.msk.bf16.mxu0 %vm7566_vm0, %v7565_v0 }
 0x94e   :  { %v3090_v9 = vpop.f32.mrb[76].mxu1 }
 0x94f   :  { %v6794_v10 = vpop.f32.mrb[77].mxu1 }
 0x950   :  { %v8198_v47 = vpop.f32.mrb[78].mxu1 }
 0x951   :  { %v6795_v11 = vpop.f32.mrb[79].mxu1 }
 0x9c5   :  { %v2966_v61 = vpop.f32.mrb[64].mxu0 }
 0x9c6   :  { %v2967_v62 = vadd.f32 %v6263_v60, %v2966_v61  ;;  %v6782_v25 = vpop.f32.mrb[65].mxu0 }
 0x9c7   :  { %v2969_v18 = vpop.f32.mrb[66].mxu0 }
 0x9c8   :  { %v2970_v19 = vadd.f32 %v6263_v60, %v2969_v18  ;;  %v6783_v1 = vpop.f32.mrb[67].mxu0  ;;  %v2973_v12 = vadd.f32 %v7366_v2, %v2967_v62 }
 0x9ca   :  { %v2975_v3 = vsel %vm216_vm1, %v2973_v12, 0.0  ;;  %v2974_v6 = vadd.f32 %v7367_v5, %v2970_v19 }
 0x9cb   :  { %2976 = vadd.xlane.f32.xlu1 %v2975_v3 }
 0x9cc   :  { %v2978_v7 = vsel %vm216_vm1, %v2974_v6, 0.0 }
 0x9cd   :  { %2979 = vadd.xlane.f32.xlu0 %v2978_v7 }
 0x9d5   :  { %v3166_v29 = vpop.f32.mrb[68].mxu0 }
 0x9d6   :  { %v6806_v30 = vpop.f32.mrb[69].mxu0 }
 0x9d7   :  { %v8202_v23 = vpop.f32.mrb[70].mxu0 }
 0x9d8   :  { %v6807_v33 = vpop.f32.mrb[71].mxu0 }
 0xa58   :  { %v2977_v13 = vpop.xlane.xlu1 %2976 }
 0xa59   :  { %v2982_v16 = vmul.f32 0.015625, %v2977_v13 }
 0xa5a   :  { %v2980_v51 = vpop.xlane.xlu0 %2979 }
 0xa5b   :  { %v2984_v17 = vsub.f32 %v2973_v12, %v2982_v16  ;;  %v2983_v22 = vmul.f32 0.015625, %v2980_v51 }
 0xa5d   :  { %v2985_v24 = vsub.f32 %v2974_v6, %v2983_v22  ;;  %v2986_v26 = vmul.f32 %v2984_v17, %v2984_v17 }
 0xa5f   :  { %v2988_v20 = vsel %vm216_vm1, %v2986_v26, 0.0  ;;  %v2987_v56 = vmul.f32 %v2985_v24, %v2985_v24 }
 0xa60   :  { %2989 = vadd.xlane.f32.xlu1 %v2988_v20 }
 0xa61   :  { %v2991_v28 = vsel %vm216_vm1, %v2987_v56, 0.0 }
 0xa62   :  { %2992 = vadd.xlane.f32.xlu0 %v2991_v28 }
 0xa8f   :  { %3249 = vxpose.xlu0.b32.start.end [1/1] (short) (narrow) %v3166_v29, 64 }
 0xa93   :  { %3329 = vxpose.xlu1.b32.start.end [1/1] (short) (narrow) %v3090_v9, 64 }
 0xaed   :  { %v2990_v27 = vpop.xlane.xlu1 %2989 }
 0xaee   :  { %v2994_v31 = vmul.f32 0.015625, %v2990_v27 }
 0xaef   :  { %v2993_v34 = vpop.xlane.xlu0 %2992 }
 0xaf0   :  { %v2996_v36 = vadd.f32 1e-05, %v2994_v31  ;;  %v2995_v37 = vmul.f32 0.015625, %v2993_v34 }
 0xaf2   :  { %7290 = vrsqrt.f32 %v2996_v36  ;;  %v2997_v63 = vadd.f32 1e-05, %v2995_v37 }
 0xaf4   :  { %7292 = vrsqrt.f32 %v2997_v63 }
 0xafc   :  { %v7291_v38 = vpop.eup %7290 }
 0xafd   :  { %v3000_v40 = vmul.f32 %v7291_v38, %v2984_v17 }
 0xafe   :  { %v7293_v41 = vpop.eup %7292 }
 0xaff   :  { %v3001_v42 = vmul.f32 %v7293_v41, %v2985_v24  ;;  %v3009_v21 = vmul.f32 %v6269_v39, %v3000_v40 }
 0xb01   :  { %v3010_v44 = vmul.f32 %v6269_v39, %v3001_v42  ;;  %v8214_v45 = vadd.f32 %v6270_v43, %v3009_v21 }
 0xb03   :  { %v8216_v46 = vadd.f32 %v6270_v43, %v3010_v44 }
 0xb05   :  { %v3020_v48 = vpack.c.bf16 %v8216_v46, %v8214_v45 }
 0xb07   :  { %6817 = vmatmul.mubr.msk.bf16.vlgmr.msra.gmra.mrb[80].mxu1 %vm216_vm1, %v3020_v48 }
 0xb08   :  { %6828 = vmatprep.mubr.msk.bf16.mxu1 %vm7566_vm0, %v7565_v0 }
 0xb0f   :  { %v3265_v49 = vpop.trf.xlu0 }
 0xb10   :  { %v3281_v50 = vpack.c.bf16 %v3265_v49, %v3265_v49 }
 0xb12   :  { %v3629_v4 = vsel %vm787_vm2, %v3281_v50, 0 }
 0xb13   :  { %v3345_v52 = vpop.trf.xlu1  ;;  %6821 = vmatpush3.bf16.msra.mxu0 %v3629_v4  ;;  %v3266_v54 = vpop.trf.xlu0 }
 0xb14   :  { %3361 = vxpose.xlu0.b32.start.end [1/1] (short) (narrow) %v3345_v52, 8  ;;  %v3282_v8 = vpack.c.bf16 %v3266_v54, %v3266_v54  ;;  %6832 = vmatprep.subr.bf16.mxu0 %v7565_v0 }
 0xb16   :  { %v3675_v55 = vsel %vm787_vm2, %v3282_v8, 0 }
 0xb17   :  { %v3346_v57 = vpop.trf.xlu1  ;;  %6827 = vmatpush3.bf16.msra.mxu1 %v3675_v55  ;;  %v3267_v18 = vpop.trf.xlu0 }
 0xb18   :  { %3393 = vxpose.xlu1.b32.start.end [1/1] (short) (narrow) %v3346_v57, 8  ;;  %6838 = vmatprep.subr.bf16.mxu1 %v7565_v0  ;;  %v3283_v5 = vpack.c.bf16 %v3267_v18, %v3267_v18 }
 0xb1a   :  { %v3721_v9 = vsel %vm787_vm2, %v3283_v5, 0 }
 0xb1b   :  { %v3347_v53 = vpop.trf.xlu1  ;;  %v3268_v19 = vpop.trf.xlu0 }
 0xb1c   :  { %3425 = vxpose.xlu0.b32.start.end [1/1] (short) (narrow) %v3347_v53, 8  ;;  %v3284_v10 = vpack.c.bf16 %v3268_v19, %v3268_v19 }
 0xb1e   :  { %v3767_v16 = vsel %vm787_vm2, %v3284_v10, 0 }
 0xb1f   :  { %v3348_v58 = vpop.trf.xlu1  ;;  %v3269_v1 = vpop.trf.xlu0 }
 0xb20   :  { %3457 = vxpose.xlu1.b32.start.end [1/1] (short) (narrow) %v3348_v58, 8  ;;  %v3285_v51 = vpack.c.bf16 %v3269_v1, %v3269_v1 }
 0xb22   :  { %v3813_v24 = vsel %vm787_vm2, %v3285_v51, 0 }
 0xb23   :  { %v3349_v60 = vpop.trf.xlu1  ;;  %v3270_v2 = vpop.trf.xlu0 }
 0xb24   :  { %3489 = vxpose.xlu0.b32.start.end [1/1] (short) (narrow) %v3349_v60, 8  ;;  %v3286_v26 = vpack.c.bf16 %v3270_v2, %v3270_v2 }
 0xb26   :  { %v3859_v28 = vsel %vm787_vm2, %v3286_v26, 0 }
 0xb27   :  { %v3350_v61 = vpop.trf.xlu1  ;;  %v3271_v12 = vpop.trf.xlu0 }
 0xb28   :  { %3521 = vxpose.xlu1.b32.start.end [1/1] (short) (narrow) %v3350_v61, 8  ;;  %v3287_v29 = vpack.c.bf16 %v3271_v12, %v3271_v12 }
 0xb2a   :  { %v3905_v59 = vsel %vm787_vm2, %v3287_v29, 0 }
 0xb2b   :  { %v3351_v62 = vpop.trf.xlu1  ;;  %v3272_v3 = vpop.trf.xlu0 }
 0xb2c   :  { %3553 = vxpose.xlu0.b32.start.end [1/1] (short) (narrow) %v3351_v62, 8  ;;  %v3288_v14 = vpack.c.bf16 %v3272_v3, %v3272_v3 }
 0xb2e   :  { %v3951_v27 = vsel %vm787_vm2, %v3288_v14, 0 }
 0xb2f   :  { %v3352_v25 = vpop.trf.xlu1 }
 0xb30   :  { %3585 = vxpose.xlu1.b32.start.end [1/1] (short) (narrow) %v3352_v25, 8 }
 0xb94   :  { %v3377_v6 = vpop.trf.xlu0 }
 0xb95   :  { %v3617_v7 = vpack.c.bf16 %v3377_v6, %v3377_v6 }
 0xb97   :  { %6823 = vmatmul.mubr.msk.bf16.vlgmr.msra.gmra.mrb[72].mxu0 %vm783_vm3, %v3617_v7 }
 0xb98   :  { %6833 = vmatpush3.bf16.msra.mxu0 %v3721_v9  ;;  %v3409_v11 = vpop.trf.xlu1  ;;  %6834 = vmatprep.mubr.msk.bf16.mxu0 %vm7566_vm0, %v7565_v0 }
 0xb99   :  { %v3618_v13 = vpack.c.bf16 %v3409_v11, %v3409_v11  ;;  %6844 = vmatprep.subr.bf16.mxu0 %v7565_v0 }
 0xb9b   :  { %6829 = vmatmul.mubr.msk.bf16.vlgmr.msra.gmra.mrb[84].mxu1 %vm783_vm3, %v3618_v13 }
 0xb9c   :  { %6839 = vmatpush3.bf16.msra.mxu1 %v3767_v16  ;;  %v3441_v17 = vpop.trf.xlu0  ;;  %6840 = vmatprep.mubr.msk.bf16.mxu1 %vm7566_vm0, %v7565_v0 }
 0xb9d   :  { %v3619_v22 = vpack.c.bf16 %v3441_v17, %v3441_v17  ;;  %6850 = vmatprep.subr.bf16.mxu1 %v7565_v0 }
 0xb9f   :  { %6835 = vmatmul.mubr.msk.bf16.vlgmr.msra.gmra.mrb[76].mxu0 %vm783_vm3, %v3619_v22 }
 0xba0   :  { %6845 = vmatpush3.bf16.msra.mxu0 %v3813_v24  ;;  %v3473_v20 = vpop.trf.xlu1  ;;  %6846 = vmatprep.mubr.msk.bf16.mxu0 %vm7566_vm0, %v7565_v0 }
 0xba1   :  { %v3620_v56 = vpack.c.bf16 %v3473_v20, %v3473_v20  ;;  %6856 = vmatprep.subr.bf16.mxu0 %v7565_v0 }
 0xba3   :  { %6841 = vmatmul.mubr.msk.bf16.vlgmr.msra.gmra.mrb[88].mxu1 %vm783_vm3, %v3620_v56 }
 0xba4   :  { %6851 = vmatpush3.bf16.msra.mxu1 %v3859_v28  ;;  %v3505_v30 = vpop.trf.xlu0  ;;  %6852 = vmatprep.mubr.msk.bf16.mxu1 %vm7566_vm0, %v7565_v0 }
 0xba5   :  { %v3621_v33 = vpack.c.bf16 %v3505_v30, %v3505_v30  ;;  %6862 = vmatprep.subr.bf16.mxu1 %v7565_v0 }
 0xba7   :  { %6847 = vmatmul.mubr.msk.bf16.vlgmr.msra.gmra.mrb[80].mxu0 %vm783_vm3, %v3621_v33 }
 0xba8   :  { %6857 = vmatpush3.bf16.msra.mxu0 %v3905_v59  ;;  %v3537_v35 = vpop.trf.xlu1  ;;  %6858 = vmatprep.mubr.msk.bf16.mxu0 %vm7566_vm0, %v7565_v0 }
 0xba9   :  { %v3622_v32 = vpack.c.bf16 %v3537_v35, %v3537_v35  ;;  %6868 = vmatprep.subr.bf16.mxu0 %v7565_v0 }
 0xbab   :  { %6853 = vmatmul.mubr.msk.bf16.vlgmr.msra.gmra.mrb[92].mxu1 %vm783_vm3, %v3622_v32 }
 0xbac   :  { %6863 = vmatpush3.bf16.msra.mxu1 %v3951_v27  ;;  %v3569_v31 = vpop.trf.xlu0  ;;  %6864 = vmatprep.mubr.msk.bf16.mxu1 %vm7566_vm0, %v7565_v0 }
 0xbad   :  { %v3623_v34 = vpack.c.bf16 %v3569_v31, %v3569_v31  ;;  %6874 = vmatprep.subr.bf16.mxu1 %v7565_v0 }
 0xbaf   :  { %6859 = vmatmul.mubr.msk.bf16.vlgmr.msra.gmra.mrb[84].mxu0 %vm783_vm3, %v3623_v34 }
 0xbb0   :  { %v3601_v36 = vpop.trf.xlu1  ;;  %6870 = vmatprep.mubr.msk.bf16.mxu0 %vm7566_vm0, %v7565_v0 }
 0xbb1   :  { %v3624_v37 = vpack.c.bf16 %v3601_v36, %v3601_v36 }
 0xbb3   :  { %6865 = vmatmul.mubr.msk.bf16.vlgmr.msra.gmra.mrb[96].mxu1 %vm783_vm3, %v3624_v37 }
 0xbb4   :  { %6876 = vmatprep.mubr.msk.bf16.mxu1 %vm7566_vm0, %v7565_v0 }
 0xbda   :  { %v8263_v63 = vpop.f32.mrb[80].mxu1 }
 0xbdb   :  { %v7103_v38 = vpack.i.bf16 %v8263_v63, %v8198_v47  ;;  %v6818_v39 = vpop.f32.mrb[81].mxu1 }
 0xbdc   :  { %v8267_v40 = vpop.f32.mrb[82].mxu1 }
 0xbdd   :  { %v6819_v41 = vpop.f32.mrb[83].mxu1 }
 0xc6a   :  { %v3665_v42 = vpop.f32.mrb[72].mxu0 }
 0xc6b   :  { %v6824_v21 = vpop.f32.mrb[73].mxu0  ;;  %v3993_v43 = vsel %vm783_vm3, %v3665_v42, -inf }
 0xc6c   :  { %v3668_v44 = vpop.f32.mrb[74].mxu0  ;;  %3994 = vmax.xlane.f32.xlu0 %v3993_v43 }
 0xc6d   :  { %v6825_v48 = vpop.f32.mrb[75].mxu0 }
 0xc6e   :  { %v3711_v49 = vpop.f32.mrb[84].mxu1 }
 0xc6f   :  { %v3996_v50 = vsel %vm783_vm3, %v3711_v49, -inf  ;;  %v6830_v4 = vpop.f32.mrb[85].mxu1 }
 0xc70   :  { %3997 = vmax.xlane.f32.xlu1 %v3996_v50  ;;  %v3714_v52 = vpop.f32.mrb[86].mxu1 }
 0xc71   :  { %v6831_v54 = vpop.f32.mrb[87].mxu1 }
 0xc72   :  { %v3757_v8 = vpop.f32.mrb[76].mxu0 }
 0xc73   :  { %v6836_v55 = vpop.f32.mrb[77].mxu0  ;;  %v3999_v57 = vsel %vm783_vm3, %v3757_v8, -inf }
 0xc74   :  { %v3760_v53 = vpop.f32.mrb[78].mxu0  ;;  %4000 = vmax.xlane.f32.xlu1 %v3999_v57 }
 0xc75   :  { %v6837_v58 = vpop.f32.mrb[79].mxu0 }
 0xc76   :  { %v3803_v60 = vpop.f32.mrb[88].mxu1 }
 0xc77   :  { %v4002_v61 = vsel %vm783_vm3, %v3803_v60, -inf  ;;  %v6842_v62 = vpop.f32.mrb[89].mxu1 }
 0xc78   :  { %4003 = vmax.xlane.f32.xlu0 %v4002_v61  ;;  %v3806_v25 = vpop.f32.mrb[90].mxu1 }
 0xc79   :  { %v6843_v18 = vpop.f32.mrb[91].mxu1 }
 0xc7a   :  { %v3849_v19 = vpop.f32.mrb[80].mxu0 }
 0xc7b   :  { %v6848_v1 = vpop.f32.mrb[81].mxu0  ;;  %v4005_v2 = vsel %vm783_vm3, %v3849_v19, -inf }
 0xc7c   :  { %v3852_v12 = vpop.f32.mrb[82].mxu0  ;;  %4006 = vmax.xlane.f32.xlu1 %v4005_v2 }
 0xc7d   :  { %v6849_v3 = vpop.f32.mrb[83].mxu0 }
 0xc7e   :  { %v3895_v5 = vpop.f32.mrb[92].mxu1 }
 0xc7f   :  { %v4008_v6 = vsel %vm783_vm3, %v3895_v5, -inf  ;;  %v6854_v7 = vpop.f32.mrb[93].mxu1 }
 0xc80   :  { %4009 = vmax.xlane.f32.xlu0 %v4008_v6  ;;  %v3898_v9 = vpop.f32.mrb[94].mxu1 }
 0xc81   :  { %v6855_v10 = vpop.f32.mrb[95].mxu1 }
 0xc82   :  { %v3941_v11 = vpop.f32.mrb[84].mxu0 }
 0xc83   :  { %v6860_v13 = vpop.f32.mrb[85].mxu0  ;;  %v4011_v16 = vsel %vm783_vm3, %v3941_v11, -inf }
 0xc84   :  { %v3944_v51 = vpop.f32.mrb[86].mxu0  ;;  %4012 = vmax.xlane.f32.xlu1 %v4011_v16 }
 0xc85   :  { %v6861_v17 = vpop.f32.mrb[87].mxu0 }
 0xc86   :  { %v3987_v22 = vpop.f32.mrb[96].mxu1 }
 0xc87   :  { %v4014_v24 = vsel %vm783_vm3, %v3987_v22, -inf  ;;  %v6866_v26 = vpop.f32.mrb[97].mxu1 }
 0xc88   :  { %4015 = vmax.xlane.f32.xlu0 %v4014_v24  ;;  %v3990_v20 = vpop.f32.mrb[98].mxu1 }
 0xc89   :  { %v6867_v56 = vpop.f32.mrb[99].mxu1 }
 0xcf9   :  { %v3995_v28 = vpop.xlane.xlu0 %3994 }
 0xcfa   :  { %v4017_v29 = vsub.f32 %v3665_v42, %v3995_v28 }
 0xcfc   :  { %v4025_v30 = vmul.f32 1.442695, %v4017_v29 }
 0xcfd   :  { %v3998_v33 = vpop.xlane.xlu1 %3997 }
 0xcfe   :  { %7294 = vpow2.f32 %v4025_v30  ;;  %v4018_v59 = vsub.f32 %v3711_v49, %v3998_v33 }
 0xd00   :  { %v4027_v14 = vmul.f32 1.442695, %v4018_v59 }
 0xd01   :  { %v4001_v35 = vpop.xlane.xlu1 %4000 }
 0xd02   :  { %7296 = vpow2.f32 %v4027_v14  ;;  %v4019_v32 = vsub.f32 %v3757_v8, %v4001_v35 }
 0xd04   :  { %v4029_v27 = vmul.f32 1.442695, %v4019_v32 }
 0xd05   :  { %v4004_v31 = vpop.xlane.xlu0 %4003 }
 0xd06   :  { %7298 = vpow2.f32 %v4029_v27  ;;  %v4020_v34 = vsub.f32 %v3803_v60, %v4004_v31 }
 0xd08   :  { %v7295_v36 = vpop.eup %7294  ;;  %v4031_v37 = vmul.f32 1.442695, %v4020_v34 }
 0xd09   :  { %v4007_v39 = vpop.xlane.xlu1 %4006  ;;  %v4041_v41 = vsel %vm783_vm3, %v7295_v36, 0.0 }
 0xd0a   :  { %7300 = vpow2.f32 %v4031_v37  ;;  %v4021_v21 = vsub.f32 %v3849_v19, %v4007_v39  ;;  %4042 = vadd.xlane.f32.xlu1 %v4041_v41 }
 0xd0c   :  { %v7297_v42 = vpop.eup %7296  ;;  %v4033_v43 = vmul.f32 1.442695, %v4021_v21 }
 0xd0d   :  { %v4010_v44 = vpop.xlane.xlu0 %4009  ;;  %v4044_v48 = vsel %vm783_vm3, %v7297_v42, 0.0 }
 0xd0e   :  { %7302 = vpow2.f32 %v4033_v43  ;;  %v4022_v49 = vsub.f32 %v3895_v5, %v4010_v44  ;;  %4045 = vadd.xlane.f32.xlu0 %v4044_v48 }
 0xd10   :  { %v7299_v50 = vpop.eup %7298  ;;  %v4035_v4 = vmul.f32 1.442695, %v4022_v49 }
 0xd11   :  { %v4013_v52 = vpop.xlane.xlu1 %4012  ;;  %v4047_v54 = vsel %vm783_vm3, %v7299_v50, 0.0 }
 0xd12   :  { %7304 = vpow2.f32 %v4035_v4  ;;  %v4023_v8 = vsub.f32 %v3941_v11, %v4013_v52  ;;  %4048 = vadd.xlane.f32.xlu1 %v4047_v54 }
 0xd14   :  { %v7301_v55 = vpop.eup %7300  ;;  %v4037_v57 = vmul.f32 1.442695, %v4023_v8 }
 0xd15   :  { %v4016_v53 = vpop.xlane.xlu0 %4015  ;;  %v4050_v58 = vsel %vm783_vm3, %v7301_v55, 0.0 }
 0xd16   :  { %7306 = vpow2.f32 %v4037_v57  ;;  %v4024_v60 = vsub.f32 %v3987_v22, %v4016_v53  ;;  %4051 = vadd.xlane.f32.xlu0 %v4050_v58 }
 0xd18   :  { %v7303_v61 = vpop.eup %7302  ;;  %v4039_v62 = vmul.f32 1.442695, %v4024_v60 }
 0xd19   :  { %v4053_v25 = vsel %vm783_vm3, %v7303_v61, 0.0 }
 0xd1a   :  { %7308 = vpow2.f32 %v4039_v62  ;;  %4054 = vadd.xlane.f32.xlu1 %v4053_v25 }
 0xd1c   :  { %v8282_v18 = vpop.eup %7304 }
 0xd1d   :  { %v4056_v19 = vsel %vm783_vm3, %v8282_v18, 0.0 }
 0xd1e   :  { %4057 = vadd.xlane.f32.xlu0 %v4056_v19 }
 0xd20   :  { %v8286_v1 = vpop.eup %7306 }
 0xd21   :  { %v4059_v2 = vsel %vm783_vm3, %v8286_v1, 0.0 }
 0xd22   :  { %4060 = vadd.xlane.f32.xlu1 %v4059_v2 }
 0xd24   :  { %v8290_v12 = vpop.eup %7308 }
 0xd25   :  { %v4062_v3 = vsel %vm783_vm3, %v8290_v12, 0.0 }
 0xd26   :  { %4063 = vadd.xlane.f32.xlu0 %v4062_v3 }
 0xd53   :  { %4489 = vxpose.xlu0.b32.start.end [1/1] (short) (narrow) %v8202_v23, 64 }
 0xd55   :  { %7104 = vxpose.xlu1.b32.start.end [1/1] (short) (narrow) %v7103_v38, 64 }
 0xd97   :  { %v4043_v5 = vpop.xlane.xlu1 %4042 }
 0xd98   :  { %7310 = vrcp.f32 %v4043_v5 }
 0xd9b   :  { %v4046_v6 = vpop.xlane.xlu0 %4045 }
 0xd9c   :  { %7312 = vrcp.f32 %v4046_v6 }
 0xd9f   :  { %v4049_v47 = vpop.xlane.xlu1 %4048 }
 0xda0   :  { %7314 = vrcp.f32 %v4049_v47 }
 0xda2   :  { %v7311_v7 = vpop.eup %7310 }
 0xda3   :  { %v4073_v9 = vmul.f32 %v7311_v7, %v7295_v36  ;;  %v4052_v63 = vpop.xlane.xlu0 %4051 }
 0xda4   :  { %7316 = vrcp.f32 %v4052_v63 }
 0xda5   :  { %v4081_v10 = vpack.c.bf16 %v4073_v9, %v4073_v9 }
 0xda6   :  { %v7313_v11 = vpop.eup %7312 }
 0xda7   :  { %v4093_v13 = vsel %vm783_vm3, %v4081_v10, 0  ;;  %v4074_v16 = vmul.f32 %v7313_v11, %v7297_v42  ;;  %v4055_v38 = vpop.xlane.xlu1 %4054 }
 0xda8   :  { %6869 = vmatpush3.bf16.xpose.msra.mxu0 %v4093_v13  ;;  %7318 = vrcp.f32 %v4055_v38 }
 0xda9   :  { %v4082_v51 = vpack.c.bf16 %v4074_v16, %v4074_v16  ;;  %6880 = vmatprep.subr.bf16.mxu0 %v7565_v0 }
 0xdaa   :  { %v7315_v22 = vpop.eup %7314 }
 0xdab   :  { %v4139_v23 = vsel %vm783_vm3, %v4082_v51, 0  ;;  %v4058_v17 = vpop.xlane.xlu0 %4057  ;;  %v4075_v26 = vmul.f32 %v7315_v22, %v7299_v50 }
 0xdac   :  { %6875 = vmatpush3.bf16.xpose.msra.mxu1 %v4139_v23  ;;  %7320 = vrcp.f32 %v4058_v17 }
 0xdad   :  { %6886 = vmatprep.subr.bf16.mxu1 %v7565_v0  ;;  %v4083_v29 = vpack.c.bf16 %v4075_v26, %v4075_v26 }
 0xdae   :  { %v7317_v20 = vpop.eup %7316 }
 0xdaf   :  { %v4061_v24 = vpop.xlane.xlu1 %4060  ;;  %v4076_v30 = vmul.f32 %v7317_v20, %v7301_v55  ;;  %v4185_v27 = vsel %vm783_vm3, %v4083_v29, 0 }
 0xdb0   :  { %7322 = vrcp.f32 %v4061_v24 }
 0xdb1   :  { %v4084_v31 = vpack.c.bf16 %v4076_v30, %v4076_v30 }
 0xdb2   :  { %v7319_v33 = vpop.eup %7318 }
 0xdb3   :  { %v4064_v56 = vpop.xlane.xlu0 %4063  ;;  %v4077_v34 = vmul.f32 %v7319_v33, %v7303_v61  ;;  %v4231_v42 = vsel %vm783_vm3, %v4084_v31, 0 }
 0xdb4   :  { %7324 = vrcp.f32 %v4064_v56 }
 0xdb5   :  { %v4085_v43 = vpack.c.bf16 %v4077_v34, %v4077_v34 }
 0xdb6   :  { %v7321_v36 = vpop.eup %7320 }
 0xdb7   :  { %v4078_v44 = vmul.f32 %v7321_v36, %v8282_v18  ;;  %v4277_v54 = vsel %vm783_vm3, %v4085_v43, 0 }
 0xdb9   :  { %v4086_v8 = vpack.c.bf16 %v4078_v44, %v4078_v44 }
 0xdba   :  { %v7323_v48 = vpop.eup %7322 }
 0xdbb   :  { %v4079_v55 = vmul.f32 %v7323_v48, %v8286_v1  ;;  %v4323_v62 = vsel %vm783_vm3, %v4086_v8, 0 }
 0xdbd   :  { %v4087_v25 = vpack.c.bf16 %v4079_v55, %v4079_v55 }
 0xdbe   :  { %v7325_v57 = vpop.eup %7324 }
 0xdbf   :  { %v4080_v18 = vmul.f32 %v7325_v57, %v8290_v12  ;;  %v4369_v6 = vsel %vm783_vm3, %v4087_v25, 0 }
 0xdc1   :  { %v4088_v7 = vpack.c.bf16 %v4080_v18, %v4080_v18 }
 0xdc3   :  { %v4415_v16 = vsel %vm783_vm3, %v4088_v7, 0 }
 0xdd3   :  { %v4505_v2 = vpop.trf.xlu0 }
 0xdd4   :  { %v4521_v11 = vpack.c.bf16 %v4505_v2, %v4505_v2 }
 0xdd5   :  { %v7105_v28 = vpop.trf.xlu1 }
 0xdd6   :  { %v7109_v59 = vunpack.i.h.bf16 %v7105_v28  ;;  %v7106_v14 = vunpack.i.l.bf16 %v7105_v28  ;;  %v4869_v38 = vsel %vm787_vm2, %v4521_v11, 0 }
 0xdd7   :  { %v4506_v51 = vpop.trf.xlu0 }
 0xdd8   :  { %v3321_v35 = vpack.c.bf16 %v7109_v59, %v7109_v59  ;;  %4601 = vxpose.xlu0.b32.start.end [1/1] (short) (narrow) %v7106_v14, 8  ;;  %v4522_v17 = vpack.c.bf16 %v4506_v51, %v4506_v51 }
 0xdd9   :  { %v7110_v32 = vpop.trf.xlu1 }
 0xdda   :  { %v7114_v37 = vunpack.i.h.bf16 %v7110_v32  ;;  %6871 = vmatmul.mubr.msk.bf16.vlgmr.msra.gmra.mrb[88].mxu0 %vm783_vm3, %v3321_v35  ;;  %v7111_v39 = vunpack.i.l.bf16 %v7110_v32  ;;  %v4915_v56 = vsel %vm787_vm2, %v4522_v17, 0 }
 0xddb   :  { %6881 = vmatpush3.bf16.xpose.msra.mxu0 %v4185_v27  ;;  %6882 = vmatprep.mubr.msk.bf16.mxu0 %vm7566_vm0, %v7565_v0  ;;  %v4507_v28 = vpop.trf.xlu0 }
 0xddc   :  { %v3322_v41 = vpack.c.bf16 %v7114_v37, %v7114_v37  ;;  %4633 = vxpose.xlu1.b32.start.end [1/1] (short) (narrow) %v7111_v39, 8  ;;  %6892 = vmatprep.subr.bf16.mxu0 %v7565_v0  ;;  %v4523_v35 = vpack.c.bf16 %v4507_v28, %v4507_v28 }
 0xddd   :  { %v7115_v21 = vpop.trf.xlu1 }
 0xdde   :  { %v7119_v49 = vunpack.i.h.bf16 %v7115_v21  ;;  %6877 = vmatmul.mubr.msk.bf16.vlgmr.msra.gmra.mrb[100].mxu1 %vm783_vm3, %v3322_v41  ;;  %v7116_v50 = vunpack.i.l.bf16 %v7115_v21  ;;  %v4961_v31 = vsel %vm787_vm2, %v4523_v35, 0 }
 0xddf   :  { %6887 = vmatpush3.bf16.xpose.msra.mxu1 %v4231_v42  ;;  %6888 = vmatprep.mubr.msk.bf16.mxu1 %vm7566_vm0, %v7565_v0  ;;  %v4508_v29 = vpop.trf.xlu0 }
 0xde0   :  { %v3323_v4 = vpack.c.bf16 %v7119_v49, %v7119_v49  ;;  %4665 = vxpose.xlu0.b32.start.end [1/1] (short) (narrow) %v7116_v50, 8  ;;  %6898 = vmatprep.subr.bf16.mxu1 %v7565_v0  ;;  %v4524_v34 = vpack.c.bf16 %v4508_v29, %v4508_v29 }
 0xde1   :  { %v7120_v52 = vpop.trf.xlu1 }
 0xde2   :  { %v7124_v53 = vunpack.i.h.bf16 %v7120_v52  ;;  %6883 = vmatmul.mubr.msk.bf16.vlgmr.msra.gmra.mrb[92].mxu0 %vm783_vm3, %v3323_v4  ;;  %v7121_v58 = vunpack.i.l.bf16 %v7120_v52  ;;  %v5007_v39 = vsel %vm787_vm2, %v4524_v34, 0 }
 0xde3   :  { %6893 = vmatpush3.bf16.xpose.msra.mxu0 %v4277_v54  ;;  %6894 = vmatprep.mubr.msk.bf16.mxu0 %vm7566_vm0, %v7565_v0  ;;  %v4509_v30 = vpop.trf.xlu0 }
 0xde4   :  { %v3324_v60 = vpack.c.bf16 %v7124_v53, %v7124_v53  ;;  %4697 = vxpose.xlu1.b32.start.end [1/1] (short) (narrow) %v7121_v58, 8  ;;  %6904 = vmatprep.subr.bf16.mxu0 %v7565_v0  ;;  %v4525_v41 = vpack.c.bf16 %v4509_v30, %v4509_v30 }
 0xde5   :  { %v7125_v61 = vpop.trf.xlu1 }
 0xde6   :  { %v7129_v19 = vunpack.i.h.bf16 %v7125_v61  ;;  %6889 = vmatmul.mubr.msk.bf16.vlgmr.msra.gmra.mrb[104].mxu1 %vm783_vm3, %v3324_v60  ;;  %v7126_v1 = vunpack.i.l.bf16 %v7125_v61  ;;  %v5053_v43 = vsel %vm787_vm2, %v4525_v41, 0 }
 0xde7   :  { %6899 = vmatpush3.bf16.xpose.msra.mxu1 %v4323_v62  ;;  %6900 = vmatprep.mubr.msk.bf16.mxu1 %vm7566_vm0, %v7565_v0  ;;  %v4510_v33 = vpop.trf.xlu0 }
 0xde8   :  { %v3325_v3 = vpack.c.bf16 %v7129_v19, %v7129_v19  ;;  %4729 = vxpose.xlu0.b32.start.end [1/1] (short) (narrow) %v7126_v1, 8  ;;  %6910 = vmatprep.subr.bf16.mxu1 %v7565_v0  ;;  %v4526_v44 = vpack.c.bf16 %v4510_v33, %v4510_v33 }
 0xde9   :  { %v7130_v5 = vpop.trf.xlu1 }
 0xdea   :  { %v7134_v9 = vunpack.i.h.bf16 %v7130_v5  ;;  %6895 = vmatmul.mubr.msk.bf16.vlgmr.msra.gmra.mrb[96].mxu0 %vm783_vm3, %v3325_v3  ;;  %v7131_v12 = vunpack.i.l.bf16 %v7130_v5  ;;  %v5099_v50 = vsel %vm787_vm2, %v4526_v44, 0 }
 0xdeb   :  { %6905 = vmatpush3.bf16.xpose.msra.mxu0 %v4369_v6  ;;  %6906 = vmatprep.mubr.msk.bf16.mxu0 %vm7566_vm0, %v7565_v0  ;;  %v4511_v59 = vpop.trf.xlu0 }
 0xdec   :  { %v3326_v10 = vpack.c.bf16 %v7134_v9, %v7134_v9  ;;  %4761 = vxpose.xlu1.b32.start.end [1/1] (short) (narrow) %v7131_v12, 8  ;;  %6916 = vmatprep.subr.bf16.mxu0 %v7565_v0  ;;  %v4527_v4 = vpack.c.bf16 %v4511_v59, %v4511_v59 }
 0xded   :  { %v7135_v13 = vpop.trf.xlu1 }
 0xdee   :  { %v7139_v23 = vunpack.i.h.bf16 %v7135_v13  ;;  %6901 = vmatmul.mubr.msk.bf16.vlgmr.msra.gmra.mrb[108].mxu1 %vm783_vm3, %v3326_v10  ;;  %v7136_v47 = vunpack.i.l.bf16 %v7135_v13  ;;  %v5145_v8 = vsel %vm787_vm2, %v4527_v4, 0 }
 0xdef   :  { %6911 = vmatpush3.bf16.xpose.msra.mxu1 %v4415_v16  ;;  %6912 = vmatprep.mubr.msk.bf16.mxu1 %vm7566_vm0, %v7565_v0  ;;  %v4512_v14 = vpop.trf.xlu0 }
 0xdf0   :  { %v3327_v63 = vpack.c.bf16 %v7139_v23, %v7139_v23  ;;  %4793 = vxpose.xlu0.b32.start.end [1/1] (short) (narrow) %v7136_v47, 8  ;;  %6922 = vmatprep.subr.bf16.mxu1 %v7565_v0  ;;  %v4528_v55 = vpack.c.bf16 %v4512_v14, %v4512_v14 }
 0xdf1   :  { %v7140_v22 = vpop.trf.xlu1 }
 0xdf2   :  { %v7144_v24 = vunpack.i.h.bf16 %v7140_v22  ;;  %6907 = vmatmul.mubr.msk.bf16.vlgmr.msra.gmra.mrb[100].mxu0 %vm783_vm3, %v3327_v63  ;;  %v7141_v26 = vunpack.i.l.bf16 %v7140_v22  ;;  %v5191_v58 = vsel %vm787_vm2, %v4528_v55, 0 }
 0xdf3   :  { %6917 = vmatpush3.bf16.msra.mxu0 %v4869_v38  ;;  %6918 = vmatprep.mubr.msk.bf16.mxu0 %vm7566_vm0, %v7565_v0 }
 0xdf4   :  { %v3328_v20 = vpack.c.bf16 %v7144_v24, %v7144_v24  ;;  %4825 = vxpose.xlu1.b32.start.end [1/1] (short) (narrow) %v7141_v26, 8  ;;  %6928 = vmatprep.subr.bf16.mxu0 %v7565_v0 }
 0xdf6   :  { %6913 = vmatmul.mubr.msk.bf16.vlgmr.msra.gmra.mrb[112].mxu1 %vm783_vm3, %v3328_v20 }
 0xdf7   :  { %6923 = vmatpush3.bf16.msra.mxu1 %v4915_v56  ;;  %6924 = vmatprep.mubr.msk.bf16.mxu1 %vm7566_vm0, %v7565_v0 }
 0xdf8   :  { %6934 = vmatprep.subr.bf16.mxu1 %v7565_v0 }
 0xe58   :  { %v4617_v32 = vpop.trf.xlu0 }
 0xe59   :  { %v4857_v27 = vpack.c.bf16 %v4617_v32, %v4617_v32 }
 0xe5b   :  { %6919 = vmatmul.mubr.msk.bf16.vlgmr.msra.gmra.mrb[104].mxu0 %vm783_vm3, %v4857_v27 }
 0xe5c   :  { %6929 = vmatpush3.bf16.msra.mxu0 %v4961_v31  ;;  %v4649_v36 = vpop.trf.xlu1  ;;  %6930 = vmatprep.mubr.msk.bf16.mxu0 %vm7566_vm0, %v7565_v0 }
 0xe5d   :  { %v4858_v37 = vpack.c.bf16 %v4649_v36, %v4649_v36  ;;  %6940 = vmatprep.subr.bf16.mxu0 %v7565_v0 }
 0xe5f   :  { %6925 = vmatmul.mubr.msk.bf16.vlgmr.msra.gmra.mrb[116].mxu1 %vm783_vm3, %v4858_v37 }
 0xe60   :  { %6935 = vmatpush3.bf16.msra.mxu1 %v5007_v39  ;;  %v4681_v21 = vpop.trf.xlu0  ;;  %6936 = vmatprep.mubr.msk.bf16.mxu1 %vm7566_vm0, %v7565_v0 }
 0xe61   :  { %v4859_v42 = vpack.c.bf16 %v4681_v21, %v4681_v21  ;;  %6946 = vmatprep.subr.bf16.mxu1 %v7565_v0 }
 0xe63   :  { %6931 = vmatmul.mubr.msk.bf16.vlgmr.msra.gmra.mrb[108].mxu0 %vm783_vm3, %v4859_v42 }
 0xe64   :  { %6941 = vmatpush3.bf16.msra.mxu0 %v5053_v43  ;;  %v4713_v48 = vpop.trf.xlu1  ;;  %6942 = vmatprep.mubr.msk.bf16.mxu0 %vm7566_vm0, %v7565_v0 }
 0xe65   :  { %v4860_v49 = vpack.c.bf16 %v4713_v48, %v4713_v48  ;;  %6952 = vmatprep.subr.bf16.mxu0 %v7565_v0 }
 0xe67   :  { %6937 = vmatmul.mubr.msk.bf16.vlgmr.msra.gmra.mrb[120].mxu1 %vm783_vm3, %v4860_v49 }
 0xe68   :  { %6947 = vmatpush3.bf16.msra.mxu1 %v5099_v50  ;;  %v4745_v52 = vpop.trf.xlu0  ;;  %6948 = vmatprep.mubr.msk.bf16.mxu1 %vm7566_vm0, %v7565_v0 }
 0xe69   :  { %v4861_v54 = vpack.c.bf16 %v4745_v52, %v4745_v52  ;;  %6958 = vmatprep.subr.bf16.mxu1 %v7565_v0 }
 0xe6b   :  { %6943 = vmatmul.mubr.msk.bf16.vlgmr.msra.gmra.mrb[112].mxu0 %vm783_vm3, %v4861_v54 }
 0xe6c   :  { %6953 = vmatpush3.bf16.msra.mxu0 %v5145_v8  ;;  %v4777_v57 = vpop.trf.xlu1  ;;  %6954 = vmatprep.mubr.msk.bf16.mxu0 %vm7566_vm0, %v7565_v0 }
 0xe6d   :  { %v4862_v53 = vpack.c.bf16 %v4777_v57, %v4777_v57  ;;  %6964 = vmatprep.subr.bf16.mxu0 %v7565_v0 }
 0xe6f   :  { %6949 = vmatmul.mubr.msk.bf16.vlgmr.msra.gmra.mrb[124].mxu1 %vm783_vm3, %v4862_v53 }
 0xe70   :  { %6959 = vmatpush3.bf16.msra.mxu1 %v5191_v58  ;;  %v4809_v60 = vpop.trf.xlu0  ;;  %6960 = vmatprep.mubr.msk.bf16.mxu1 %vm7566_vm0, %v7565_v0 }
 0xe71   :  { %v4863_v61 = vpack.c.bf16 %v4809_v60, %v4809_v60  ;;  %6970 = vmatprep.subr.bf16.mxu1 %v7565_v0 }
 0xe73   :  { %6955 = vmatmul.mubr.msk.bf16.vlgmr.msra.gmra.mrb[116].mxu0 %vm783_vm3, %v4863_v61 }
 0xe74   :  { %v4841_v62 = vpop.trf.xlu1  ;;  %6966 = vmatprep.mubr.msk.bf16.mxu0 %vm7566_vm0, %v7565_v0 }
 0xe75   :  { %v4864_v25 = vpack.c.bf16 %v4841_v62, %v4841_v62 }
 0xe77   :  { %6961 = vmatmul.mubr.msk.bf16.vlgmr.msra.gmra.mrb[128].mxu1 %vm783_vm3, %v4864_v25 }
 0xe78   :  { %6972 = vmatprep.mubr.msk.bf16.mxu1 %vm7566_vm0, %v7565_v0 }
 0xead   :  { %v8381_v18 = vpop.f32.mrb[88].mxu0 }
 0xeae   :  { %v6872_v19 = vpop.f32.mrb[89].mxu0 }
 0xeaf   :  { %v4132_v1 = vpop.f32.mrb[90].mxu0 }
 0xeb0   :  { %v6873_v2 = vpop.f32.mrb[91].mxu0 }
 0xeb1   :  { %v8383_v3 = vpop.f32.mrb[100].mxu1 }
 0xeb2   :  { %v6878_v5 = vpop.f32.mrb[101].mxu1 }
 0xeb3   :  { %v4178_v6 = vpop.f32.mrb[102].mxu1 }
 0xeb4   :  { %v6879_v7 = vpop.f32.mrb[103].mxu1 }
 0xeb5   :  { %v8385_v9 = vpop.f32.mrb[92].mxu0 }
 0xeb6   :  { %v6884_v12 = vpop.f32.mrb[93].mxu0 }
 0xeb7   :  { %v4224_v10 = vpop.f32.mrb[94].mxu0 }
 0xeb8   :  { %v6885_v11 = vpop.f32.mrb[95].mxu0 }
 0xeb9   :  { %v8387_v13 = vpop.f32.mrb[104].mxu1 }
 0xeba   :  { %v6890_v16 = vpop.f32.mrb[105].mxu1 }
 0xebb   :  { %v4270_v51 = vpop.f32.mrb[106].mxu1 }
 0xebc   :  { %v6891_v23 = vpop.f32.mrb[107].mxu1 }
 0xebd   :  { %v8389_v47 = vpop.f32.mrb[96].mxu0 }
 0xebe   :  { %v6896_v63 = vpop.f32.mrb[97].mxu0 }
 0xebf   :  { %v4316_v38 = vpop.f32.mrb[98].mxu0 }
 0xec0   :  { %v6897_v17 = vpop.f32.mrb[99].mxu0 }
 0xec1   :  { %v8391_v22 = vpop.f32.mrb[108].mxu1 }
 0xec2   :  { %v6902_v24 = vpop.f32.mrb[109].mxu1 }
 0xec3   :  { %v4362_v26 = vpop.f32.mrb[110].mxu1 }
 0xec4   :  { %v6903_v20 = vpop.f32.mrb[111].mxu1 }
 0xec5   :  { %v8393_v56 = vpop.f32.mrb[100].mxu0 }
 0xec6   :  { %v6908_v28 = vpop.f32.mrb[101].mxu0 }
 0xec7   :  { %v4408_v29 = vpop.f32.mrb[102].mxu0 }
 0xec8   :  { %v6909_v30 = vpop.f32.mrb[103].mxu0 }
 0xec9   :  { %v8395_v33 = vpop.f32.mrb[112].mxu1 }
 0xeca   :  { %v6914_v59 = vpop.f32.mrb[113].mxu1 }
 0xecb   :  { %v4454_v14 = vpop.f32.mrb[114].mxu1 }
 0xecc   :  { %v6915_v35 = vpop.f32.mrb[115].mxu1 }
 0xf2e   :  { %v4905_v32 = vpop.f32.mrb[104].mxu0 }
 0xf2f   :  { %v6920_v27 = vpop.f32.mrb[105].mxu0  ;;  %v5233_v31 = vsel %vm783_vm3, %v4905_v32, -inf }
 0xf30   :  { %5234 = vmax.xlane.f32.xlu0 %v5233_v31  ;;  %v4908_v34 = vpop.f32.mrb[106].mxu0 }
 0xf31   :  { %v6921_v36 = vpop.f32.mrb[107].mxu0 }
 0xf32   :  { %v4951_v37 = vpop.f32.mrb[116].mxu1 }
 0xf33   :  { %v5236_v39 = vsel %vm783_vm3, %v4951_v37, -inf  ;;  %v6926_v41 = vpop.f32.mrb[117].mxu1 }
 0xf34   :  { %5237 = vmax.xlane.f32.xlu1 %v5236_v39  ;;  %v4954_v21 = vpop.f32.mrb[118].mxu1 }
 0xf35   :  { %v6927_v42 = vpop.f32.mrb[119].mxu1 }
 0xf36   :  { %v4997_v43 = vpop.f32.mrb[108].mxu0 }
 0xf37   :  { %v6932_v44 = vpop.f32.mrb[109].mxu0  ;;  %v5239_v48 = vsel %vm783_vm3, %v4997_v43, -inf }
 0xf38   :  { %v5000_v49 = vpop.f32.mrb[110].mxu0  ;;  %5240 = vmax.xlane.f32.xlu1 %v5239_v48 }
 0xf39   :  { %v6933_v50 = vpop.f32.mrb[111].mxu0 }
 0xf3a   :  { %v5043_v4 = vpop.f32.mrb[120].mxu1 }
 0xf3b   :  { %v5242_v52 = vsel %vm783_vm3, %v5043_v4, -inf  ;;  %v6938_v54 = vpop.f32.mrb[121].mxu1 }
 0xf3c   :  { %5243 = vmax.xlane.f32.xlu0 %v5242_v52  ;;  %v5046_v8 = vpop.f32.mrb[122].mxu1 }
 0xf3d   :  { %v6939_v55 = vpop.f32.mrb[123].mxu1 }
 0xf3e   :  { %v5089_v57 = vpop.f32.mrb[112].mxu0 }
 0xf3f   :  { %v6944_v53 = vpop.f32.mrb[113].mxu0  ;;  %v5245_v58 = vsel %vm783_vm3, %v5089_v57, -inf }
 0xf40   :  { %v5092_v60 = vpop.f32.mrb[114].mxu0  ;;  %5246 = vmax.xlane.f32.xlu1 %v5245_v58 }
 0xf41   :  { %v6945_v61 = vpop.f32.mrb[115].mxu0 }
 0xf42   :  { %v5135_v62 = vpop.f32.mrb[124].mxu1 }
 0xf43   :  { %v5248_v25 = vsel %vm783_vm3, %v5135_v62, -inf  ;;  %v6950_v19 = vpop.f32.mrb[125].mxu1 }
 0xf44   :  { %5249 = vmax.xlane.f32.xlu0 %v5248_v25  ;;  %v5138_v1 = vpop.f32.mrb[126].mxu1 }
 0xf45   :  { %v6951_v2 = vpop.f32.mrb[127].mxu1 }
 0xf46   :  { %v5181_v5 = vpop.f32.mrb[116].mxu0 }
 0xf47   :  { %v6956_v6 = vpop.f32.mrb[117].mxu0  ;;  %v5251_v7 = vsel %vm783_vm3, %v5181_v5, -inf }
 0xf48   :  { %v5184_v12 = vpop.f32.mrb[118].mxu0  ;;  %5252 = vmax.xlane.f32.xlu1 %v5251_v7 }
 0xf49   :  { %v6957_v10 = vpop.f32.mrb[119].mxu0 }
 0xf4a   :  { %v5227_v11 = vpop.f32.mrb[128].mxu1 }
 0xf4b   :  { %v5254_v16 = vsel %vm783_vm3, %v5227_v11, -inf  ;;  %v6962_v51 = vpop.f32.mrb[129].mxu1 }
 0xf4c   :  { %5255 = vmax.xlane.f32.xlu0 %v5254_v16  ;;  %v5230_v23 = vpop.f32.mrb[130].mxu1 }
 0xf4d   :  { %v6963_v63 = vpop.f32.mrb[131].mxu1 }
 0xfbd   :  { %v5235_v38 = vpop.xlane.xlu0 %5234 }
 0xfbe   :  { %v5257_v17 = vsub.f32 %v4905_v32, %v5235_v38 }
 0xfc0   :  { %v5265_v24 = vmul.f32 1.442695, %v5257_v17 }
 0xfc1   :  { %v5238_v26 = vpop.xlane.xlu1 %5237 }
 0xfc2   :  { %7326 = vpow2.f32 %v5265_v24  ;;  %v5258_v20 = vsub.f32 %v4951_v37, %v5238_v26 }
 0xfc4   :  { %v5267_v28 = vmul.f32 1.442695, %v5258_v20 }
 0xfc5   :  { %v5241_v29 = vpop.xlane.xlu1 %5240 }
 0xfc6   :  { %7328 = vpow2.f32 %v5267_v28  ;;  %v5259_v30 = vsub.f32 %v4997_v43, %v5241_v29 }
 0xfc8   :  { %v5269_v59 = vmul.f32 1.442695, %v5259_v30 }
 0xfc9   :  { %v5244_v14 = vpop.xlane.xlu0 %5243 }
 0xfca   :  { %7330 = vpow2.f32 %v5269_v59  ;;  %v5260_v35 = vsub.f32 %v5043_v4, %v5244_v14 }
 0xfcc   :  { %v7327_v27 = vpop.eup %7326  ;;  %v5271_v31 = vmul.f32 1.442695, %v5260_v35 }
 0xfcd   :  { %v5247_v34 = vpop.xlane.xlu1 %5246  ;;  %v5281_v36 = vsel %vm783_vm3, %v7327_v27, 0.0 }
 0xfce   :  { %7332 = vpow2.f32 %v5271_v31  ;;  %v5261_v39 = vsub.f32 %v5089_v57, %v5247_v34  ;;  %5282 = vadd.xlane.f32.xlu1 %v5281_v36 }
 0xfd0   :  { %v7329_v32 = vpop.eup %7328  ;;  %v5273_v41 = vmul.f32 1.442695, %v5261_v39 }
 0xfd1   :  { %v5250_v21 = vpop.xlane.xlu0 %5249  ;;  %v5284_v37 = vsel %vm783_vm3, %v7329_v32, 0.0 }
 0xfd2   :  { %7334 = vpow2.f32 %v5273_v41  ;;  %v5262_v42 = vsub.f32 %v5135_v62, %v5250_v21  ;;  %5285 = vadd.xlane.f32.xlu0 %v5284_v37 }
 0xfd4   :  { %v7331_v43 = vpop.eup %7330  ;;  %v5275_v44 = vmul.f32 1.442695, %v5262_v42 }
 0xfd5   :  { %v5253_v48 = vpop.xlane.xlu1 %5252  ;;  %v5287_v49 = vsel %vm783_vm3, %v7331_v43, 0.0 }
 0xfd6   :  { %7336 = vpow2.f32 %v5275_v44  ;;  %v5263_v50 = vsub.f32 %v5181_v5, %v5253_v48  ;;  %5288 = vadd.xlane.f32.xlu1 %v5287_v49 }
 0xfd8   :  { %v7333_v4 = vpop.eup %7332  ;;  %v5277_v52 = vmul.f32 1.442695, %v5263_v50 }
 0xfd9   :  { %v5256_v54 = vpop.xlane.xlu0 %5255  ;;  %v5290_v8 = vsel %vm783_vm3, %v7333_v4, 0.0 }
 0xfda   :  { %7338 = vpow2.f32 %v5277_v52  ;;  %v5264_v55 = vsub.f32 %v5227_v11, %v5256_v54  ;;  %5291 = vadd.xlane.f32.xlu0 %v5290_v8 }
 0xfdc   :  { %v7335_v57 = vpop.eup %7334  ;;  %v5279_v53 = vmul.f32 1.442695, %v5264_v55 }
 0xfdd   :  { %v5293_v58 = vsel %vm783_vm3, %v7335_v57, 0.0 }
 0xfde   :  { %7340 = vpow2.f32 %v5279_v53  ;;  %5294 = vadd.xlane.f32.xlu1 %v5293_v58 }
 0xfe0   :  { %v7337_v60 = vpop.eup %7336 }
 0xfe1   :  { %v5296_v61 = vsel %vm783_vm3, %v7337_v60, 0.0 }
 0xfe2   :  { %5297 = vadd.xlane.f32.xlu0 %v5296_v61 }
 0xfe4   :  { %v8411_v62 = vpop.eup %7338 }
 0xfe5   :  { %v5299_v25 = vsel %vm783_vm3, %v8411_v62, 0.0 }
 0xfe6   :  { %5300 = vadd.xlane.f32.xlu1 %v5299_v25 }
 0xfe8   :  { %v8415_v19 = vpop.eup %7340 }
 0xfe9   :  { %v5302_v1 = vsel %vm783_vm3, %v8415_v19, 0.0 }
 0xfea   :  { %5303 = vadd.xlane.f32.xlu0 %v5302_v1 }
0x1019   :  { %4529 = vxpose.xlu1.b32.start.end [1/1] (short) (narrow) %v8267_v40, 64 }
0x105b   :  { %v5283_v2 = vpop.xlane.xlu1 %5282 }
0x105c   :  { %7342 = vrcp.f32 %v5283_v2 }
0x105f   :  { %v5286_v5 = vpop.xlane.xlu0 %5285 }
0x1060   :  { %7344 = vrcp.f32 %v5286_v5 }
0x1063   :  { %v5289_v40 = vpop.xlane.xlu1 %5288 }
0x1064   :  { %7346 = vrcp.f32 %v5289_v40 }
0x1066   :  { %v7343_v6 = vpop.eup %7342 }
0x1067   :  { %v5313_v7 = vmul.f32 %v7343_v6, %v7327_v27  ;;  %v5292_v63 = vpop.xlane.xlu0 %5291 }
0x1068   :  { %7348 = vrcp.f32 %v5292_v63 }
0x1069   :  { %v5321_v12 = vpack.c.bf16 %v5313_v7, %v5313_v7 }
0x106a   :  { %v7345_v10 = vpop.eup %7344 }
0x106b   :  { %v5333_v11 = vsel %vm783_vm3, %v5321_v12, 0  ;;  %v5314_v16 = vmul.f32 %v7345_v10, %v7329_v32  ;;  %v5295_v38 = vpop.xlane.xlu1 %5294  ;;  %v7194_v12 = vld [vmem:[#allocation11] sm:$0xff]   ;;  %v7195_v10 = vld [vmem:[#allocation11 + $0x8] sm:$0xff]  }
0x106c   :  { %6965 = vmatpush3.bf16.xpose.msra.mxu0 %v5333_v11  ;;  %7350 = vrcp.f32 %v5295_v38  ;;  %v7196_v11 = vld [vmem:[#allocation11 + $0x10] sm:$0xff]  }
0x106d   :  { %v5322_v51 = vpack.c.bf16 %v5314_v16, %v5314_v16  ;;  %6976 = vmatprep.subr.bf16.mxu0 %v7565_v0 }
0x106e   :  { %v7347_v24 = vpop.eup %7346 }
0x106f   :  { %v5379_v23 = vsel %vm783_vm3, %v5322_v51, 0  ;;  %v5298_v17 = vpop.xlane.xlu0 %5297  ;;  %v5315_v20 = vmul.f32 %v7347_v24, %v7331_v43 }
0x1070   :  { %6971 = vmatpush3.bf16.xpose.msra.mxu1 %v5379_v23  ;;  %7352 = vrcp.f32 %v5298_v17  ;;  %v7197_v17 = vld [vmem:[#allocation11 + $0x18] sm:$0xff]  }
0x1071   :  { %6982 = vmatprep.subr.bf16.mxu1 %v7565_v0  ;;  %v5323_v30 = vpack.c.bf16 %v5315_v20, %v5315_v20 }
0x1072   :  { %v7349_v28 = vpop.eup %7348 }
0x1073   :  { %v5301_v26 = vpop.xlane.xlu1 %5300  ;;  %v5316_v59 = vmul.f32 %v7349_v28, %v7333_v4  ;;  %v5425_v31 = vsel %vm783_vm3, %v5323_v30, 0 }
0x1074   :  { %7354 = vrcp.f32 %v5301_v26 }
0x1075   :  { %v5324_v34 = vpack.c.bf16 %v5316_v59, %v5316_v59 }
0x1076   :  { %v7351_v14 = vpop.eup %7350 }
0x1077   :  { %v5304_v29 = vpop.xlane.xlu0 %5303  ;;  %v5317_v36 = vmul.f32 %v7351_v14, %v7335_v57  ;;  %v5471_v21 = vsel %vm783_vm3, %v5324_v34, 0 }
0x1078   :  { %7356 = vrcp.f32 %v5304_v29 }
0x1079   :  { %v5325_v37 = vpack.c.bf16 %v5317_v36, %v5317_v36 }
0x107a   :  { %v7353_v39 = vpop.eup %7352 }
0x107b   :  { %v5318_v42 = vmul.f32 %v7353_v39, %v7337_v60  ;;  %v5517_v49 = vsel %vm783_vm3, %v5325_v37, 0 }
0x107d   :  { %v5326_v50 = vpack.c.bf16 %v5318_v42, %v5318_v42 }
0x107e   :  { %v7355_v43 = vpop.eup %7354 }
0x107f   :  { %v5319_v4 = vmul.f32 %v7355_v43, %v8411_v62  ;;  %v5563_v55 = vsel %vm783_vm3, %v5326_v50, 0 }
0x1081   :  { %v5327_v57 = vpack.c.bf16 %v5319_v4, %v5319_v4 }
0x1082   :  { %v7357_v52 = vpop.eup %7356 }
0x1083   :  { %v5320_v53 = vmul.f32 %v7357_v52, %v8415_v19  ;;  %v5609_v61 = vsel %vm783_vm3, %v5327_v57, 0 }
0x1085   :  { %v5328_v62 = vpack.c.bf16 %v5320_v53, %v5320_v53 }
0x1087   :  { %v5655_v19 = vsel %vm783_vm3, %v5328_v62, 0 }
0x1099   :  { %v4545_v35 = vpop.trf.xlu1 }
0x109a   :  { %v4561_v27 = vpack.c.bf16 %v4545_v35, %v4545_v35 }
0x109c   :  { %6967 = vmatmul.mubr.msk.bf16.vlgmr.msra.gmra.mrb[120].mxu0 %vm783_vm3, %v4561_v27 }
0x109d   :  { %6977 = vmatpush3.bf16.xpose.msra.mxu0 %v5425_v31  ;;  %v4546_v32 = vpop.trf.xlu1  ;;  %6978 = vmatprep.mubr.msk.bf16.mxu0 %vm7566_vm0, %v7565_v0 }
0x109e   :  { %v4562_v41 = vpack.c.bf16 %v4546_v32, %v4546_v32  ;;  %6988 = vmatprep.subr.bf16.mxu0 %v7565_v0 }
0x10a0   :  { %6973 = vmatmul.mubr.msk.bf16.vlgmr.msra.gmra.mrb[132].mxu1 %vm783_vm3, %v4562_v41 }
0x10a1   :  { %6983 = vmatpush3.bf16.xpose.msra.mxu1 %v5471_v21  ;;  %v4547_v44 = vpop.trf.xlu1  ;;  %6984 = vmatprep.mubr.msk.bf16.mxu1 %vm7566_vm0, %v7565_v0 }
0x10a2   :  { %v4563_v48 = vpack.c.bf16 %v4547_v44, %v4547_v44  ;;  %6994 = vmatprep.subr.bf16.mxu1 %v7565_v0 }
0x10a4   :  { %6979 = vmatmul.mubr.msk.bf16.vlgmr.msra.gmra.mrb[124].mxu0 %vm783_vm3, %v4563_v48 }
0x10a5   :  { %6989 = vmatpush3.bf16.xpose.msra.mxu0 %v5517_v49  ;;  %v4548_v54 = vpop.trf.xlu1  ;;  %6990 = vmatprep.mubr.msk.bf16.mxu0 %vm7566_vm0, %v7565_v0 }
0x10a6   :  { %v4564_v8 = vpack.c.bf16 %v4548_v54, %v4548_v54  ;;  %7000 = vmatprep.subr.bf16.mxu0 %v7565_v0 }
0x10a8   :  { %6985 = vmatmul.mubr.msk.bf16.vlgmr.msra.gmra.mrb[136].mxu1 %vm783_vm3, %v4564_v8 }
0x10a9   :  { %6995 = vmatpush3.bf16.xpose.msra.mxu1 %v5563_v55  ;;  %v4549_v58 = vpop.trf.xlu1  ;;  %6996 = vmatprep.mubr.msk.bf16.mxu1 %vm7566_vm0, %v7565_v0 }
0x10aa   :  { %v4565_v60 = vpack.c.bf16 %v4549_v58, %v4549_v58  ;;  %7006 = vmatprep.subr.bf16.mxu1 %v7565_v0  ;;  %v6318_v58 = vld [vmem:[#allocation13] ss:$0 sm:$0xff] }
0x10ac   :  { %6991 = vmatmul.mubr.msk.bf16.vlgmr.msra.gmra.mrb[128].mxu0 %vm783_vm3, %v4565_v60 }
0x10ad   :  { %7001 = vmatpush3.bf16.xpose.msra.mxu0 %v5609_v61  ;;  %v4550_v25 = vpop.trf.xlu1  ;;  %7002 = vmatprep.mubr.msk.bf16.mxu0 %vm7566_vm0, %v7565_v0 }
0x10ae   :  { %v4566_v1 = vpack.c.bf16 %v4550_v25, %v4550_v25  ;;  %7012 = vmatprep.subr.bf16.mxu0 %v7565_v0 }
0x10b0   :  { %6997 = vmatmul.mubr.msk.bf16.vlgmr.msra.gmra.mrb[140].mxu1 %vm783_vm3, %v4566_v1 }
0x10b1   :  { %7007 = vmatpush3.bf16.xpose.msra.mxu1 %v5655_v19  ;;  %v4551_v2 = vpop.trf.xlu1  ;;  %7008 = vmatprep.mubr.msk.bf16.mxu1 %vm7566_vm0, %v7565_v0 }
0x10b2   :  { %v4567_v5 = vpack.c.bf16 %v4551_v2, %v4551_v2 }
0x10b4   :  { %7003 = vmatmul.mubr.msk.bf16.vlgmr.msra.gmra.mrb[132].mxu0 %vm783_vm3, %v4567_v5 }
0x10b5   :  { %v4552_v6 = vpop.trf.xlu1  ;;  %7020 = vmatprep.mubr.msk.bf16.mxu0 %vm7566_vm0, %v7565_v0  ;;  %7013 = vmatpush3.bf16.msra.mxu0 %v7194_v12 }
0x10b6   :  { %v4568_v7 = vpack.c.bf16 %v4552_v6, %v4552_v6  ;;  %7014 = vmatprep.subr.bf16.mxu0 %v7565_v0 }
0x10b8   :  { %7009 = vmatmul.mubr.msk.bf16.vlgmr.msra.gmra.mrb[144].mxu1 %vm783_vm3, %v4568_v7 }
0x10b9   :  { %7015 = vmatpush3.bf16.msra.mxu0 %v7195_v10 }
0x10ba   :  { %7016 = vmatprep.subr.bf16.mxu0 %v7565_v0 }
0x10bd   :  { %7017 = vmatpush3.bf16.msra.mxu0 %v7196_v11 }
0x10be   :  { %7018 = vmatprep.subr.bf16.mxu0 %v7565_v0 }
0x10c1   :  { %7019 = vmatpush3.bf16.msra.mxu0 %v7197_v17  ;;  %v7201_v17 = vld [vmem:[%s8608_s17 + $0x10] ss:$8 sps:$4 sm:$0xff]  }
0x116f   :  { %v5369_v16 = vpop.f32.mrb[120].mxu0 }
0x1170   :  { %v7145_v51 = vpack.i.bf16 %v5369_v16, %v8381_v18  ;;  %v6968_v23 = vpop.f32.mrb[121].mxu0 }
0x1171   :  { %v5372_v40 = vpop.f32.mrb[122].mxu0 }
0x1172   :  { %v6969_v63 = vpop.f32.mrb[123].mxu0  ;;  %7146 = vxpose.xlu0.b32.start [1/8] (short) (narrow) %v7145_v51, 8 }
0x1173   :  { %v5415_v38 = vpop.f32.mrb[132].mxu1  ;;  %v7198_v63 = vld [vmem:[%s8608_s17] ss:$8 sps:$4 sm:$0xff]  }
0x1174   :  { %v7147_v24 = vpack.i.bf16 %v5415_v38, %v8383_v3  ;;  %v6974_v26 = vpop.f32.mrb[133].mxu1  ;;  %v7203_v38 = vld [vmem:[%s8608_s17 + $0x14] ss:$8 sps:$4 sm:$0xff]  }
0x1175   :  { %v5418_v20 = vpop.f32.mrb[134].mxu1  ;;  %v7204_v26 = vld [vmem:[%s8608_s17 + $0x20] ss:$8 sps:$4 sm:$0xff]  }
0x1176   :  { %7148 = vxpose.xlu0.b32.cont [2/8] (short) (narrow) %v7147_v24, 8  ;;  %v6975_v28 = vpop.f32.mrb[135].mxu1  ;;  %v7206_v24 = vld [vmem:[%s8608_s17 + $0x24] ss:$8 sps:$4 sm:$0xff]   ;;  %v7207_v20 = vld [vmem:[%s8608_s17 + $0x30] ss:$8 sps:$4 sm:$0xff]  }
0x1177   :  { %v5461_v29 = vpop.f32.mrb[124].mxu0  ;;  %v7209_v28 = vld [vmem:[%s8608_s17 + $0x34] ss:$8 sps:$4 sm:$0xff]  }
0x1178   :  { %v7149_v30 = vpack.i.bf16 %v5461_v29, %v8385_v9  ;;  %v6980_v0 = vpop.f32.mrb[125].mxu0  ;;  %v7568_v29 = vmov 0  }
0x1179   :  { %v5464_v59 = vpop.f32.mrb[126].mxu0  ;;  %5955 = vmatprep.mubr.bf16.mxu1 %v7568_v29  ;;  %v7211_v0 = vld [vmem:[%s8610_s19] sm:$0xff]  }
0x117a   :  { %v6981_v14 = vpop.f32.mrb[127].mxu0  ;;  %7150 = vxpose.xlu0.b32.cont [3/8] (short) (narrow) %v7149_v30, 8  ;;  %v7210_v30 = vld [vmem:[%s8610_s19 + $0x40] sm:$0xff]   ;;  %v7212_v59 = vld [vmem:[%s8610_s19 + $0x48] sm:$0xff]  }
0x117b   :  { %v5507_v18 = vpop.f32.mrb[136].mxu1  ;;  %6522 = vmatprep.subr.bf16.mxu0 %v7210_v30  ;;  %v7213_v14 = vld [vmem:[%s8610_s19 + $0x8] sm:$0xff]  }
0x117c   :  { %v7151_v35 = vpack.i.bf16 %v5507_v18, %v8387_v13  ;;  %v6986_v27 = vpop.f32.mrb[137].mxu1  ;;  %v7214_v18 = vld [vmem:[%s8610_s19 + $0x50] sm:$0xff]  }
0x117d   :  { %v5510_v31 = vpop.f32.mrb[138].mxu1  ;;  %v7216_v27 = vld [vmem:[%s8610_s19 + $0x58] sm:$0xff]  }
0x117e   :  { %7152 = vxpose.xlu0.b32.cont [4/8] (short) (narrow) %v7151_v35, 8  ;;  %v6987_v34 = vpop.f32.mrb[139].mxu1  ;;  %v7215_v35 = vld [vmem:[%s8610_s19 + $0x10] sm:$0xff]   ;;  %v7217_v31 = vld [vmem:[%s8610_s19 + $0x18] sm:$0xff]  }
0x117f   :  { %v5553_v3 = vpop.f32.mrb[128].mxu0  ;;  %v7218_v34 = vld [vmem:[%s8610_s19 + $0x60] sm:$0xff]  }
0x1180   :  { %v7153_v36 = vpack.i.bf16 %v5553_v3, %v8389_v47  ;;  %v6992_v39 = vpop.f32.mrb[129].mxu0  ;;  %v7219_v3 = vld [vmem:[%s8610_s19 + $0x20] sm:$0xff]  }
0x1181   :  { %v5556_v32 = vpop.f32.mrb[130].mxu0 }
0x1182   :  { %v6993_v41 = vpop.f32.mrb[131].mxu0  ;;  %7154 = vxpose.xlu0.b32.cont [5/8] (short) (narrow) %v7153_v36, 8  ;;  %v7220_v36 = vld [vmem:[%s8610_s19 + $0x68] sm:$0xff]  }
0x1183   :  { %v5599_v21 = vpop.f32.mrb[140].mxu1 }
0x1184   :  { %v7155_v9 = vpack.i.bf16 %v5599_v21, %v8391_v22  ;;  %v6998_v37 = vpop.f32.mrb[141].mxu1 }
0x1185   :  { %v5602_v42 = vpop.f32.mrb[142].mxu1 }
0x1186   :  { %7156 = vxpose.xlu0.b32.cont [6/8] (short) (narrow) %v7155_v9, 8  ;;  %v6999_v43 = vpop.f32.mrb[143].mxu1 }
0x1187   :  { %v5645_v44 = vpop.f32.mrb[132].mxu0  ;;  %v6324_v43 = vld [vmem:[%s8606_s15] ss:$0 sm:$0xff] }
0x1188   :  { %v7157_v13 = vpack.i.bf16 %v5645_v44, %v8393_v56  ;;  %v7004_v48 = vpop.f32.mrb[133].mxu0 }
0x1189   :  { %v5648_v49 = vpop.f32.mrb[134].mxu0 }
0x118a   :  { %v7005_v50 = vpop.f32.mrb[135].mxu0  ;;  %7158 = vxpose.xlu0.b32.cont [7/8] (short) (narrow) %v7157_v13, 8 }
0x118b   :  { %v5691_v4 = vpop.f32.mrb[144].mxu1  ;;  %v6325_v50 = vld [vmem:[%s8607_s16] ss:$0 sm:$0xff] }
0x118c   :  { %v7159_v47 = vpack.i.bf16 %v5691_v4, %v8395_v33  ;;  %v7010_v52 = vpop.f32.mrb[145].mxu1 }
0x118d   :  { %v5694_v54 = vpop.f32.mrb[146].mxu1 }
0x118e   :  { %7160 = vxpose.xlu0.b32.end [8/8] (short) (narrow) %v7159_v47, 8  ;;  %v7011_v8 = vpop.f32.mrb[147].mxu1 }
0x118f   :  { %v7221_v8 = vld [vmem:[%s8610_s19 + $0x28] sm:$0xff]  }
0x11f2   :  { %v7161_v55 = vpop.trf.xlu0 }
0x11f3   :  { %v7165_v22 = vunpack.i.h.bf16 %v7161_v55  ;;  %v7162_v57 = vunpack.i.l.bf16 %v7161_v55  ;;  %v7222_v55 = vld [vmem:[%s8610_s19 + $0x70] sm:$0xff]  }
0x11f5   :  { %v5729_v53 = vpack.c.bf16 %v7165_v22, %v7162_v57  ;;  %v7223_v22 = vld [vmem:[%s8610_s19 + $0x30] sm:$0xff]   ;;  %v7224_v57 = vld [vmem:[%s8610_s19 + $0x78] sm:$0xff]  }
0x11f7   :  { %7021 = vmatmul.mubr.msk.bf16.vlgmr.msra.gmra.mrb[136].mxu0 %vm216_vm1, %v5729_v53  ;;  %v7225_v53 = vld [vmem:[%s8610_s19 + $0x38] sm:$0xff]  }
0x11f8   :  { %6523 = vmatpush3.bf16.msra.mxu0 %v7211_v0 }
0x11f9   :  { %6524 = vmatprep.subr.bf16.mxu0 %v7212_v59 }
0x11fc   :  { %6525 = vmatpush3.bf16.msra.mxu0 %v7213_v14 }
0x11fd   :  { %6526 = vmatprep.subr.bf16.mxu0 %v7214_v18 }
0x1200   :  { %6527 = vmatpush3.bf16.msra.mxu0 %v7215_v35 }
0x1201   :  { %6528 = vmatprep.subr.bf16.mxu0 %v7216_v27 }
0x1204   :  { %6529 = vmatpush3.bf16.msra.mxu0 %v7217_v31 }
0x1205   :  { %6530 = vmatprep.subr.bf16.mxu0 %v7218_v34 }
0x1208   :  { %6531 = vmatpush3.bf16.msra.mxu0 %v7219_v3 }
0x1209   :  { %6532 = vmatprep.subr.bf16.mxu0 %v7220_v36 }
0x120c   :  { %6533 = vmatpush3.bf16.msra.mxu0 %v7221_v8 }
0x120d   :  { %6534 = vmatprep.subr.bf16.mxu0 %v7222_v55 }
0x1210   :  { %6535 = vmatpush3.bf16.msra.mxu0 %v7223_v22 }
0x1211   :  { %6536 = vmatprep.subr.bf16.mxu0 %v7224_v57 }
0x1214   :  { %6537 = vmatpush3.bf16.msra.mxu0 %v7225_v53 }
0x12ca   :  { %v5806_v60 = vpop.f32.mrb[136].mxu0 }
0x12cb   :  { %v5807_v56 = vadd.f32 %v6318_v58, %v5806_v60  ;;  %v7022_v61 = vpop.f32.mrb[137].mxu0  ;;  %v5868_v60 = vld [vmem:[%s8609_s18] sm:$0x3] }
0x12cc   :  { %v5809_v62 = vpop.f32.mrb[138].mxu0 }
0x12cd   :  { %v5813_v25 = vadd.f32 %v5807_v56, %v8214_v45  ;;  %v5810_v1 = vadd.f32 %v6318_v58, %v5809_v62  ;;  %v7023_v19 = vpop.f32.mrb[139].mxu0  ;;  %v5872_v58 = vsub.s32 0, %v7926_v15  ;;  %v5876_v56 = vsub.s32 1, %v7926_v15  ;;  %v6335_v15 = vld [vmem:[%s8611_s20] ss:$0 sm:$0xff] }
0x12cf   :  { %v5814_v33 = vadd.f32 %v5810_v1, %v8216_v46  ;;  %v5815_v2 = vsel %vm216_vm1, %v5813_v25, 0.0  ;;  %v7200_v46 = vld [vmem:[%s8608_s17 + $0x4] ss:$8 sps:$4 sm:$0xff]   ;;  %v5873_v61 = vrot.slane %v5868_v60, %v5872_v58  ;;  %v5877_v62 = vrot.slane %v5868_v60, %v5876_v56 }
0x12d0   :  { %5816 = vadd.xlane.f32.xlu1 %v5815_v2  ;;  %5923 = vmatprep.subr.bf16.mxu1 %v7200_v46 }
0x12d1   :  { %v5818_v5 = vsel %vm216_vm1, %v5814_v33, 0.0  ;;  %5924 = vmatpush1.bf16.msra.mxu1 %v7198_v63 }
0x12d2   :  { %5819 = vadd.xlane.f32.xlu0 %v5818_v5  ;;  %5925 = vmatprep.subr.bf16.mxu1 %v7203_v38 }
0x12d5   :  { %5926 = vmatpush1.bf16.msra.mxu1 %v7201_v17 }
0x12d6   :  { %5927 = vmatprep.subr.bf16.mxu1 %v7206_v24 }
0x12d9   :  { %5928 = vmatpush1.bf16.msra.mxu1 %v7204_v26 }
0x12da   :  { %5929 = vmatprep.subr.bf16.mxu1 %v7209_v28 }
0x12dd   :  { %5930 = vmatpush1.bf16.msra.mxu1 %v7207_v20 }
0x135d   :  { %v5817_v6 = vpop.xlane.xlu1 %5816 }
0x135e   :  { %v5821_v7 = vmul.f32 0.015625, %v5817_v6 }
0x135f   :  { %v5820_v12 = vpop.xlane.xlu0 %5819 }
0x1360   :  { %v5823_v10 = vsub.f32 %v5813_v25, %v5821_v7  ;;  %v5822_v11 = vmul.f32 0.015625, %v5820_v12 }
0x1362   :  { %v5824_v16 = vsub.f32 %v5814_v33, %v5822_v11  ;;  %v5825_v51 = vmul.f32 %v5823_v10, %v5823_v10 }
0x1364   :  { %v5827_v23 = vsel %vm216_vm1, %v5825_v51, 0.0  ;;  %v5826_v45 = vmul.f32 %v5824_v16, %v5824_v16 }
0x1365   :  { %5828 = vadd.xlane.f32.xlu1 %v5827_v23 }
0x1366   :  { %v5830_v40 = vsel %vm216_vm1, %v5826_v45, 0.0 }
0x1367   :  { %5831 = vadd.xlane.f32.xlu0 %v5830_v40 }
0x13f2   :  { %v5829_v39 = vpop.xlane.xlu1 %5828 }
0x13f3   :  { %v5833_v32 = vmul.f32 0.015625, %v5829_v39 }
0x13f4   :  { %v5832_v41 = vpop.xlane.xlu0 %5831 }
0x13f5   :  { %v5835_v21 = vadd.f32 1e-05, %v5833_v32  ;;  %v5834_v9 = vmul.f32 0.015625, %v5832_v41 }
0x13f7   :  { %7358 = vrsqrt.f32 %v5835_v21  ;;  %v5836_v37 = vadd.f32 1e-05, %v5834_v9 }
0x13f9   :  { %7360 = vrsqrt.f32 %v5836_v37 }
0x1401   :  { %v7359_v42 = vpop.eup %7358 }
0x1402   :  { %v5839_v44 = vmul.f32 %v7359_v42, %v5823_v10 }
0x1403   :  { %v7361_v13 = vpop.eup %7360 }
0x1404   :  { %v5848_v48 = vmul.f32 %v6324_v43, %v5839_v44  ;;  %v5840_v49 = vmul.f32 %v7361_v13, %v5824_v16 }
0x1406   :  { %v5849_v4 = vmul.f32 %v6324_v43, %v5840_v49  ;;  %v5857_v47 = vadd.f32 %v6325_v50, %v5848_v48  ;;  %v6352_v43 = vld [vmem:[%s8612_s21] ss:$0 sm:$0xff] }
0x1407   :  { %v6353_v48 = vld [vmem:[%s8613_s22] ss:$0 sm:$0xff] }
0x1408   :  { %v5858_v52 = vadd.f32 %v6325_v50, %v5849_v4 }
0x140a   :  { %v5859_v54 = vpack.c.bf16 %v5858_v52, %v5857_v47 }
0x140c   :  { %6334 = vmatmul.mubr.msk.bf16.vlgmr.msra.gmra.mrb[148].mxu1 %vm216_vm1, %v5859_v54 }
0x14df   :  { %v5957_v25 = vpop.f32.mrb[148].mxu1 }
0x14e0   :  { %v5958_v1 = vadd.f32 %v5957_v25, %v5873_v61  ;;  %v5959_v19 = vpop.f32.mrb[149].mxu1 }
0x14e1   :  { %v5960_v33 = vadd.f32 %v5959_v19, %v5877_v62  ;;  %v5961_v2 = vpop.f32.mrb[150].mxu1 }
0x14e2   :  { %v5962_v5 = vadd.f32 %v5961_v2, %v5873_v61  ;;  %v5963_v6 = vpop.f32.mrb[151].mxu1  ;;  %v5966_v12 = vmax.f32 %v5958_v1, 0.0 }
0x14e3   :  { %v5964_v7 = vadd.f32 %v5963_v6, %v5877_v62  ;;  %v5967_v11 = vmax.f32 %v5960_v33, 0.0 }
0x14e4   :  { %v5968_v10 = vmax.f32 %v5962_v5, 0.0 }
0x14e5   :  { %v5969_v16 = vmax.f32 %v5964_v7, 0.0 }
0x14e6   :  { %v5970_v51 = vpack.c.bf16 %v5968_v10, %v5966_v12 }
0x14e7   :  { %v5971_v23 = vpack.c.bf16 %v5969_v16, %v5967_v11 }
0x14e9   :  { %6139 = vmatprep.mubr.bf16.mxu0 %v5971_v23 }
0x14ea   :  { %6140 = vmatmul.mubr.bf16.vlgmr.msra.gmra.mrb[140].mxu0 %v5970_v51 }
0x15bd   :  { %v6538_v45 = vpop.f32.mrb[140].mxu0 }
0x15be   :  { %v6539_v40 = vpop.f32.mrb[141].mxu0 }
0x15bf   :  { %v6540_v46 = vadd.f32 %v6539_v40, %v6538_v45  ;;  %v6541_v63 = vpop.f32.mrb[142].mxu0 }
0x15c0   :  { %v6542_v38 = vpop.f32.mrb[143].mxu0 }
0x15c1   :  { %v6142_v17 = vadd.f32 %v6540_v46, %v6335_v15  ;;  %v6543_v24 = vadd.f32 %v6542_v38, %v6541_v63 }
0x15c3   :  { %v6145_v26 = vadd.f32 %v6543_v24, %v6335_v15  ;;  %v6148_v20 = vadd.f32 %v6142_v17, %v5857_v47 }
0x15c5   :  { %v6150_v28 = vsel %vm216_vm1, %v6148_v20, 0.0  ;;  %v6149_v29 = vadd.f32 %v6145_v26, %v5858_v52 }
0x15c6   :  { %6151 = vadd.xlane.f32.xlu1 %v6150_v28 }
0x15c7   :  { %v6153_v30 = vsel %vm216_vm1, %v6149_v29, 0.0 }
0x15c8   :  { %6154 = vadd.xlane.f32.xlu0 %v6153_v30 }
0x1653   :  { %v6152_v0 = vpop.xlane.xlu1 %6151 }
0x1654   :  { %v6156_v59 = vmul.f32 0.015625, %v6152_v0 }
0x1655   :  { %v6155_v14 = vpop.xlane.xlu0 %6154 }
0x1656   :  { %v6158_v18 = vsub.f32 %v6148_v20, %v6156_v59  ;;  %v6157_v35 = vmul.f32 0.015625, %v6155_v14 }
0x1658   :  { %v6159_v27 = vsub.f32 %v6149_v29, %v6157_v35  ;;  %v6160_v31 = vmul.f32 %v6158_v18, %v6158_v18 }
0x165a   :  { %v6162_v34 = vsel %vm216_vm1, %v6160_v31, 0.0  ;;  %v6161_v3 = vmul.f32 %v6159_v27, %v6159_v27 }
0x165b   :  { %6163 = vadd.xlane.f32.xlu1 %v6162_v34 }
0x165c   :  { %v6165_v36 = vsel %vm216_vm1, %v6161_v3, 0.0 }
0x165d   :  { %6166 = vadd.xlane.f32.xlu0 %v6165_v36 }
0x16e8   :  { %v6164_v39 = vpop.xlane.xlu1 %6163 }
0x16e9   :  { %v6168_v32 = vmul.f32 0.015625, %v6164_v39 }
0x16ea   :  { %v6167_v41 = vpop.xlane.xlu0 %6166 }
0x16eb   :  { %v6170_v21 = vadd.f32 1e-05, %v6168_v32  ;;  %v6169_v9 = vmul.f32 0.015625, %v6167_v41 }
0x16ed   :  { %7362 = vrsqrt.f32 %v6170_v21  ;;  %v6171_v37 = vadd.f32 1e-05, %v6169_v9 }
0x16ef   :  { %7364 = vrsqrt.f32 %v6171_v37 }
0x16f7   :  { %v7363_v42 = vpop.eup %7362 }
0x16f8   :  { %v6174_v44 = vmul.f32 %v7363_v42, %v6158_v18 }
0x16f9   :  { %v7365_v13 = vpop.eup %7364 }
0x16fa   :  { %v6175_v49 = vmul.f32 %v7365_v13, %v6159_v27  ;;  %v6183_v50 = vmul.f32 %v6352_v43, %v6174_v44 }
0x16fc   :  { %v6184_v4 = vmul.f32 %v6352_v43, %v6175_v49  ;;  %v6192_v47 = vadd.f32 %v6353_v48, %v6183_v50 }
0x16fe   :  { %v6193_v52 = vadd.f32 %v6353_v48, %v6184_v4  ;;  %6194 = vst.msk [vmem:[#allocation14] sm:$0xff] %vm216_vm1, %v6192_v47 }
0x1700   :  { %6195 = vst.msk [vmem:[#allocation14 + $0x8] sm:$0xff] %vm216_vm1, %v6193_v52 }
0x1701   :  { %7533 = shalt.err (!%p7530_p4)
}
0x1702   :  { %s8650_s10 = sld [smem:[#allocation28_spill]] }
0x1708   :  { %s7534_s11 = scalar_lea.hbm %s8650_s10, 256 }
0x1709   :  { %p7535_p5 = scmp.ne.s32.totalorder %s8650_s10, %s7534_s11  ;;  %p7538_p6 = scmp.lt.u32.totalorder %s7534_s11, %s8650_s10 }
0x170b   :  { %p7540_p7 = pnand %p7538_p6, %p7535_p5 }
0x170d   :  { %7543 = shalt.err (!%p7540_p7)
}
0x170e   :  { %6207 = dma.vmem_to_hbm [thread:$0]  %s6202_s23, 256, %s8650_s10, [#allocation4], %s8641_s1, %s8641_s1, %s8640_s13  }
0x170f   :  { %7552 = dma.done.wait [#allocation4], 256  }
0x1710   :  { %7553 = vsyncadd [#allocation4], 4294967040 }
0x1711   :  { %6211 = vsyncpa [#allocation3], 1 }
0x1712   :  { %6212 = vsyncpa [#allocation6], 1 }
0x1713   :  { %6213 = vsyncpa [#allocation9], 1 }
0x1714   :  { %6214 = vsyncpa [#allocation12], 1 }
0x1715   :  { %6215 = vsyncpa [#allocation4], 1 }

</bundles_post_ra>
